<compile_context>
chip_gen: v5e
topology: v5e:2x2
jax: 0.10.0
libtpu: 0.0.40
codegen_flags: <defaults>
</compile_context>

<pallas_src>
import jax
import jax.numpy as jnp
import numpy as np
from jax.experimental import pallas as pl
from jax.experimental.pallas import tpu as pltpu

BN_EPS = 1e-4

# bfloat16 feeds the MXU at native rate on v5e/v6e/v7x; flip to jnp.float32 to
# recover ~1e-2 parity with the f32 reference (at a large perf cost).
_MXU_DTYPE = jnp.bfloat16

# Explicit scoped-VMEM budget: above v5e's 16 MiB default, below v7x's 64 MiB
# physical per-TC VMEM (tile caps below keep real-shape usage well under this).
_VMEM_LIMIT = 48 * 1024 * 1024

_PAR1 = pltpu.CompilerParams(dimension_semantics=("parallel",),
                             vmem_limit_bytes=_VMEM_LIMIT)
_PAR2 = pltpu.CompilerParams(dimension_semantics=("parallel", "parallel"),
                             vmem_limit_bytes=_VMEM_LIMIT)


# ---------------------------------------------------------------------------
# In-kernel activation
# ---------------------------------------------------------------------------
def _mish(x):
    # x * tanh(softplus(x)) with one exp + one approx reciprocal (EUP slot).
    # tanh(log(1 + t)) = t(t+2) / (t(t+2) + 2),  t = exp(x).
    # PyTorch softplus threshold=20 -> mish(x) ~= x for x > 20.
    t = jnp.exp(jnp.minimum(x, 20.0))
    u = t * (t + 2.0)
    tanh_sp = u * pl.reciprocal(u + 2.0, approx=True)
    return jnp.where(x > 20.0, x, x * tanh_sp)


# ---------------------------------------------------------------------------
# Pallas kernels
# ---------------------------------------------------------------------------
def _dual_pw_kernel(x_ref, w_ref, b1_ref, b2_ref, o1_ref, o2_ref):
    # Fused cv1 + cv2: one bf16 matmul over the shared input, two lane-dense
    # slices; bias + mish in f32, outputs stored in the MXU dtype.
    c1 = o1_ref.shape[-1]
    y = jnp.dot(x_ref[...], w_ref[...], preferred_element_type=jnp.float32)
    o1_ref[...] = _mish(y[:, :c1] + b1_ref[...]).astype(o1_ref.dtype)
    o2_ref[...] = _mish(y[:, c1:] + b2_ref[...]).astype(o2_ref.dtype)


def _merge_pw_kernel(x_ref, y1_ref, w3_ref, b3_ref, w4a_ref, w4b_ref, b4_ref,
                     o_ref):
    # Fused cv3 -> concat([y3, y1]) -> cv4, all in VMEM (no HBM concat buffer).
    y3 = _mish(jnp.dot(x_ref[...], w3_ref[...],
                       preferred_element_type=jnp.float32) + b3_ref[...])
    y3 = y3.astype(_MXU_DTYPE)
    z = (jnp.dot(y3, w4a_ref[...], preferred_element_type=jnp.float32)
         + jnp.dot(y1_ref[...], w4b_ref[...], preferred_element_type=jnp.float32)
         + b4_ref[...])
    o_ref[...] = _mish(z).astype(o_ref.dtype)


def _resb_kernel(xc_ref, xt_ref, xb_ref, wpc_ref, bpc_ref, w9_ref, bcv_ref,
                 o_ref, hid_ref):
    # Fused ResB:  out = x + mish(bn(conv3x3(mish(bn(conv1x1(x))))))
    #   xc: (th, W, Ci)  current row-tile (also the residual)
    #   xt/xb: (1, W, Ci) halo rows (previous/next tile), zeroed at boundaries
    #   wpc: (Ci, Cr)   pointwise-squeeze weight (BN folded),  bpc: (1, Cr)
    #   w9 : (9, Cr, Co) 3x3 taps ordered dy*3+dx (BN folded), bcv: (1, Co)
    #   hid_ref: (th+2, W, Cr) scratch holding the pointwise output slab.
    th, ww, ci = xc_ref.shape
    crp = wpc_ref.shape[1]
    co = o_ref.shape[-1]
    mm = th * ww
    i = pl.program_id(1)
    nt = pl.num_programs(1)
    top_ok = (i > 0).astype(jnp.float32)          # conv zero-pads hid at row -1
    bot_ok = (i < nt - 1).astype(jnp.float32)     # ... and at row H

    def pw(x2d):                                   # (rows, Ci) -> f32 (rows, Cr)
        y = jnp.dot(x2d, wpc_ref[...], preferred_element_type=jnp.float32)
        return _mish(y + bpc_ref[...])

    # Pointwise squeeze straight into the (th+2)-row slab (no copy of inputs;
    # the two halo rows are recomputed, ~2/th overhead).
    xc = xc_ref[...]
    hid_ref[1:th + 1] = pw(xc.reshape(mm, ci)).reshape(th, ww, crp).astype(
        hid_ref.dtype)
    hid_ref[0:1] = (pw(xt_ref[...].reshape(ww, ci)) * top_ok
                    ).reshape(1, ww, crp).astype(hid_ref.dtype)
    hid_ref[th + 1:th + 2] = (pw(xb_ref[...].reshape(ww, ci)) * bot_ok
                              ).reshape(1, ww, crp).astype(hid_ref.dtype)

    # 3x3 conv: accumulate per-dx column sums L/C/R over the 3 dy rows as
    # plain values (no zero-init, no accumulator RMW), 9 MXU matmuls total.
    L = C = R = None
    for dy in range(3):                            # static, fully unrolled
        slab = hid_ref[dy:dy + th].reshape(mm, crp)   # leading-dim slice, free
        l_ = jnp.dot(slab, w9_ref[3 * dy + 0], preferred_element_type=jnp.float32)
        c_ = jnp.dot(slab, w9_ref[3 * dy + 1], preferred_element_type=jnp.float32)
        r_ = jnp.dot(slab, w9_ref[3 * dy + 2], preferred_element_type=jnp.float32)
        L = l_ if L is None else L + l_
        C = c_ if C is None else C + c_
        R = r_ if R is None else R + r_

    # Apply the dx shift once: 2 XLU rolls + 2 selects per grid step.  The
    # column mask implements the conv's zero padding along W (and kills the
    # cross-image-row wrap of the flattened roll).
    wcol = jax.lax.broadcasted_iota(jnp.int32, (mm, 1), 0) % ww
    not_first = wcol != 0                 # output col w has a valid w-1 neighbour
    not_last = wcol != (ww - 1)           # output col w has a valid w+1 neighbour
    y = (C
         + jnp.where(not_first, pltpu.roll(L, 1, axis=0), 0.0)
         + jnp.where(not_last, pltpu.roll(R, mm - 1, axis=0), 0.0)
         + bcv_ref[...])

    out = xc.astype(jnp.float32).reshape(mm, co) + _mish(y)   # residual add (f32)
    o_ref[...] = out.reshape(th, ww, co).astype(o_ref.dtype)


# ---------------------------------------------------------------------------
# pallas_call wrappers
# ---------------------------------------------------------------------------
def _largest_divisor(total, cap, multiple=1):
    cap = max(1, min(cap, total))
    for d in range(cap, 0, -1):
        if total % d == 0 and d % multiple == 0:
            return d
    for d in range(cap, 0, -1):           # fallback: ignore the multiple hint
        if total % d == 0:
            return d
    return total


def dual_pw_conv(x2d, w12, b1, b2, tm):
    m, cin = x2d.shape
    c1 = b1.shape[1]
    c2 = b2.shape[1]
    return pl.pallas_call(
        _dual_pw_kernel,
        out_shape=(jax.ShapeDtypeStruct((m, c1), _MXU_DTYPE),
                   jax.ShapeDtypeStruct((m, c2), _MXU_DTYPE)),
        grid=(m // tm,),
        in_specs=[pl.BlockSpec((tm, cin), lambda i: (i, 0)),
                  pl.BlockSpec((cin, c1 + c2), lambda i: (0, 0)),
                  pl.BlockSpec((1, c1), lambda i: (0, 0)),
                  pl.BlockSpec((1, c2), lambda i: (0, 0))],
        out_specs=(pl.BlockSpec((tm, c1), lambda i: (i, 0)),
                   pl.BlockSpec((tm, c2), lambda i: (i, 0))),
        compiler_params=_PAR1,
    )(x2d, w12, b1, b2)


def merge_pw_conv(cur, y1, w3, b3, w4a, w4b, b4, tm):
    m, cin = cur.shape
    c1 = y1.shape[1]
    cmid = w3.shape[1]
    cout = w4a.shape[1]
    return pl.pallas_call(
        _merge_pw_kernel,
        out_shape=jax.ShapeDtypeStruct((m, cout), _MXU_DTYPE),
        grid=(m // tm,),
        in_specs=[pl.BlockSpec((tm, cin), lambda i: (i, 0)),
                  pl.BlockSpec((tm, c1), lambda i: (i, 0)),
                  pl.BlockSpec((cin, cmid), lambda i: (0, 0)),
                  pl.BlockSpec((1, cmid), lambda i: (0, 0)),
                  pl.BlockSpec((cmid, cout), lambda i: (0, 0)),
                  pl.BlockSpec((c1, cout), lambda i: (0, 0)),
                  pl.BlockSpec((1, cout), lambda i: (0, 0))],
        out_specs=pl.BlockSpec((tm, cout), lambda i: (i, 0)),
        compiler_params=_PAR1,
    )(cur, y1, w3, b3, w4a, w4b, b4)


def resb_fused(cur_nhwc, wpc, bpc, w9, bcv, th):
    # Fused pointwise-squeeze + row-tiled 3x3 conv + BN + Mish + residual.
    n, h, w_, cp = cur_nhwc.shape
    crp = wpc.shape[1]
    nt = h // th
    top_map = lambda b, i: (b, jnp.maximum(i * th - 1, 0), 0, 0)
    bot_map = lambda b, i: (b, jnp.minimum(i * th + th, h - 1), 0, 0)
    return pl.pallas_call(
        _resb_kernel,
        out_shape=jax.ShapeDtypeStruct((n, h, w_, cp), _MXU_DTYPE),
        grid=(n, nt),
        in_specs=[pl.BlockSpec((None, th, w_, cp), lambda b, i: (b, i, 0, 0)),
                  pl.BlockSpec((None, 1, w_, cp), top_map),
                  pl.BlockSpec((None, 1, w_, cp), bot_map),
                  pl.BlockSpec((cp, crp), lambda b, i: (0, 0)),
                  pl.BlockSpec((1, crp), lambda b, i: (0, 0)),
                  pl.BlockSpec((9, crp, cp), lambda b, i: (0, 0, 0)),
                  pl.BlockSpec((1, cp), lambda b, i: (0, 0))],
        out_specs=pl.BlockSpec((None, th, w_, cp), lambda b, i: (b, i, 0, 0)),
        scratch_shapes=[pltpu.VMEM((th + 2, w_, crp), _MXU_DTYPE)],
        compiler_params=_PAR2,
    )(cur_nhwc, cur_nhwc, cur_nhwc, wpc, bpc, w9, bcv)


# ---------------------------------------------------------------------------
# Deterministic parameter init (mirrors the PyTorch module shapes)
# ---------------------------------------------------------------------------
def _init_conv_params(key, cin, cout, k):
    kw, kg, kb, km, kv = jax.random.split(key, 5)
    w = jax.random.normal(kw, (cout, cin, k, k), jnp.float32) / np.sqrt(cin * k * k)
    gamma = 1.0 + 0.1 * jax.random.normal(kg, (cout,), jnp.float32)
    beta = 0.1 * jax.random.normal(kb, (cout,), jnp.float32)
    rmean = 0.1 * jax.random.normal(km, (cout,), jnp.float32)
    rvar = 0.5 + 0.5 * jnp.abs(jax.random.normal(kv, (cout,), jnp.float32))
    return dict(w=w, gamma=gamma, beta=beta, rmean=rmean, rvar=rvar)


def init_csp_params(key, c, n=1, path=False, e=0.5):
    c_ = c // 2 if path else c
    keys = jax.random.split(key, 4 + 2 * n)
    params = dict(
        cv1=_init_conv_params(keys[0], c, c_, 1),
        cv2=_init_conv_params(keys[1], c, c_, 1),
        cv3=_init_conv_params(keys[2], c_, c_, 1),
        cv4=_init_conv_params(keys[3], 2 * c_, c, 1),
        m=[],
    )
    c_res = int(c_ * e)
    for i in range(n):
        params['m'].append(dict(
            pc=_init_conv_params(keys[4 + 2 * i], c_, c_res, 1),
            cv=_init_conv_params(keys[5 + 2 * i], c_res, c_, 3),
        ))
    return params


# ---------------------------------------------------------------------------
# Weight prep: fold BN scale into weights, pad channels to lane width (128),
# cast matmul operands to the MXU dtype (biases stay f32).
# ---------------------------------------------------------------------------
def _round128(c):
    return ((c + 127) // 128) * 128


def _pad_to(x, axis, target):
    pad = target - x.shape[axis]
    if pad == 0:
        return x
    widths = [(0, 0)] * x.ndim
    widths[axis] = (0, pad)
    return jnp.pad(x, widths)


def _fold_pw(p):
    scale = p['gamma'] * jax.lax.rsqrt(p['rvar'] + BN_EPS)
    bias = p['beta'] - p['rmean'] * scale
    w = (p['w'][:, :, 0, 0] * scale[:, None]).T
    return w, bias.reshape(1, -1)


def _fold_pw_padded(p, cin_p, cout_p):
    w, b = _fold_pw(p)
    w = _pad_to(_pad_to(w, 0, cin_p), 1, cout_p).astype(_MXU_DTYPE)
    return w, _pad_to(b, 1, cout_p)


def _fold_3x3_padded(p, cin_p, cout_p):
    scale = p['gamma'] * jax.lax.rsqrt(p['rvar'] + BN_EPS)
    bias = p['beta'] - p['rmean'] * scale
    w = p['w'] * scale[:, None, None, None]                  # (Cout, Cin, 3, 3)
    w9 = jnp.transpose(w, (2, 3, 1, 0)).reshape(9, w.shape[1], w.shape[0])
    w9 = _pad_to(_pad_to(w9, 1, cin_p), 2, cout_p).astype(_MXU_DTYPE)
    return w9, _pad_to(bias.reshape(1, -1), 1, cout_p)


# ---------------------------------------------------------------------------
# CSP forward (Pallas)
# ---------------------------------------------------------------------------
def csp_forward(params, x_nchw, *, tm_cap=512, th_cap=16):
    n_, c, h, w_ = x_nchw.shape
    c_ = params['cv1']['w'].shape[0]
    cP = _round128(c)
    c_P = _round128(c_)
    m = n_ * h * w_

    # NCHW -> NHWC, lane-dense channel pad and MXU-dtype cast fused into one
    # materialized copy; the reshape to (M, C) is free.
    x = jnp.pad(jnp.transpose(x_nchw, (0, 2, 3, 1)),
                ((0, 0), (0, 0), (0, 0), (0, cP - c))).astype(_MXU_DTYPE)
    x2d = x.reshape(m, cP)

    # M tile for the 1x1-conv kernels: capped (VMEM / v7x) and forced to give
    # >= ~8 grid steps so both TensorCores get work under "parallel" sharding.
    tm = _largest_divisor(m, min(tm_cap, max(8, m // 8)), 8)
    # Row tile for the fused ResB kernel (halo overhead is 2/th extra rows).
    th = _largest_divisor(h, th_cap, 1)

    # cv1 & cv2 fused: one matmul over the shared input, two outputs.
    w1, b1 = _fold_pw_padded(params['cv1'], cP, c_P)
    w2, b2 = _fold_pw_padded(params['cv2'], cP, c_P)
    y1, y2 = dual_pw_conv(x2d, jnp.concatenate([w1, w2], axis=1), b1, b2, tm)

    cur = y2.reshape(n_, h, w_, c_P)
    for blk in params['m']:                                  # ResB chain
        c_res = blk['pc']['w'].shape[0]
        crP = _round128(c_res)
        wpc, bpc = _fold_pw_padded(blk['pc'], c_P, crP)
        w9, bcv = _fold_3x3_padded(blk['cv'], crP, c_P)
        cur = resb_fused(cur, wpc, bpc, w9, bcv, th)         # x + cv(pc(x))

    # cv3 -> concat([y3, y1]) -> cv4 fused into one kernel.
    w3, b3 = _fold_pw_padded(params['cv3'], c_P, c_P)
    scale4 = params['cv4']['gamma'] * jax.lax.rsqrt(params['cv4']['rvar'] + BN_EPS)
    bias4 = params['cv4']['beta'] - params['cv4']['rmean'] * scale4
    w4full = (params['cv4']['w'][:, :, 0, 0] * scale4[:, None]).T     # (2c_, c)
    w4a = _pad_to(_pad_to(w4full[:c_], 0, c_P), 1, cP).astype(_MXU_DTYPE)  # y3 half
    w4b = _pad_to(_pad_to(w4full[c_:], 0, c_P), 1, cP).astype(_MXU_DTYPE)  # y1 half
    b4 = _pad_to(bias4.reshape(1, -1), 1, cP)

    out2d = merge_pw_conv(cur.reshape(m, c_P), y1, w3, b3, w4a, w4b, b4, tm)
    out = out2d.reshape(n_, h, w_, cP)[:, :, :, :c].astype(jnp.float32)
    return jnp.transpose(out, (0, 3, 1, 2))                  # back to NCHW


# ---------------------------------------------------------------------------
# Pure-JAX f32 reference (for correctness check only)
# ---------------------------------------------------------------------------
def _mish_ref(x):
    return x * jnp.tanh(jax.nn.softplus(x))


def _ref_conv(p, x_nchw, k):
    pad = k // 2
    y = jax.lax.conv_general_dilated(
        x_nchw, p['w'], (1, 1), [(pad, pad), (pad, pad)],
        dimension_numbers=('NCHW', 'OIHW', 'NCHW'),
        precision=jax.lax.Precision.HIGHEST)
    scale = (p['gamma'] / jnp.sqrt(p['rvar'] + BN_EPS)).reshape(1, -1, 1, 1)
    bias = p['beta'].reshape(1, -1, 1, 1) - p['rmean'].reshape(1, -1, 1, 1) * scale
    return _mish_ref(y * scale + bias)


def csp_reference(params, x):
    y1 = _ref_conv(params['cv1'], x, 1)
    y2 = _ref_conv(params['cv2'], x, 1)
    cur = y2
    for blk in params['m']:
        cur = cur + _ref_conv(blk['cv'], _ref_conv(blk['pc'], cur, 1), 3)
    y3 = _ref_conv(params['cv3'], cur, 1)
    return _ref_conv(params['cv4'], jnp.concatenate([y3, y1], axis=1), 1)


if __name__ == "__main__":
    key = jax.random.PRNGKey(0)
    kx, kp = jax.random.split(key)
    c = 4
    x = jax.random.normal(kx, (2, c, 16, 16), jnp.float32)   # NCHW input
    params = init_csp_params(kp, c, n=1, path=False, e=0.5)

    # Small caps so the toy shapes still exercise multi-tile grids + row halos.
    fwd = jax.jit(lambda p, xx: csp_forward(p, xx, tm_cap=256, th_cap=8))
    out = jax.block_until_ready(fwd(params, x))

    ref = jax.block_until_ready(csp_reference(params, x))
    out_np = np.asarray(out, dtype=np.float32)
    ref_np = np.asarray(ref, dtype=np.float32)
    # bf16 MXU operands through a 6-conv chain: check the max error normalized
    # by the reference magnitude (catches any structural bug at O(1) error).
    err = np.max(np.abs(out_np - ref_np)) / (np.max(np.abs(ref_np)) + 1e-6)
    if not np.isfinite(err) or err > 3e-2:
        raise AssertionError(f"CSP Pallas kernel mismatch: normalized max error {err:.4g}")
    print("KERNEL_OK")
</pallas_src>

<mosaic_0001>
module attributes {stable_mosaic.version = 11 : i64} {
  func.func @_dual_pw_kernel(%arg0: i32, %arg1: memref<64x128xbf16, #tpu.memory_space<vmem>>, %arg2: memref<128x256xbf16, #tpu.memory_space<vmem>>, %arg3: memref<1x128xf32, #tpu.memory_space<vmem>>, %arg4: memref<1x128xf32, #tpu.memory_space<vmem>>, %arg5: memref<64x128xbf16, #tpu.memory_space<vmem>>, %arg6: memref<64x128xbf16, #tpu.memory_space<vmem>>) attributes {dimension_semantics = [#tpu.dimension_semantics<parallel>], iteration_bounds = array<i64: 8>, scalar_prefetch = 0 : i64, scratch_operands = 0 : i64, tpu.core_type = #tpu.core_type<tc>, window_params = [{transform_indices = @transform_0, window_bounds = array<i64: 64, 128>}, {pipeline_mode = #tpu.pipeline_mode<synchronous>, transform_indices = @transform_1, window_bounds = array<i64: 128, 256>}, {pipeline_mode = #tpu.pipeline_mode<synchronous>, transform_indices = @transform_2, window_bounds = array<i64: 1, 128>}, {pipeline_mode = #tpu.pipeline_mode<synchronous>, transform_indices = @transform_3, window_bounds = array<i64: 1, 128>}, {transform_indices = @transform_4, window_bounds = array<i64: 64, 128>}, {transform_indices = @transform_5, window_bounds = array<i64: 64, 128>}]} {
    %c0 = arith.constant 0 : index
    %c0_0 = arith.constant 0 : index
    %0 = vector.load %arg1[%c0, %c0_0] : memref<64x128xbf16, #tpu.memory_space<vmem>>, vector<64x128xbf16>
    %c0_1 = arith.constant 0 : index
    %c0_2 = arith.constant 0 : index
    %1 = vector.load %arg2[%c0_1, %c0_2] : memref<128x256xbf16, #tpu.memory_space<vmem>>, vector<128x256xbf16>
    %cst = arith.constant dense<0.000000e+00> : vector<64x256xf32>
    %2 = tpu.matmul %0, %1, %cst {dimension_numbers = #tpu.dot_dimension_numbers<[1], [0], [0], [1], [0, 0, 1, 1], [], []>} : vector<64x128xbf16>, vector<128x256xbf16>, vector<64x256xf32> -> vector<64x256xf32>
    %3 = vector.extract_strided_slice %2 {offsets = [0, 0], sizes = [64, 128], strides = [1, 1]} : vector<64x256xf32> to vector<64x128xf32>
    %c0_3 = arith.constant 0 : index
    %c0_4 = arith.constant 0 : index
    %4 = vector.load %arg3[%c0_3, %c0_4] : memref<1x128xf32, #tpu.memory_space<vmem>>, vector<1x128xf32>
    %5 = vector.broadcast %4 : vector<1x128xf32> to vector<64x128xf32>
    %6 = arith.addf %3, %5 : vector<64x128xf32>
    %cst_5 = arith.constant 2.000000e+01 : f32
    %7 = vector.broadcast %cst_5 : f32 to vector<64x128xf32>
    %8 = arith.minimumf %6, %7 : vector<64x128xf32>
    %9 = math.exp %8 : vector<64x128xf32>
    %cst_6 = arith.constant 2.000000e+00 : f32
    %10 = vector.broadcast %cst_6 : f32 to vector<64x128xf32>
    %11 = arith.addf %9, %10 : vector<64x128xf32>
    %12 = arith.mulf %9, %11 : vector<64x128xf32>
    %cst_7 = arith.constant 2.000000e+00 : f32
    %13 = vector.broadcast %cst_7 : f32 to vector<64x128xf32>
    %14 = arith.addf %12, %13 : vector<64x128xf32>
    %15 = tpu.reciprocal %14 {approx = true} : vector<64x128xf32> -> vector<64x128xf32>
    %16 = arith.mulf %12, %15 : vector<64x128xf32>
    %cst_8 = arith.constant 2.000000e+01 : f32
    %17 = vector.broadcast %cst_8 : f32 to vector<64x128xf32>
    %18 = arith.cmpf ogt, %6, %17 : vector<64x128xf32>
    %19 = arith.mulf %6, %16 : vector<64x128xf32>
    %20 = arith.select %18, %6, %19 : vector<64x128xi1>, vector<64x128xf32>
    %21 = arith.truncf %20 : vector<64x128xf32> to vector<64x128xbf16>
    %c0_9 = arith.constant 0 : index
    %c0_10 = arith.constant 0 : index
    %22 = vector.load %arg5[%c0_9, %c0_10] : memref<64x128xbf16, #tpu.memory_space<vmem>>, vector<64x128xbf16>
    tpu.vector_store %arg5[%c0_9, %c0_10], %21 {strides = array<i32>} : memref<64x128xbf16, #tpu.memory_space<vmem>>, vector<64x128xbf16>,
    %23 = vector.extract_strided_slice %2 {offsets = [0, 128], sizes = [64, 128], strides = [1, 1]} : vector<64x256xf32> to vector<64x128xf32>
    %c0_11 = arith.constant 0 : index
    %c0_12 = arith.constant 0 : index
    %24 = vector.load %arg4[%c0_11, %c0_12] : memref<1x128xf32, #tpu.memory_space<vmem>>, vector<1x128xf32>
    %25 = vector.broadcast %24 : vector<1x128xf32> to vector<64x128xf32>
    %26 = arith.addf %23, %25 : vector<64x128xf32>
    %cst_13 = arith.constant 2.000000e+01 : f32
    %27 = vector.broadcast %cst_13 : f32 to vector<64x128xf32>
    %28 = arith.minimumf %26, %27 : vector<64x128xf32>
    %29 = math.exp %28 : vector<64x128xf32>
    %cst_14 = arith.constant 2.000000e+00 : f32
    %30 = vector.broadcast %cst_14 : f32 to vector<64x128xf32>
    %31 = arith.addf %29, %30 : vector<64x128xf32>
    %32 = arith.mulf %29, %31 : vector<64x128xf32>
    %cst_15 = arith.constant 2.000000e+00 : f32
    %33 = vector.broadcast %cst_15 : f32 to vector<64x128xf32>
    %34 = arith.addf %32, %33 : vector<64x128xf32>
    %35 = tpu.reciprocal %34 {approx = true} : vector<64x128xf32> -> vector<64x128xf32>
    %36 = arith.mulf %32, %35 : vector<64x128xf32>
    %cst_16 = arith.constant 2.000000e+01 : f32
    %37 = vector.broadcast %cst_16 : f32 to vector<64x128xf32>
    %38 = arith.cmpf ogt, %26, %37 : vector<64x128xf32>
    %39 = arith.mulf %26, %36 : vector<64x128xf32>
    %40 = arith.select %38, %26, %39 : vector<64x128xi1>, vector<64x128xf32>
    %41 = arith.truncf %40 : vector<64x128xf32> to vector<64x128xbf16>
    %c0_17 = arith.constant 0 : index
    %c0_18 = arith.constant 0 : index
    %42 = vector.load %arg6[%c0_17, %c0_18] : memref<64x128xbf16, #tpu.memory_space<vmem>>, vector<64x128xbf16>
    tpu.vector_store %arg6[%c0_17, %c0_18], %41 {strides = array<i32>} : memref<64x128xbf16, #tpu.memory_space<vmem>>, vector<64x128xbf16>,
    return
  }
  func.func @transform_0(%arg0: i32) -> (i32, i32) {
    %c0_i32 = arith.constant 0 : i32
    %c0_i32_0 = arith.constant 0 : i32
    return %arg0, %c0_i32 : i32, i32
  }
  func.func @transform_1(%arg0: i32) -> (i32, i32) {
    %c0_i32 = arith.constant 0 : i32
    %c0_i32_0 = arith.constant 0 : i32
    %c0_i32_1 = arith.constant 0 : i32
    return %c0_i32, %c0_i32_0 : i32, i32
  }
  func.func @transform_2(%arg0: i32) -> (i32, i32) {
    %c0_i32 = arith.constant 0 : i32
    %c0_i32_0 = arith.constant 0 : i32
    %c0_i32_1 = arith.constant 0 : i32
    return %c0_i32, %c0_i32_0 : i32, i32
  }
  func.func @transform_3(%arg0: i32) -> (i32, i32) {
    %c0_i32 = arith.constant 0 : i32
    %c0_i32_0 = arith.constant 0 : i32
    %c0_i32_1 = arith.constant 0 : i32
    return %c0_i32, %c0_i32_0 : i32, i32
  }
  func.func @transform_4(%arg0: i32) -> (i32, i32) {
    %c0_i32 = arith.constant 0 : i32
    %c0_i32_0 = arith.constant 0 : i32
    return %arg0, %c0_i32 : i32, i32
  }
  func.func @transform_5(%arg0: i32) -> (i32, i32) {
    %c0_i32 = arith.constant 0 : i32
    %c0_i32_0 = arith.constant 0 : i32
    return %arg0, %c0_i32 : i32, i32
  }
}

module attributes {stable_mosaic.version = 11 : i64} {
  func.func @_resb_kernel(%arg0: i32, %arg1: i32, %arg2: memref<1x8x16x128xbf16, #tpu.memory_space<vmem>>, %arg3: memref<1x1x16x128xbf16, #tpu.memory_space<vmem>>, %arg4: memref<1x1x16x128xbf16, #tpu.memory_space<vmem>>, %arg5: memref<128x128xbf16, #tpu.memory_space<vmem>>, %arg6: memref<1x128xf32, #tpu.memory_space<vmem>>, %arg7: memref<9x128x128xbf16, #tpu.memory_space<vmem>>, %arg8: memref<1x128xf32, #tpu.memory_space<vmem>>, %arg9: memref<1x8x16x128xbf16, #tpu.memory_space<vmem>>, %arg10: memref<10x16x128xbf16, #tpu.memory_space<vmem>>) attributes {dimension_semantics = [#tpu.dimension_semantics<parallel>, #tpu.dimension_semantics<parallel>], iteration_bounds = array<i64: 2, 2>, scalar_prefetch = 0 : i64, scratch_operands = 1 : i64, tpu.core_type = #tpu.core_type<tc>, window_params = [{transform_indices = @transform_0, window_bounds = array<i64: 1, 8, 16, 128>}, {transform_indices = @transform_1, window_bounds = array<i64: 1, 1, 16, 128>}, {transform_indices = @transform_2, window_bounds = array<i64: 1, 1, 16, 128>}, {pipeline_mode = #tpu.pipeline_mode<synchronous>, transform_indices = @transform_3, window_bounds = array<i64: 128, 128>}, {pipeline_mode = #tpu.pipeline_mode<synchronous>, transform_indices = @transform_4, window_bounds = array<i64: 1, 128>}, {pipeline_mode = #tpu.pipeline_mode<synchronous>, transform_indices = @transform_5, window_bounds = array<i64: 9, 128, 128>}, {pipeline_mode = #tpu.pipeline_mode<synchronous>, transform_indices = @transform_6, window_bounds = array<i64: 1, 128>}, {transform_indices = @transform_7, window_bounds = array<i64: 1, 8, 16, 128>}]} {
    %c0_i32 = arith.constant 0 : i32
    %0 = arith.cmpi sgt, %arg1, %c0_i32 : i32
    %1 = arith.extui %0 : i1 to i32
    %2 = arith.sitofp %1 : i32 to f32
    %c1_i32 = arith.constant 1 : i32
    %3 = arith.cmpi slt, %arg1, %c1_i32 : i32
    %4 = arith.extui %3 : i1 to i32
    %5 = arith.sitofp %4 : i32 to f32
    %c0 = arith.constant 0 : index
    %c0_0 = arith.constant 0 : index
    %c0_1 = arith.constant 0 : index
    %c0_2 = arith.constant 0 : index
    %6 = vector.load %arg2[%c0, %c0_0, %c0_1, %c0_2] : memref<1x8x16x128xbf16, #tpu.memory_space<vmem>>, vector<1x8x16x128xbf16>
    %7 = vector.shape_cast %6 : vector<1x8x16x128xbf16> to vector<8x16x128xbf16>
    %8 = vector.shape_cast %7 : vector<8x16x128xbf16> to vector<128x128xbf16>
    %c0_3 = arith.constant 0 : index
    %c0_4 = arith.constant 0 : index
    %9 = vector.load %arg5[%c0_3, %c0_4] : memref<128x128xbf16, #tpu.memory_space<vmem>>, vector<128x128xbf16>
    %cst = arith.constant dense<0.000000e+00> : vector<128x128xf32>
    %10 = tpu.matmul %8, %9, %cst {dimension_numbers = #tpu.dot_dimension_numbers<[1], [0], [0], [1], [0, 0, 1, 1], [], []>} : vector<128x128xbf16>, vector<128x128xbf16>, vector<128x128xf32> -> vector<128x128xf32>
    %c0_5 = arith.constant 0 : index
    %c0_6 = arith.constant 0 : index
    %11 = vector.load %arg6[%c0_5, %c0_6] : memref<1x128xf32, #tpu.memory_space<vmem>>, vector<1x128xf32>
    %12 = vector.broadcast %11 : vector<1x128xf32> to vector<128x128xf32>
    %13 = arith.addf %10, %12 : vector<128x128xf32>
    %cst_7 = arith.constant 2.000000e+01 : f32
    %14 = vector.broadcast %cst_7 : f32 to vector<128x128xf32>
    %15 = arith.minimumf %13, %14 : vector<128x128xf32>
    %16 = math.exp %15 : vector<128x128xf32>
    %cst_8 = arith.constant 2.000000e+00 : f32
    %17 = vector.broadcast %cst_8 : f32 to vector<128x128xf32>
    %18 = arith.addf %16, %17 : vector<128x128xf32>
    %19 = arith.mulf %16, %18 : vector<128x128xf32>
    %cst_9 = arith.constant 2.000000e+00 : f32
    %20 = vector.broadcast %cst_9 : f32 to vector<128x128xf32>
    %21 = arith.addf %19, %20 : vector<128x128xf32>
    %22 = tpu.reciprocal %21 {approx = true} : vector<128x128xf32> -> vector<128x128xf32>
    %23 = arith.mulf %19, %22 : vector<128x128xf32>
    %cst_10 = arith.constant 2.000000e+01 : f32
    %24 = vector.broadcast %cst_10 : f32 to vector<128x128xf32>
    %25 = arith.cmpf ogt, %13, %24 : vector<128x128xf32>
    %26 = arith.mulf %13, %23 : vector<128x128xf32>
    %27 = arith.select %25, %13, %26 : vector<128x128xi1>, vector<128x128xf32>
    %28 = vector.shape_cast %27 : vector<128x128xf32> to vector<8x16x128xf32>
    %29 = arith.truncf %28 : vector<8x16x128xf32> to vector<8x16x128xbf16>
    %c1 = arith.constant 1 : index
    %c0_11 = arith.constant 0 : index
    %c0_12 = arith.constant 0 : index
    %30 = vector.load %arg10[%c1, %c0_11, %c0_12] : memref<10x16x128xbf16, #tpu.memory_space<vmem>>, vector<8x16x128xbf16>
    tpu.vector_store %arg10[%c1, %c0_11, %c0_12], %29 {strides = array<i32>} : memref<10x16x128xbf16, #tpu.memory_space<vmem>>, vector<8x16x128xbf16>,
    %c0_13 = arith.constant 0 : index
    %c0_14 = arith.constant 0 : index
    %c0_15 = arith.constant 0 : index
    %c0_16 = arith.constant 0 : index
    %31 = vector.load %arg3[%c0_13, %c0_14, %c0_15, %c0_16] : memref<1x1x16x128xbf16, #tpu.memory_space<vmem>>, vector<1x1x16x128xbf16>
    %32 = vector.shape_cast %31 : vector<1x1x16x128xbf16> to vector<1x16x128xbf16>
    %33 = vector.shape_cast %32 : vector<1x16x128xbf16> to vector<16x128xbf16>
    %c0_17 = arith.constant 0 : index
    %c0_18 = arith.constant 0 : index
    %34 = vector.load %arg5[%c0_17, %c0_18] : memref<128x128xbf16, #tpu.memory_space<vmem>>, vector<128x128xbf16>
    %cst_19 = arith.constant dense<0.000000e+00> : vector<16x128xf32>
    %35 = tpu.matmul %33, %34, %cst_19 {dimension_numbers = #tpu.dot_dimension_numbers<[1], [0], [0], [1], [0, 0, 1, 1], [], []>} : vector<16x128xbf16>, vector<128x128xbf16>, vector<16x128xf32> -> vector<16x128xf32>
    %c0_20 = arith.constant 0 : index
    %c0_21 = arith.constant 0 : index
    %36 = vector.load %arg6[%c0_20, %c0_21] : memref<1x128xf32, #tpu.memory_space<vmem>>, vector<1x128xf32>
    %37 = vector.broadcast %36 : vector<1x128xf32> to vector<16x128xf32>
    %38 = arith.addf %35, %37 : vector<16x128xf32>
    %cst_22 = arith.constant 2.000000e+01 : f32
    %39 = vector.broadcast %cst_22 : f32 to vector<16x128xf32>
    %40 = arith.minimumf %38, %39 : vector<16x128xf32>
    %41 = math.exp %40 : vector<16x128xf32>
    %cst_23 = arith.constant 2.000000e+00 : f32
    %42 = vector.broadcast %cst_23 : f32 to vector<16x128xf32>
    %43 = arith.addf %41, %42 : vector<16x128xf32>
    %44 = arith.mulf %41, %43 : vector<16x128xf32>
    %cst_24 = arith.constant 2.000000e+00 : f32
    %45 = vector.broadcast %cst_24 : f32 to vector<16x128xf32>
    %46 = arith.addf %44, %45 : vector<16x128xf32>
    %47 = tpu.reciprocal %46 {approx = true} : vector<16x128xf32> -> vector<16x128xf32>
    %48 = arith.mulf %44, %47 : vector<16x128xf32>
    %cst_25 = arith.constant 2.000000e+01 : f32
    %49 = vector.broadcast %cst_25 : f32 to vector<16x128xf32>
    %50 = arith.cmpf ogt, %38, %49 : vector<16x128xf32>
    %51 = arith.mulf %38, %48 : vector<16x128xf32>
    %52 = arith.select %50, %38, %51 : vector<16x128xi1>, vector<16x128xf32>
    %53 = vector.broadcast %2 : f32 to vector<16x128xf32>
    %54 = arith.mulf %52, %53 : vector<16x128xf32>
    %55 = vector.shape_cast %54 : vector<16x128xf32> to vector<1x16x128xf32>
    %56 = arith.truncf %55 : vector<1x16x128xf32> to vector<1x16x128xbf16>
    %c0_26 = arith.constant 0 : index
    %c0_27 = arith.constant 0 : index
    %c0_28 = arith.constant 0 : index
    %57 = vector.load %arg10[%c0_26, %c0_27, %c0_28] : memref<10x16x128xbf16, #tpu.memory_space<vmem>>, vector<1x16x128xbf16>
    tpu.vector_store %arg10[%c0_26, %c0_27, %c0_28], %56 {strides = array<i32>} : memref<10x16x128xbf16, #tpu.memory_space<vmem>>, vector<1x16x128xbf16>,
    %c0_29 = arith.constant 0 : index
    %c0_30 = arith.constant 0 : index
    %c0_31 = arith.constant 0 : index
    %c0_32 = arith.constant 0 : index
    %58 = vector.load %arg4[%c0_29, %c0_30, %c0_31, %c0_32] : memref<1x1x16x128xbf16, #tpu.memory_space<vmem>>, vector<1x1x16x128xbf16>
    %59 = vector.shape_cast %58 : vector<1x1x16x128xbf16> to vector<1x16x128xbf16>
    %60 = vector.shape_cast %59 : vector<1x16x128xbf16> to vector<16x128xbf16>
    %c0_33 = arith.constant 0 : index
    %c0_34 = arith.constant 0 : index
    %61 = vector.load %arg5[%c0_33, %c0_34] : memref<128x128xbf16, #tpu.memory_space<vmem>>, vector<128x128xbf16>
    %cst_35 = arith.constant dense<0.000000e+00> : vector<16x128xf32>
    %62 = tpu.matmul %60, %61, %cst_35 {dimension_numbers = #tpu.dot_dimension_numbers<[1], [0], [0], [1], [0, 0, 1, 1], [], []>} : vector<16x128xbf16>, vector<128x128xbf16>, vector<16x128xf32> -> vector<16x128xf32>
    %c0_36 = arith.constant 0 : index
    %c0_37 = arith.constant 0 : index
    %63 = vector.load %arg6[%c0_36, %c0_37] : memref<1x128xf32, #tpu.memory_space<vmem>>, vector<1x128xf32>
    %64 = vector.broadcast %63 : vector<1x128xf32> to vector<16x128xf32>
    %65 = arith.addf %62, %64 : vector<16x128xf32>
    %cst_38 = arith.constant 2.000000e+01 : f32
    %66 = vector.broadcast %cst_38 : f32 to vector<16x128xf32>
    %67 = arith.minimumf %65, %66 : vector<16x128xf32>
    %68 = math.exp %67 : vector<16x128xf32>
    %cst_39 = arith.constant 2.000000e+00 : f32
    %69 = vector.broadcast %cst_39 : f32 to vector<16x128xf32>
    %70 = arith.addf %68, %69 : vector<16x128xf32>
    %71 = arith.mulf %68, %70 : vector<16x128xf32>
    %cst_40 = arith.constant 2.000000e+00 : f32
    %72 = vector.broadcast %cst_40 : f32 to vector<16x128xf32>
    %73 = arith.addf %71, %72 : vector<16x128xf32>
    %74 = tpu.reciprocal %73 {approx = true} : vector<16x128xf32> -> vector<16x128xf32>
    %75 = arith.mulf %71, %74 : vector<16x128xf32>
    %cst_41 = arith.constant 2.000000e+01 : f32
    %76 = vector.broadcast %cst_41 : f32 to vector<16x128xf32>
    %77 = arith.cmpf ogt, %65, %76 : vector<16x128xf32>
    %78 = arith.mulf %65, %75 : vector<16x128xf32>
    %79 = arith.select %77, %65, %78 : vector<16x128xi1>, vector<16x128xf32>
    %80 = vector.broadcast %5 : f32 to vector<16x128xf32>
    %81 = arith.mulf %79, %80 : vector<16x128xf32>
    %82 = vector.shape_cast %81 : vector<16x128xf32> to vector<1x16x128xf32>
    %83 = arith.truncf %82 : vector<1x16x128xf32> to vector<1x16x128xbf16>
    %c9 = arith.constant 9 : index
    %c0_42 = arith.constant 0 : index
    %c0_43 = arith.constant 0 : index
    %84 = vector.load %arg10[%c9, %c0_42, %c0_43] : memref<10x16x128xbf16, #tpu.memory_space<vmem>>, vector<1x16x128xbf16>
    tpu.vector_store %arg10[%c9, %c0_42, %c0_43], %83 {strides = array<i32>} : memref<10x16x128xbf16, #tpu.memory_space<vmem>>, vector<1x16x128xbf16>,
    %c0_44 = arith.constant 0 : index
    %c0_45 = arith.constant 0 : index
    %c0_46 = arith.constant 0 : index
    %85 = vector.load %arg10[%c0_44, %c0_45, %c0_46] : memref<10x16x128xbf16, #tpu.memory_space<vmem>>, vector<8x16x128xbf16>
    %86 = vector.shape_cast %85 : vector<8x16x128xbf16> to vector<128x128xbf16>
    %c0_47 = arith.constant 0 : index
    %c0_48 = arith.constant 0 : index
    %c0_49 = arith.constant 0 : index
    %87 = vector.load %arg7[%c0_47, %c0_48, %c0_49] : memref<9x128x128xbf16, #tpu.memory_space<vmem>>, vector<1x128x128xbf16>
    %88 = vector.shape_cast %87 : vector<1x128x128xbf16> to vector<128x128xbf16>
    %cst_50 = arith.constant dense<0.000000e+00> : vector<128x128xf32>
    %89 = tpu.matmul %86, %88, %cst_50 {dimension_numbers = #tpu.dot_dimension_numbers<[1], [0], [0], [1], [0, 0, 1, 1], [], []>} : vector<128x128xbf16>, vector<128x128xbf16>, vector<128x128xf32> -> vector<128x128xf32>
    %c1_51 = arith.constant 1 : index
    %c0_52 = arith.constant 0 : index
    %c0_53 = arith.constant 0 : index
    %90 = vector.load %arg7[%c1_51, %c0_52, %c0_53] : memref<9x128x128xbf16, #tpu.memory_space<vmem>>, vector<1x128x128xbf16>
    %91 = vector.shape_cast %90 : vector<1x128x128xbf16> to vector<128x128xbf16>
    %cst_54 = arith.constant dense<0.000000e+00> : vector<128x128xf32>
    %92 = tpu.matmul %86, %91, %cst_54 {dimension_numbers = #tpu.dot_dimension_numbers<[1], [0], [0], [1], [0, 0, 1, 1], [], []>} : vector<128x128xbf16>, vector<128x128xbf16>, vector<128x128xf32> -> vector<128x128xf32>
    %c2 = arith.constant 2 : index
    %c0_55 = arith.constant 0 : index
    %c0_56 = arith.constant 0 : index
    %93 = vector.load %arg7[%c2, %c0_55, %c0_56] : memref<9x128x128xbf16, #tpu.memory_space<vmem>>, vector<1x128x128xbf16>
    %94 = vector.shape_cast %93 : vector<1x128x128xbf16> to vector<128x128xbf16>
    %cst_57 = arith.constant dense<0.000000e+00> : vector<128x128xf32>
    %95 = tpu.matmul %86, %94, %cst_57 {dimension_numbers = #tpu.dot_dimension_numbers<[1], [0], [0], [1], [0, 0, 1, 1], [], []>} : vector<128x128xbf16>, vector<128x128xbf16>, vector<128x128xf32> -> vector<128x128xf32>
    %c1_58 = arith.constant 1 : index
    %c0_59 = arith.constant 0 : index
    %c0_60 = arith.constant 0 : index
    %96 = vector.load %arg10[%c1_58, %c0_59, %c0_60] : memref<10x16x128xbf16, #tpu.memory_space<vmem>>, vector<8x16x128xbf16>
    %97 = vector.shape_cast %96 : vector<8x16x128xbf16> to vector<128x128xbf16>
    %c3 = arith.constant 3 : index
    %c0_61 = arith.constant 0 : index
    %c0_62 = arith.constant 0 : index
    %98 = vector.load %arg7[%c3, %c0_61, %c0_62] : memref<9x128x128xbf16, #tpu.memory_space<vmem>>, vector<1x128x128xbf16>
    %99 = vector.shape_cast %98 : vector<1x128x128xbf16> to vector<128x128xbf16>
    %cst_63 = arith.constant dense<0.000000e+00> : vector<128x128xf32>
    %100 = tpu.matmul %97, %99, %cst_63 {dimension_numbers = #tpu.dot_dimension_numbers<[1], [0], [0], [1], [0, 0, 1, 1], [], []>} : vector<128x128xbf16>, vector<128x128xbf16>, vector<128x128xf32> -> vector<128x128xf32>
    %c4 = arith.constant 4 : index
    %c0_64 = arith.constant 0 : index
    %c0_65 = arith.constant 0 : index
    %101 = vector.load %arg7[%c4, %c0_64, %c0_65] : memref<9x128x128xbf16, #tpu.memory_space<vmem>>, vector<1x128x128xbf16>
    %102 = vector.shape_cast %101 : vector<1x128x128xbf16> to vector<128x128xbf16>
    %cst_66 = arith.constant dense<0.000000e+00> : vector<128x128xf32>
    %103 = tpu.matmul %97, %102, %cst_66 {dimension_numbers = #tpu.dot_dimension_numbers<[1], [0], [0], [1], [0, 0, 1, 1], [], []>} : vector<128x128xbf16>, vector<128x128xbf16>, vector<128x128xf32> -> vector<128x128xf32>
    %c5 = arith.constant 5 : index
    %c0_67 = arith.constant 0 : index
    %c0_68 = arith.constant 0 : index
    %104 = vector.load %arg7[%c5, %c0_67, %c0_68] : memref<9x128x128xbf16, #tpu.memory_space<vmem>>, vector<1x128x128xbf16>
    %105 = vector.shape_cast %104 : vector<1x128x128xbf16> to vector<128x128xbf16>
    %cst_69 = arith.constant dense<0.000000e+00> : vector<128x128xf32>
    %106 = tpu.matmul %97, %105, %cst_69 {dimension_numbers = #tpu.dot_dimension_numbers<[1], [0], [0], [1], [0, 0, 1, 1], [], []>} : vector<128x128xbf16>, vector<128x128xbf16>, vector<128x128xf32> -> vector<128x128xf32>
    %107 = arith.addf %89, %100 : vector<128x128xf32>
    %108 = arith.addf %92, %103 : vector<128x128xf32>
    %109 = arith.addf %95, %106 : vector<128x128xf32>
    %c2_70 = arith.constant 2 : index
    %c0_71 = arith.constant 0 : index
    %c0_72 = arith.constant 0 : index
    %110 = vector.load %arg10[%c2_70, %c0_71, %c0_72] : memref<10x16x128xbf16, #tpu.memory_space<vmem>>, vector<8x16x128xbf16>
    %111 = vector.shape_cast %110 : vector<8x16x128xbf16> to vector<128x128xbf16>
    %c6 = arith.constant 6 : index
    %c0_73 = arith.constant 0 : index
    %c0_74 = arith.constant 0 : index
    %112 = vector.load %arg7[%c6, %c0_73, %c0_74] : memref<9x128x128xbf16, #tpu.memory_space<vmem>>, vector<1x128x128xbf16>
    %113 = vector.shape_cast %112 : vector<1x128x128xbf16> to vector<128x128xbf16>
    %cst_75 = arith.constant dense<0.000000e+00> : vector<128x128xf32>
    %114 = tpu.matmul %111, %113, %cst_75 {dimension_numbers = #tpu.dot_dimension_numbers<[1], [0], [0], [1], [0, 0, 1, 1], [], []>} : vector<128x128xbf16>, vector<128x128xbf16>, vector<128x128xf32> -> vector<128x128xf32>
    %c7 = arith.constant 7 : index
    %c0_76 = arith.constant 0 : index
    %c0_77 = arith.constant 0 : index
    %115 = vector.load %arg7[%c7, %c0_76, %c0_77] : memref<9x128x128xbf16, #tpu.memory_space<vmem>>, vector<1x128x128xbf16>
    %116 = vector.shape_cast %115 : vector<1x128x128xbf16> to vector<128x128xbf16>
    %cst_78 = arith.constant dense<0.000000e+00> : vector<128x128xf32>
    %117 = tpu.matmul %111, %116, %cst_78 {dimension_numbers = #tpu.dot_dimension_numbers<[1], [0], [0], [1], [0, 0, 1, 1], [], []>} : vector<128x128xbf16>, vector<128x128xbf16>, vector<128x128xf32> -> vector<128x128xf32>
    %c8 = arith.constant 8 : index
    %c0_79 = arith.constant 0 : index
    %c0_80 = arith.constant 0 : index
    %118 = vector.load %arg7[%c8, %c0_79, %c0_80] : memref<9x128x128xbf16, #tpu.memory_space<vmem>>, vector<1x128x128xbf16>
    %119 = vector.shape_cast %118 : vector<1x128x128xbf16> to vector<128x128xbf16>
    %cst_81 = arith.constant dense<0.000000e+00> : vector<128x128xf32>
    %120 = tpu.matmul %111, %119, %cst_81 {dimension_numbers = #tpu.dot_dimension_numbers<[1], [0], [0], [1], [0, 0, 1, 1], [], []>} : vector<128x128xbf16>, vector<128x128xbf16>, vector<128x128xf32> -> vector<128x128xf32>
    %121 = arith.addf %107, %114 : vector<128x128xf32>
    %122 = arith.addf %108, %117 : vector<128x128xf32>
    %123 = arith.addf %109, %120 : vector<128x128xf32>
    %124 = tpu.iota {dimensions = array<i32: 0>} : vector<128x1xi32>
    %c16_i32 = arith.constant 16 : i32
    %c0_i32_82 = arith.constant 0 : i32
    %125 = arith.cmpi eq, %c16_i32, %c0_i32_82 : i32
    %c1_i32_83 = arith.constant 1 : i32
    %126 = arith.select %125, %c1_i32_83, %c16_i32 : i32
    %127 = vector.broadcast %126 : i32 to vector<128x1xi32>
    %128 = arith.remsi %124, %127 : vector<128x1xi32>
    %c0_i32_84 = arith.constant 0 : i32
    %129 = vector.broadcast %c0_i32_84 : i32 to vector<128x1xi32>
    %130 = arith.cmpi ne, %128, %129 : vector<128x1xi32>
    %c0_i32_85 = arith.constant 0 : i32
    %131 = vector.broadcast %c0_i32_85 : i32 to vector<128x1xi32>
    %132 = arith.cmpi slt, %128, %131 : vector<128x1xi32>
    %c0_i32_86 = arith.constant 0 : i32
    %133 = arith.cmpi slt, %126, %c0_i32_86 : i32
    %134 = vector.broadcast %133 : i1 to vector<128x1xi1>
    %135 = vector.broadcast %134 : vector<128x1xi1> to vector<128x1xi1>
    %136 = arith.xori %132, %135 : vector<128x1xi1>
    %137 = arith.andi %136, %130 : vector<128x1xi1>
    %138 = vector.broadcast %126 : i32 to vector<128x1xi32>
    %139 = arith.addi %128, %138 : vector<128x1xi32>
    %140 = arith.select %137, %139, %128 : vector<128x1xi1>, vector<128x1xi32>
    %c0_i32_87 = arith.constant 0 : i32
    %141 = vector.broadcast %c0_i32_87 : i32 to vector<128x1xi32>
    %142 = arith.cmpi ne, %140, %141 : vector<128x1xi32>
    %c15_i32 = arith.constant 15 : i32
    %143 = vector.broadcast %c15_i32 : i32 to vector<128x1xi32>
    %144 = arith.cmpi ne, %140, %143 : vector<128x1xi32>
    %c1_i32_88 = arith.constant 1 : i32
    %145 = tpu.dynamic_rotate %121 by %c1_i32_88 dim 0 : vector<128x128xf32>, i32 -> vector<128x128xf32>
    %cst_89 = arith.constant 0.000000e+00 : f32
    %146 = vector.shape_cast %142 : vector<128x1xi1> to vector<128x1xi1>
    %147 = vector.broadcast %146 : vector<128x1xi1> to vector<128x128xi1>
    %148 = vector.broadcast %cst_89 : f32 to vector<128x128xf32>
    %149 = arith.select %147, %145, %148 : vector<128x128xi1>, vector<128x128xf32>
    %150 = arith.addf %122, %149 : vector<128x128xf32>
    %c127_i32 = arith.constant 127 : i32
    %151 = tpu.dynamic_rotate %123 by %c127_i32 dim 0 : vector<128x128xf32>, i32 -> vector<128x128xf32>
    %cst_90 = arith.constant 0.000000e+00 : f32
    %152 = vector.shape_cast %144 : vector<128x1xi1> to vector<128x1xi1>
    %153 = vector.broadcast %152 : vector<128x1xi1> to vector<128x128xi1>
    %154 = vector.broadcast %cst_90 : f32 to vector<128x128xf32>
    %155 = arith.select %153, %151, %154 : vector<128x128xi1>, vector<128x128xf32>
    %156 = arith.addf %150, %155 : vector<128x128xf32>
    %c0_91 = arith.constant 0 : index
    %c0_92 = arith.constant 0 : index
    %157 = vector.load %arg8[%c0_91, %c0_92] : memref<1x128xf32, #tpu.memory_space<vmem>>, vector<1x128xf32>
    %158 = vector.broadcast %157 : vector<1x128xf32> to vector<128x128xf32>
    %159 = arith.addf %156, %158 : vector<128x128xf32>
    %160 = arith.extf %7 : vector<8x16x128xbf16> to vector<8x16x128xf32>
    %161 = vector.shape_cast %160 : vector<8x16x128xf32> to vector<128x128xf32>
    %cst_93 = arith.constant 2.000000e+01 : f32
    %162 = vector.broadcast %cst_93 : f32 to vector<128x128xf32>
    %163 = arith.minimumf %159, %162 : vector<128x128xf32>
    %164 = math.exp %163 : vector<128x128xf32>
    %cst_94 = arith.constant 2.000000e+00 : f32
    %165 = vector.broadcast %cst_94 : f32 to vector<128x128xf32>
    %166 = arith.addf %164, %165 : vector<128x128xf32>
    %167 = arith.mulf %164, %166 : vector<128x128xf32>
    %cst_95 = arith.constant 2.000000e+00 : f32
    %168 = vector.broadcast %cst_95 : f32 to vector<128x128xf32>
    %169 = arith.addf %167, %168 : vector<128x128xf32>
    %170 = tpu.reciprocal %169 {approx = true} : vector<128x128xf32> -> vector<128x128xf32>
    %171 = arith.mulf %167, %170 : vector<128x128xf32>
    %cst_96 = arith.constant 2.000000e+01 : f32
    %172 = vector.broadcast %cst_96 : f32 to vector<128x128xf32>
    %173 = arith.cmpf ogt, %159, %172 : vector<128x128xf32>
    %174 = arith.mulf %159, %171 : vector<128x128xf32>
    %175 = arith.select %173, %159, %174 : vector<128x128xi1>, vector<128x128xf32>
    %176 = arith.addf %161, %175 : vector<128x128xf32>
    %177 = vector.shape_cast %176 : vector<128x128xf32> to vector<8x16x128xf32>
    %178 = arith.truncf %177 : vector<8x16x128xf32> to vector<8x16x128xbf16>
    %c0_97 = arith.constant 0 : index
    %c0_98 = arith.constant 0 : index
    %c0_99 = arith.constant 0 : index
    %c0_100 = arith.constant 0 : index
    %179 = vector.load %arg9[%c0_97, %c0_98, %c0_99, %c0_100] : memref<1x8x16x128xbf16, #tpu.memory_space<vmem>>, vector<1x8x16x128xbf16>
    %180 = vector.shape_cast %179 : vector<1x8x16x128xbf16> to vector<8x16x128xbf16>
    %181 = vector.shape_cast %178 : vector<8x16x128xbf16> to vector<1x8x16x128xbf16>
    tpu.vector_store %arg9[%c0_97, %c0_98, %c0_99, %c0_100], %181 {strides = array<i32>} : memref<1x8x16x128xbf16, #tpu.memory_space<vmem>>, vector<1x8x16x128xbf16>,
    return
  }
  func.func @transform_0(%arg0: i32, %arg1: i32) -> (i32, i32, i32, i32) {
    %c0_i32 = arith.constant 0 : i32
    %c0_i32_0 = arith.constant 0 : i32
    %c0_i32_1 = arith.constant 0 : i32
    return %arg0, %arg1, %c0_i32, %c0_i32_0 : i32, i32, i32, i32
  }
  func.func @transform_1(%arg0: i32, %arg1: i32) -> (i32, i32, i32, i32) {
    %c8_i32 = arith.constant 8 : i32
    %0 = arith.muli %arg1, %c8_i32 : i32
    %c1_i32 = arith.constant 1 : i32
    %1 = arith.subi %0, %c1_i32 : i32
    %c0_i32 = arith.constant 0 : i32
    %2 = arith.maxsi %1, %c0_i32 : i32
    %c0_i32_0 = arith.constant 0 : i32
    %c0_i32_1 = arith.constant 0 : i32
    %c0_i32_2 = arith.constant 0 : i32
    return %arg0, %2, %c0_i32_0, %c0_i32_1 : i32, i32, i32, i32
  }
  func.func @transform_2(%arg0: i32, %arg1: i32) -> (i32, i32, i32, i32) {
    %c8_i32 = arith.constant 8 : i32
    %0 = arith.muli %arg1, %c8_i32 : i32
    %c8_i32_0 = arith.constant 8 : i32
    %1 = arith.addi %0, %c8_i32_0 : i32
    %c15_i32 = arith.constant 15 : i32
    %2 = arith.minsi %1, %c15_i32 : i32
    %c0_i32 = arith.constant 0 : i32
    %c0_i32_1 = arith.constant 0 : i32
    %c0_i32_2 = arith.constant 0 : i32
    return %arg0, %2, %c0_i32, %c0_i32_1 : i32, i32, i32, i32
  }
  func.func @transform_3(%arg0: i32, %arg1: i32) -> (i32, i32) {
    %c0_i32 = arith.constant 0 : i32
    %c0_i32_0 = arith.constant 0 : i32
    %c0_i32_1 = arith.constant 0 : i32
    return %c0_i32, %c0_i32_0 : i32, i32
  }
  func.func @transform_4(%arg0: i32, %arg1: i32) -> (i32, i32) {
    %c0_i32 = arith.constant 0 : i32
    %c0_i32_0 = arith.constant 0 : i32
    %c0_i32_1 = arith.constant 0 : i32
    return %c0_i32, %c0_i32_0 : i32, i32
  }
  func.func @transform_5(%arg0: i32, %arg1: i32) -> (i32, i32, i32) {
    %c0_i32 = arith.constant 0 : i32
    %c0_i32_0 = arith.constant 0 : i32
    %c0_i32_1 = arith.constant 0 : i32
    %c0_i32_2 = arith.constant 0 : i32
    return %c0_i32, %c0_i32_0, %c0_i32_1 : i32, i32, i32
  }
  func.func @transform_6(%arg0: i32, %arg1: i32) -> (i32, i32) {
    %c0_i32 = arith.constant 0 : i32
    %c0_i32_0 = arith.constant 0 : i32
    %c0_i32_1 = arith.constant 0 : i32
    return %c0_i32, %c0_i32_0 : i32, i32
  }
  func.func @transform_7(%arg0: i32, %arg1: i32) -> (i32, i32, i32, i32) {
    %c0_i32 = arith.constant 0 : i32
    %c0_i32_0 = arith.constant 0 : i32
    %c0_i32_1 = arith.constant 0 : i32
    return %arg0, %arg1, %c0_i32, %c0_i32_0 : i32, i32, i32, i32
  }
}

module attributes {stable_mosaic.version = 11 : i64} {
  func.func @_merge_pw_kernel(%arg0: i32, %arg1: memref<64x128xbf16, #tpu.memory_space<vmem>>, %arg2: memref<64x128xbf16, #tpu.memory_space<vmem>>, %arg3: memref<128x128xbf16, #tpu.memory_space<vmem>>, %arg4: memref<1x128xf32, #tpu.memory_space<vmem>>, %arg5: memref<128x128xbf16, #tpu.memory_space<vmem>>, %arg6: memref<128x128xbf16, #tpu.memory_space<vmem>>, %arg7: memref<1x128xf32, #tpu.memory_space<vmem>>, %arg8: memref<64x128xbf16, #tpu.memory_space<vmem>>) attributes {dimension_semantics = [#tpu.dimension_semantics<parallel>], iteration_bounds = array<i64: 8>, scalar_prefetch = 0 : i64, scratch_operands = 0 : i64, tpu.core_type = #tpu.core_type<tc>, window_params = [{transform_indices = @transform_0, window_bounds = array<i64: 64, 128>}, {transform_indices = @transform_1, window_bounds = array<i64: 64, 128>}, {pipeline_mode = #tpu.pipeline_mode<synchronous>, transform_indices = @transform_2, window_bounds = array<i64: 128, 128>}, {pipeline_mode = #tpu.pipeline_mode<synchronous>, transform_indices = @transform_3, window_bounds = array<i64: 1, 128>}, {pipeline_mode = #tpu.pipeline_mode<synchronous>, transform_indices = @transform_4, window_bounds = array<i64: 128, 128>}, {pipeline_mode = #tpu.pipeline_mode<synchronous>, transform_indices = @transform_5, window_bounds = array<i64: 128, 128>}, {pipeline_mode = #tpu.pipeline_mode<synchronous>, transform_indices = @transform_6, window_bounds = array<i64: 1, 128>}, {transform_indices = @transform_7, window_bounds = array<i64: 64, 128>}]} {
    %c0 = arith.constant 0 : index
    %c0_0 = arith.constant 0 : index
    %0 = vector.load %arg1[%c0, %c0_0] : memref<64x128xbf16, #tpu.memory_space<vmem>>, vector<64x128xbf16>
    %c0_1 = arith.constant 0 : index
    %c0_2 = arith.constant 0 : index
    %1 = vector.load %arg3[%c0_1, %c0_2] : memref<128x128xbf16, #tpu.memory_space<vmem>>, vector<128x128xbf16>
    %cst = arith.constant dense<0.000000e+00> : vector<64x128xf32>
    %2 = tpu.matmul %0, %1, %cst {dimension_numbers = #tpu.dot_dimension_numbers<[1], [0], [0], [1], [0, 0, 1, 1], [], []>} : vector<64x128xbf16>, vector<128x128xbf16>, vector<64x128xf32> -> vector<64x128xf32>
    %c0_3 = arith.constant 0 : index
    %c0_4 = arith.constant 0 : index
    %3 = vector.load %arg4[%c0_3, %c0_4] : memref<1x128xf32, #tpu.memory_space<vmem>>, vector<1x128xf32>
    %4 = vector.broadcast %3 : vector<1x128xf32> to vector<64x128xf32>
    %5 = arith.addf %2, %4 : vector<64x128xf32>
    %cst_5 = arith.constant 2.000000e+01 : f32
    %6 = vector.broadcast %cst_5 : f32 to vector<64x128xf32>
    %7 = arith.minimumf %5, %6 : vector<64x128xf32>
    %8 = math.exp %7 : vector<64x128xf32>
    %cst_6 = arith.constant 2.000000e+00 : f32
    %9 = vector.broadcast %cst_6 : f32 to vector<64x128xf32>
    %10 = arith.addf %8, %9 : vector<64x128xf32>
    %11 = arith.mulf %8, %10 : vector<64x128xf32>
    %cst_7 = arith.constant 2.000000e+00 : f32
    %12 = vector.broadcast %cst_7 : f32 to vector<64x128xf32>
    %13 = arith.addf %11, %12 : vector<64x128xf32>
    %14 = tpu.reciprocal %13 {approx = true} : vector<64x128xf32> -> vector<64x128xf32>
    %15 = arith.mulf %11, %14 : vector<64x128xf32>
    %cst_8 = arith.constant 2.000000e+01 : f32
    %16 = vector.broadcast %cst_8 : f32 to vector<64x128xf32>
    %17 = arith.cmpf ogt, %5, %16 : vector<64x128xf32>
    %18 = arith.mulf %5, %15 : vector<64x128xf32>
    %19 = arith.select %17, %5, %18 : vector<64x128xi1>, vector<64x128xf32>
    %20 = arith.truncf %19 : vector<64x128xf32> to vector<64x128xbf16>
    %c0_9 = arith.constant 0 : index
    %c0_10 = arith.constant 0 : index
    %21 = vector.load %arg5[%c0_9, %c0_10] : memref<128x128xbf16, #tpu.memory_space<vmem>>, vector<128x128xbf16>
    %cst_11 = arith.constant dense<0.000000e+00> : vector<64x128xf32>
    %22 = tpu.matmul %20, %21, %cst_11 {dimension_numbers = #tpu.dot_dimension_numbers<[1], [0], [0], [1], [0, 0, 1, 1], [], []>} : vector<64x128xbf16>, vector<128x128xbf16>, vector<64x128xf32> -> vector<64x128xf32>
    %c0_12 = arith.constant 0 : index
    %c0_13 = arith.constant 0 : index
    %23 = vector.load %arg2[%c0_12, %c0_13] : memref<64x128xbf16, #tpu.memory_space<vmem>>, vector<64x128xbf16>
    %c0_14 = arith.constant 0 : index
    %c0_15 = arith.constant 0 : index
    %24 = vector.load %arg6[%c0_14, %c0_15] : memref<128x128xbf16, #tpu.memory_space<vmem>>, vector<128x128xbf16>
    %cst_16 = arith.constant dense<0.000000e+00> : vector<64x128xf32>
    %25 = tpu.matmul %23, %24, %cst_16 {dimension_numbers = #tpu.dot_dimension_numbers<[1], [0], [0], [1], [0, 0, 1, 1], [], []>} : vector<64x128xbf16>, vector<128x128xbf16>, vector<64x128xf32> -> vector<64x128xf32>
    %26 = arith.addf %22, %25 : vector<64x128xf32>
    %c0_17 = arith.constant 0 : index
    %c0_18 = arith.constant 0 : index
    %27 = vector.load %arg7[%c0_17, %c0_18] : memref<1x128xf32, #tpu.memory_space<vmem>>, vector<1x128xf32>
    %28 = vector.broadcast %27 : vector<1x128xf32> to vector<64x128xf32>
    %29 = arith.addf %26, %28 : vector<64x128xf32>
    %cst_19 = arith.constant 2.000000e+01 : f32
    %30 = vector.broadcast %cst_19 : f32 to vector<64x128xf32>
    %31 = arith.minimumf %29, %30 : vector<64x128xf32>
    %32 = math.exp %31 : vector<64x128xf32>
    %cst_20 = arith.constant 2.000000e+00 : f32
    %33 = vector.broadcast %cst_20 : f32 to vector<64x128xf32>
    %34 = arith.addf %32, %33 : vector<64x128xf32>
    %35 = arith.mulf %32, %34 : vector<64x128xf32>
    %cst_21 = arith.constant 2.000000e+00 : f32
    %36 = vector.broadcast %cst_21 : f32 to vector<64x128xf32>
    %37 = arith.addf %35, %36 : vector<64x128xf32>
    %38 = tpu.reciprocal %37 {approx = true} : vector<64x128xf32> -> vector<64x128xf32>
    %39 = arith.mulf %35, %38 : vector<64x128xf32>
    %cst_22 = arith.constant 2.000000e+01 : f32
    %40 = vector.broadcast %cst_22 : f32 to vector<64x128xf32>
    %41 = arith.cmpf ogt, %29, %40 : vector<64x128xf32>
    %42 = arith.mulf %29, %39 : vector<64x128xf32>
    %43 = arith.select %41, %29, %42 : vector<64x128xi1>, vector<64x128xf32>
    %44 = arith.truncf %43 : vector<64x128xf32> to vector<64x128xbf16>
    %c0_23 = arith.constant 0 : index
    %c0_24 = arith.constant 0 : index
    %45 = vector.load %arg8[%c0_23, %c0_24] : memref<64x128xbf16, #tpu.memory_space<vmem>>, vector<64x128xbf16>
    tpu.vector_store %arg8[%c0_23, %c0_24], %44 {strides = array<i32>} : memref<64x128xbf16, #tpu.memory_space<vmem>>, vector<64x128xbf16>,
    return
  }
  func.func @transform_0(%arg0: i32) -> (i32, i32) {
    %c0_i32 = arith.constant 0 : i32
    %c0_i32_0 = arith.constant 0 : i32
    return %arg0, %c0_i32 : i32, i32
  }
  func.func @transform_1(%arg0: i32) -> (i32, i32) {
    %c0_i32 = arith.constant 0 : i32
    %c0_i32_0 = arith.constant 0 : i32
    return %arg0, %c0_i32 : i32, i32
  }
  func.func @transform_2(%arg0: i32) -> (i32, i32) {
    %c0_i32 = arith.constant 0 : i32
    %c0_i32_0 = arith.constant 0 : i32
    %c0_i32_1 = arith.constant 0 : i32
    return %c0_i32, %c0_i32_0 : i32, i32
  }
  func.func @transform_3(%arg0: i32) -> (i32, i32) {
    %c0_i32 = arith.constant 0 : i32
    %c0_i32_0 = arith.constant 0 : i32
    %c0_i32_1 = arith.constant 0 : i32
    return %c0_i32, %c0_i32_0 : i32, i32
  }
  func.func @transform_4(%arg0: i32) -> (i32, i32) {
    %c0_i32 = arith.constant 0 : i32
    %c0_i32_0 = arith.constant 0 : i32
    %c0_i32_1 = arith.constant 0 : i32
    return %c0_i32, %c0_i32_0 : i32, i32
  }
  func.func @transform_5(%arg0: i32) -> (i32, i32) {
    %c0_i32 = arith.constant 0 : i32
    %c0_i32_0 = arith.constant 0 : i32
    %c0_i32_1 = arith.constant 0 : i32
    return %c0_i32, %c0_i32_0 : i32, i32
  }
  func.func @transform_6(%arg0: i32) -> (i32, i32) {
    %c0_i32 = arith.constant 0 : i32
    %c0_i32_0 = arith.constant 0 : i32
    %c0_i32_1 = arith.constant 0 : i32
    return %c0_i32, %c0_i32_0 : i32, i32
  }
  func.func @transform_7(%arg0: i32) -> (i32, i32) {
    %c0_i32 = arith.constant 0 : i32
    %c0_i32_0 = arith.constant 0 : i32
    return %arg0, %c0_i32 : i32, i32
  }
}

</mosaic_0001>

<bundles_post_ra>
// kernel: _lambda_.3
= control target key start
LH: loop header
LB: loop body
LE: loop exit
PB: predicated region body
PF: predicated region fallthrough
CT: control target
= control target key end

     0   :  { %s1037_s18 = smov 0   ;;  %s1316_s0 = inlined_call_operand.vmem [shape: bf16[512,128], index: 0, kind: input, shape index: {}]   ;;  %s1317_s1 = inlined_call_operand.vmem [shape: bf16[128,256], index: 1, kind: input, shape index: {}]   ;;  %s1318_s2 = inlined_call_operand.vmem [shape: f32[1,128], index: 2, kind: input, shape index: {}]   ;;  %s1319_s3 = inlined_call_operand.vmem [shape: f32[1,128], index: 3, kind: input, shape index: {}]   ;;  %s1320_s4 = inlined_call_operand.vmem [shape: bf16[512,128], index: 4, kind: output, shape index: {0}]   ;;  %s1321_s5 = inlined_call_operand.vmem [shape: bf16[512,128], index: 5, kind: output, shape index: {1}]  }
   0x1 LB: > { %s750_s19 = sadd.s32 4294967295, %s1005_s18   ;;  %p754_p0 = scmp.ge.s32.totalorder %s1005_s18, 1  ;;  %s1005_s18 = sphi %s1037_s18, %s16_s18  }
   0x2   : > { %p191_p1 = scmp.lt.s32.totalorder %s1005_s18, 9 }
   0x4   : > { %p192_p2 = pnand %p754_p0, %p191_p1 }
   0x5   : > { %s755_s12 = sshll.u32 (!%p192_p2), %s750_s19, 3 }
   0x6   : > { %195 = sbr.rel (%p192_p2) target bundleno = 243 (0xf3), region = 36  ;;  %p225_p3 = scmp.lt.s32.totalorder (!%p192_p2), %s755_s12, 63 }
   0xb   : > { %v835_v0 = vld [vmem:[%s1317_s1 + $0x70] sm:$0xf]  ;;  %v862_v1 = vld [vmem:[%s1317_s1 + $0x74] sm:$0xf0]  ;;  %v861_v2 = vld [vmem:[%s1317_s1 + $0x74] sm:$0xf] }
   0xc   : > { %v836_v3 = vor.u32 %v862_v1, %v835_v0  ;;  %v837_v4 = vld [vmem:[%s1317_s1 + $0x78] sm:$0xf0]  ;;  %v827_v5 = vld [vmem:[%s1317_s1 + $0x60] sm:$0xf]  ;;  %v860_v6 = vld [vmem:[%s1317_s1 + $0x64] sm:$0xf0] }
   0xd   : > { %v840_v7 = vor.u32 %v861_v2, %v837_v4  ;;  %v859_v8 = vld [vmem:[%s1317_s1 + $0x64] sm:$0xf]  ;;  %v829_v9 = vld [vmem:[%s1317_s1 + $0x68] sm:$0xf0]  ;;  %v828_v10 = vor.u32 %v860_v6, %v827_v5  ;;  %v819_v12 = vld [vmem:[%s1317_s1 + $0x50] sm:$0xf] }
   0xe   : > { %370 = vmatpush.bf16.msra.mxu0 %v836_v3  ;;  %909 = vmatpush.bf16.msra.mxu2 %v836_v3  ;;  %v832_v11 = vor.u32 %v859_v8, %v829_v9  ;;  %v858_v13 = vld [vmem:[%s1317_s1 + $0x54] sm:$0xf0]  ;;  %v857_v14 = vld [vmem:[%s1317_s1 + $0x54] sm:$0xf]  ;;  %v821_v15 = vld [vmem:[%s1317_s1 + $0x58] sm:$0xf0] }
   0xf   : > { %399 = vmatpush.bf16.msra.mxu1 %v840_v7  ;;  %917 = vmatpush.bf16.msra.mxu3 %v840_v7  ;;  %v820_v16 = vor.u32 %v858_v13, %v819_v12  ;;  %v824_v17 = vor.u32 %v857_v14, %v821_v15  ;;  %v811_v18 = vld [vmem:[%s1317_s1 + $0x40] sm:$0xf]  ;;  %v856_v19 = vld [vmem:[%s1317_s1 + $0x44] sm:$0xf0]  ;;  %v855_v20 = vld [vmem:[%s1317_s1 + $0x44] sm:$0xf] }
  0x10   : > { %v813_v21 = vld [vmem:[%s1317_s1 + $0x48] sm:$0xf0]  ;;  %v812_v22 = vor.u32 %v856_v19, %v811_v18  ;;  %v803_v24 = vld [vmem:[%s1317_s1 + $0x30] sm:$0xf]  ;;  %v854_v25 = vld [vmem:[%s1317_s1 + $0x34] sm:$0xf0] }
  0x11   : > { %v816_v23 = vor.u32 %v855_v20, %v813_v21  ;;  %v853_v26 = vld [vmem:[%s1317_s1 + $0x34] sm:$0xf]  ;;  %v805_v27 = vld [vmem:[%s1317_s1 + $0x38] sm:$0xf0]  ;;  %v804_v28 = vor.u32 %v854_v25, %v803_v24  ;;  %v795_v30 = vld [vmem:[%s1317_s1 + $0x20] sm:$0xf] }
  0x12   : > { %371 = vmatpush.bf16.msra.mxu0 %v828_v10  ;;  %910 = vmatpush.bf16.msra.mxu2 %v828_v10  ;;  %v808_v29 = vor.u32 %v853_v26, %v805_v27  ;;  %v852_v31 = vld [vmem:[%s1317_s1 + $0x24] sm:$0xf0]  ;;  %v851_v32 = vld [vmem:[%s1317_s1 + $0x24] sm:$0xf]  ;;  %v797_v33 = vld [vmem:[%s1317_s1 + $0x28] sm:$0xf0] }
  0x13   : > { %400 = vmatpush.bf16.msra.mxu1 %v832_v11  ;;  %918 = vmatpush.bf16.msra.mxu3 %v832_v11  ;;  %v796_v34 = vor.u32 %v852_v31, %v795_v30  ;;  %v800_v35 = vor.u32 %v851_v32, %v797_v33  ;;  %v787_v36 = vld [vmem:[%s1317_s1 + $0x10] sm:$0xf]  ;;  %v850_v37 = vld [vmem:[%s1317_s1 + $0x14] sm:$0xf0]  ;;  %s1323_s12 = smov (!%p225_p3, %s755_s12), 63 }
  0x14   : > { %v849_v38 = vld [vmem:[%s1317_s1 + $0x14] sm:$0xf]  ;;  %v789_v39 = vld [vmem:[%s1317_s1 + $0x18] sm:$0xf0]  ;;  %v788_v40 = vor.u32 %v850_v37, %v787_v36  ;;  %v779_v42 = vld [vmem:[%s1317_s1] sm:$0xf] }
  0x15   : > { %v792_v41 = vor.u32 %v849_v38, %v789_v39  ;;  %v848_v43 = vld [vmem:[%s1317_s1 + $0x4] sm:$0xf0]  ;;  %s1137_s9 = sshll.u32 %s1323_s12, 2  ;;  %v847_v44 = vld [vmem:[%s1317_s1 + $0x4] sm:$0xf] }
  0x16   : > { %372 = vmatpush.bf16.msra.mxu0 %v820_v16  ;;  %911 = vmatpush.bf16.msra.mxu2 %v820_v16  ;;  %v781_v45 = vld [vmem:[%s1317_s1 + $0x8] sm:$0xf0]  ;;  %v780_v46 = vor.u32 %v848_v43, %v779_v42  ;;  %s228_s17 = scalar_lea.vmem %s1316_s0, %s1137_s9  ;;  %v1152_v52 = vld [vmem:[%s1318_s2] ss:$0 sm:$0xff]  ;;  %s1237_s24 = scalar_lea.vmem %s1320_s4, %s1137_s9 }
  0x17   : > { %401 = vmatpush.bf16.msra.mxu1 %v824_v17  ;;  %919 = vmatpush.bf16.msra.mxu3 %v824_v17  ;;  %v784_v47 = vor.u32 %v847_v44, %v781_v45  ;;  %v843_v48 = vld [vmem:[%s228_s17] sm:$0xff]  ;;  %v845_v49 = vld [vmem:[%s228_s17 + $0x10] sm:$0xff]  ;;  %v844_v50 = vld [vmem:[%s228_s17 + $0x8] sm:$0xff]  ;;  %s1248_s27 = scalar_lea.vmem %s1321_s5, %s1137_s9 }
  0x18   : > { %v846_v51 = vld [vmem:[%s228_s17 + $0x18] sm:$0xff]  ;;  %v1157_v53 = vld [vmem:[%s1319_s3] ss:$0 sm:$0xff] }
  0x1a   : > { %373 = vmatpush.bf16.msra.mxu0 %v812_v22  ;;  %912 = vmatpush.bf16.msra.mxu2 %v812_v22 }
  0x1b   : > { %402 = vmatpush.bf16.msra.mxu1 %v816_v23  ;;  %920 = vmatpush.bf16.msra.mxu3 %v816_v23 }
  0x1e   : > { %374 = vmatpush.bf16.msra.mxu0 %v804_v28  ;;  %913 = vmatpush.bf16.msra.mxu2 %v804_v28 }
  0x1f   : > { %403 = vmatpush.bf16.msra.mxu1 %v808_v29  ;;  %921 = vmatpush.bf16.msra.mxu3 %v808_v29 }
  0x22   : > { %375 = vmatpush.bf16.msra.mxu0 %v796_v34  ;;  %914 = vmatpush.bf16.msra.mxu2 %v796_v34 }
  0x23   : > { %404 = vmatpush.bf16.msra.mxu1 %v800_v35  ;;  %922 = vmatpush.bf16.msra.mxu3 %v800_v35 }
  0x26   : > { %376 = vmatpush.bf16.msra.mxu0 %v788_v40  ;;  %915 = vmatpush.bf16.msra.mxu2 %v788_v40 }
  0x27   : > { %405 = vmatpush.bf16.msra.mxu1 %v792_v41  ;;  %923 = vmatpush.bf16.msra.mxu3 %v792_v41 }
  0x2a   : > { %377 = vmatpush.bf16.msra.mxu0 %v780_v46  ;;  %916 = vmatpush.bf16.msra.mxu2 %v780_v46 }
  0x2b   : > { %406 = vmatpush.bf16.msra.mxu1 %v784_v47  ;;  %924 = vmatpush.bf16.msra.mxu3 %v784_v47 }
  0x2d   : > { %378 = vmatmul.bf16.vlgmr.msra.gmra.mxu0 %v843_v48  ;;  %388 = vmatmul.bf16.vlgmr.msra.gmra.mxu2 %v845_v49 }
  0x2e   : > { %407 = vmatmul.bf16.vlgmr.msra.gmra.mxu1 %v843_v48  ;;  %417 = vmatmul.bf16.vlgmr.msra.gmra.mxu3 %v845_v49 }
  0x3d   : > { %383 = vmatmul.bf16.gmra.mxu0 %v844_v50  ;;  %393 = vmatmul.bf16.gmra.mxu2 %v846_v51 }
  0x3e   : > { %412 = vmatmul.bf16.gmra.mxu1 %v844_v50  ;;  %422 = vmatmul.bf16.gmra.mxu3 %v846_v51 }
  0xaa   : > { %v379_v54 = vpop.f32.mrf.mxu0 }
  0xab   : > { %v1160_v55 = vadd.f32 %v1152_v52, %v379_v54  ;;  %v408_v56 = vpop.f32.mrf.mxu1 }
  0xac   : > { %v1163_v57 = vadd.f32 %v1157_v53, %v408_v56 }
  0xad   : > { %v440_v58 = vmin.f32 %v1160_v55, 20.0  ;;  %vm504_vm0 = vcmp.gt.f32.partialorder %v1160_v55, 20.0 }
  0xae   : > { %v556_v59 = vmin.f32 %v1163_v57, 20.0  ;;  %vm620_vm1 = vcmp.gt.f32.partialorder %v1163_v57, 20.0 }
  0xaf   : > { %v448_v60 = vmul.f32 1.442695, %v440_v58 }
  0xb0   : > { %v564_v61 = vmul.f32 1.442695, %v556_v59  ;;  %v389_v62 = vpop.f32.mrf.mxu2 }
  0xb1   : > { %935 = vpow2.f32 %v448_v60  ;;  %v1168_v63 = vadd.f32 %v1152_v52, %v389_v62  ;;  %v418_v0 = vpop.f32.mrf.mxu3 }
  0xb2   : > { %937 = vpow2.f32 %v564_v61  ;;  %v1171_v1 = vadd.f32 %v1157_v53, %v418_v0  ;;  %v381_v2 = vpop.f32.mrf.mxu0 }
  0xb3   : > { %v444_v3 = vmin.f32 %v1168_v63, 20.0  ;;  %v1175_v4 = vadd.f32 %v1152_v52, %v381_v2  ;;  %v410_v5 = vpop.f32.mrf.mxu1  ;;  %vm508_vm2 = vcmp.gt.f32.partialorder %v1168_v63, 20.0 }
  0xb4   : > { %v560_v6 = vmin.f32 %v1171_v1, 20.0  ;;  %v1179_v7 = vadd.f32 %v1157_v53, %v410_v5  ;;  %vm624_vm3 = vcmp.gt.f32.partialorder %v1171_v1, 20.0 }
  0xb5   : > { %v456_v8 = vmul.f32 1.442695, %v444_v3  ;;  %v441_v9 = vmin.f32 %v1175_v4, 20.0  ;;  %vm505_vm4 = vcmp.gt.f32.partialorder %v1175_v4, 20.0 }
  0xb6   : > { %v572_v10 = vmul.f32 1.442695, %v560_v6  ;;  %v557_v11 = vmin.f32 %v1179_v7, 20.0  ;;  %vm621_vm5 = vcmp.gt.f32.partialorder %v1179_v7, 20.0 }
  0xb7   : > { %v936_v12 = vpop.eup %935  ;;  %939 = vpow2.f32 %v456_v8  ;;  %v450_v13 = vmul.f32 1.442695, %v441_v9 }
  0xb8   : > { %v938_v14 = vpop.eup %937  ;;  %v464_v15 = vadd.f32 2.0, %v936_v12  ;;  %941 = vpow2.f32 %v572_v10  ;;  %v566_v16 = vmul.f32 1.442695, %v557_v11  ;;  %v391_v17 = vpop.f32.mrf.mxu2 }
  0xb9   : > { %v580_v18 = vadd.f32 2.0, %v938_v14  ;;  %943 = vpow2.f32 %v450_v13  ;;  %v1184_v19 = vadd.f32 %v1152_v52, %v391_v17  ;;  %v420_v20 = vpop.f32.mrf.mxu3 }
  0xba   : > { %v472_v21 = vmul.f32 %v936_v12, %v464_v15  ;;  %945 = vpow2.f32 %v566_v16  ;;  %v1187_v22 = vadd.f32 %v1157_v53, %v420_v20  ;;  %v384_v23 = vpop.f32.mrf.mxu0 }
  0xbb   : > { %v588_v24 = vmul.f32 %v938_v14, %v580_v18  ;;  %v445_v25 = vmin.f32 %v1184_v19, 20.0  ;;  %v1191_v26 = vadd.f32 %v1152_v52, %v384_v23  ;;  %v413_v27 = vpop.f32.mrf.mxu1  ;;  %vm509_vm6 = vcmp.gt.f32.partialorder %v1184_v19, 20.0 }
  0xbc   : > { %v480_v28 = vadd.f32 2.0, %v472_v21  ;;  %v561_v29 = vmin.f32 %v1187_v22, 20.0  ;;  %v1195_v30 = vadd.f32 %v1157_v53, %v413_v27  ;;  %vm625_vm7 = vcmp.gt.f32.partialorder %v1187_v22, 20.0 }
  0xbd   : > { %v940_v31 = vpop.eup %939  ;;  %v596_v32 = vadd.f32 2.0, %v588_v24  ;;  %v458_v33 = vmul.f32 1.442695, %v445_v25  ;;  %v442_v34 = vmin.f32 %v1191_v26, 20.0  ;;  %vm506_vm8 = vcmp.gt.f32.partialorder %v1191_v26, 20.0 }
  0xbe   : > { %v942_v35 = vpop.eup %941  ;;  %947 = vrcp.f32 %v480_v28  ;;  %v468_v36 = vadd.f32 2.0, %v940_v31  ;;  %v574_v37 = vmul.f32 1.442695, %v561_v29  ;;  %v558_v38 = vmin.f32 %v1195_v30, 20.0 }
  0xbf   : > { %v944_v39 = vpop.eup %943  ;;  %949 = vrcp.f32 %v596_v32  ;;  %v584_v40 = vadd.f32 2.0, %v942_v35  ;;  %v452_v41 = vmul.f32 1.442695, %v442_v34  ;;  %vm622_vm10 = vcmp.gt.f32.partialorder %v1195_v30, 20.0 }
  0xc0   : > { %v946_v42 = vpop.eup %945  ;;  %v476_v43 = vmul.f32 %v940_v31, %v468_v36  ;;  %v465_v44 = vadd.f32 2.0, %v944_v39  ;;  %951 = vpow2.f32 %v458_v33  ;;  %v568_v45 = vmul.f32 1.442695, %v558_v38  ;;  %v394_v46 = vpop.f32.mrf.mxu2 }
  0xc1   : > { %v592_v47 = vmul.f32 %v942_v35, %v584_v40  ;;  %v581_v48 = vadd.f32 2.0, %v946_v42  ;;  %953 = vpow2.f32 %v574_v37  ;;  %v1200_v49 = vadd.f32 %v1152_v52, %v394_v46  ;;  %v423_v50 = vpop.f32.mrf.mxu3 }
  0xc2   : > { %v484_v51 = vadd.f32 2.0, %v476_v43  ;;  %v473_v54 = vmul.f32 %v944_v39, %v465_v44  ;;  %955 = vpow2.f32 %v452_v41  ;;  %v1203_v56 = vadd.f32 %v1157_v53, %v423_v50  ;;  %v386_v2 = vpop.f32.mrf.mxu0 }
  0xc3   : > { %v600_v58 = vadd.f32 2.0, %v592_v47  ;;  %v589_v59 = vmul.f32 %v946_v42, %v581_v48  ;;  %957 = vpow2.f32 %v568_v45  ;;  %v446_v60 = vmin.f32 %v1200_v49, 20.0  ;;  %v415_v20 = vpop.f32.mrf.mxu1 }
  0xc4   : > { %v948_v61 = vpop.eup %947  ;;  %959 = vrcp.f32 %v484_v51  ;;  %v481_v62 = vadd.f32 2.0, %v473_v54  ;;  %v562_v0 = vmin.f32 %v1203_v56, 20.0  ;;  %v1208_v12 = vadd.f32 %v1152_v52, %v386_v2 }
  0xc5   : > { %v950_v3 = vpop.eup %949  ;;  %961 = vrcp.f32 %v600_v58  ;;  %v597_v5 = vadd.f32 2.0, %v589_v59  ;;  %v496_v8 = vmul.f32 %v948_v61, %v472_v21  ;;  %v460_v11 = vmul.f32 1.442695, %v446_v60 }
  0xc6   : > { %v952_v6 = vpop.eup %951  ;;  %963 = vrcp.f32 %v481_v62  ;;  %v612_v14 = vmul.f32 %v950_v3, %v588_v24  ;;  %v576_v16 = vmul.f32 1.442695, %v562_v0  ;;  %v443_v27 = vmin.f32 %v1208_v12, 20.0 }
  0xc7   : > { %v954_v9 = vpop.eup %953  ;;  %965 = vrcp.f32 %v597_v5  ;;  %v469_v10 = vadd.f32 2.0, %v952_v6  ;;  %v512_v29 = vmul.f32 %v496_v8, %v1160_v55  ;;  %v1216_v34 = vadd.f32 %v1157_v53, %v415_v20 }
  0xc8   : > { %v956_v13 = vpop.eup %955  ;;  %v585_v15 = vadd.f32 2.0, %v954_v9  ;;  %967 = vpow2.f32 %v460_v11  ;;  %v628_v32 = vmul.f32 %v612_v14, %v1163_v57  ;;  %v454_v38 = vmul.f32 1.442695, %v443_v27 }
  0xc9   : > { %v958_v17 = vpop.eup %957  ;;  %v477_v18 = vmul.f32 %v952_v6, %v469_v10  ;;  %v466_v21 = vadd.f32 2.0, %v956_v13  ;;  %969 = vpow2.f32 %v576_v16  ;;  %v520_v45 = vsel %vm504_vm0, %v1160_v55, %v512_v29 }
  0xca   : > { %v960_v23 = vpop.eup %959  ;;  %v593_v25 = vmul.f32 %v954_v9, %v585_v15  ;;  %v582_v37 = vadd.f32 2.0, %v958_v17  ;;  %v559_v55 = vmin.f32 %v1216_v34, 20.0  ;;  %vm507_vm9 = vcmp.gt.f32.partialorder %v1208_v12, 20.0 }
  0xcb   : > { %v962_v28 = vpop.eup %961  ;;  %v485_v31 = vadd.f32 2.0, %v477_v18  ;;  %v500_v39 = vmul.f32 %v960_v23, %v476_v43  ;;  %v1220_v41 = vmul.f32 %v956_v13, %v466_v21  ;;  %v636_v43 = vsel %vm620_vm1, %v1163_v57, %v628_v32  ;;  %v425_v57 = vpop.f32.mrf.mxu3 }
  0xcc   : > { %v964_v24 = vpop.eup %963  ;;  %v601_v33 = vadd.f32 2.0, %v593_v25  ;;  %v616_v42 = vmul.f32 %v962_v28, %v592_v47  ;;  %v396_v47 = vpop.f32.mrf.mxu2  ;;  %v1240_v51 = vmul.f32 %v958_v17, %v582_v37  ;;  %v570_v2 = vmul.f32 1.442695, %v559_v55 }
  0xcd   : > { %v966_v35 = vpop.eup %965  ;;  %v497_v36 = vmul.f32 %v964_v24, %v473_v54  ;;  %971 = vrcp.f32 %v485_v31  ;;  %v516_v58 = vmul.f32 %v500_v39, %v1168_v63  ;;  %v482_v60 = vadd.f32 2.0, %v1220_v41 }
  0xce   : > { %v613_v40 = vmul.f32 %v966_v35, %v589_v59  ;;  %973 = vrcp.f32 %v601_v33  ;;  %v968_v48 = vpop.eup %967  ;;  %v632_v62 = vmul.f32 %v616_v42, %v1171_v1  ;;  %v1256_v3 = vadd.f32 %v1152_v52, %v396_v47 }
  0xcf   : > { %v513_v44 = vmul.f32 %v497_v36, %v1175_v4  ;;  %975 = vpow2.f32 %v454_v38  ;;  %v970_v54 = vpop.eup %969  ;;  %v470_v8 = vadd.f32 2.0, %v968_v48  ;;  %v1261_v9 = vadd.f32 %v1157_v53, %v425_v57 }
  0xd0   : > { %v629_v46 = vmul.f32 %v613_v40, %v1179_v7  ;;  %v598_v10 = vadd.f32 2.0, %v1240_v51  ;;  %v586_v11 = vadd.f32 2.0, %v970_v54  ;;  %v447_v13 = vmin.f32 %v1256_v3, 20.0 }
  0xd1   : > { %v521_v50 = vsel %vm505_vm4, %v1175_v4, %v513_v44  ;;  %v524_v52 = vsel %vm508_vm2, %v1168_v63, %v516_v58  ;;  %977 = vrcp.f32 %v482_v60  ;;  %v563_v15 = vmin.f32 %v1261_v9, 20.0 }
  0xd2   : > { %v866_v59 = vpack.c.bf16 %v521_v50, %v520_v45  ;;  %v637_v4 = vsel %vm621_vm5, %v1179_v7, %v629_v46  ;;  %v640_v53 = vsel %vm624_vm3, %v1171_v1, %v632_v62  ;;  %979 = vpow2.f32 %v570_v2 }
  0xd3   : > { %v972_v61 = vpop.eup %971  ;;  %v886_v0 = vpack.c.bf16 %v637_v4, %v636_v43  ;;  %v478_v20 = vmul.f32 %v968_v48, %v470_v8  ;;  %v594_v28 = vmul.f32 %v970_v54, %v586_v11  ;;  %vm623_vm11 = vcmp.gt.f32.partialorder %v1216_v34, 20.0 }
  0xd4   : > { %v974_v5 = vpop.eup %973  ;;  %867 = vst [vmem:[%s1237_s24] sm:$0xff] %v866_v59   ;;  %v501_v6 = vmul.f32 %v972_v61, %v477_v18  ;;  %v462_v18 = vmul.f32 1.442695, %v447_v13  ;;  %vm510_vm12 = vcmp.gt.f32.partialorder %v1200_v49, 20.0  ;;  %vm511_vm13 = vcmp.gt.f32.partialorder %v1256_v3, 20.0 }
  0xd5   : > { %887 = vst [vmem:[%s1248_s27] sm:$0xff] %v886_v0   ;;  %v617_v7 = vmul.f32 %v974_v5, %v593_v25  ;;  %v976_v16 = vpop.eup %975  ;;  %v578_v25 = vmul.f32 1.442695, %v563_v15  ;;  %v486_v24 = vadd.f32 2.0, %v478_v20  ;;  %vm626_vm14 = vcmp.gt.f32.partialorder %v1203_v56, 20.0 }
  0xd6   : > { %v517_v14 = vmul.f32 %v501_v6, %v1184_v19  ;;  %v467_v23 = vadd.f32 2.0, %v976_v16  ;;  %981 = vpow2.f32 %v462_v18  ;;  %vm627_vm15 = vcmp.gt.f32.partialorder %v1261_v9, 20.0 }
  0xd7   : > { %v633_v17 = vmul.f32 %v617_v7, %v1187_v22  ;;  %983 = vpow2.f32 %v578_v25  ;;  %v978_v31 = vpop.eup %977 }
  0xd8   : > { %v525_v63 = vsel %vm509_vm6, %v1184_v19, %v517_v14  ;;  %v475_v29 = vmul.f32 %v976_v16, %v467_v23  ;;  %v980_v33 = vpop.eup %979  ;;  %985 = vrcp.f32 %v598_v10  ;;  %v602_v19 = vadd.f32 2.0, %v594_v28 }
  0xd9   : > { %v876_v21 = vpack.c.bf16 %v525_v63, %v524_v52  ;;  %v641_v27 = vsel %vm625_vm7, %v1187_v22, %v633_v17  ;;  %v583_v35 = vadd.f32 2.0, %v980_v33  ;;  %v498_v39 = vmul.f32 %v978_v31, %v1220_v41 }
  0xda   : > { %v896_v1 = vpack.c.bf16 %v641_v27, %v640_v53  ;;  %v483_v32 = vadd.f32 2.0, %v475_v29 }
  0xdb   : > { %904 = vst [vmem:[%s1237_s24 + $0x10] sm:$0xff] %v876_v21   ;;  %v591_v38 = vmul.f32 %v980_v33, %v583_v35  ;;  %v514_v48 = vmul.f32 %v498_v39, %v1191_v26 }
  0xdc   : > { %907 = vst [vmem:[%s1248_s27 + $0x10] sm:$0xff] %v896_v1   ;;  %987 = vrcp.f32 %v483_v32  ;;  %v982_v36 = vpop.eup %981 }
  0xdd   : > { %v984_v37 = vpop.eup %983  ;;  %989 = vrcp.f32 %v486_v24  ;;  %v471_v22 = vadd.f32 2.0, %v982_v36  ;;  %v599_v42 = vadd.f32 2.0, %v591_v38  ;;  %v522_v59 = vsel %vm506_vm8, %v1191_v26, %v514_v48 }
  0xde   : > { %991 = vrcp.f32 %v602_v19  ;;  %v587_v40 = vadd.f32 2.0, %v984_v37  ;;  %v986_v45 = vpop.eup %985 }
  0xdf   : > { %v479_v44 = vmul.f32 %v982_v36, %v471_v22  ;;  %993 = vrcp.f32 %v599_v42  ;;  %v614_v58 = vmul.f32 %v986_v45, %v1240_v51 }
  0xe0   : > { %v595_v43 = vmul.f32 %v984_v37, %v587_v40 }
  0xe1   : > { %v487_v47 = vadd.f32 2.0, %v479_v44  ;;  %v630_v2 = vmul.f32 %v614_v58, %v1195_v30 }
  0xe2   : > { %v988_v46 = vpop.eup %987  ;;  %v603_v55 = vadd.f32 2.0, %v595_v43 }
  0xe3   : > { %v499_v50 = vmul.f32 %v988_v46, %v475_v29  ;;  %v990_v57 = vpop.eup %989  ;;  %995 = vrcp.f32 %v487_v47  ;;  %v638_v11 = vsel %vm622_vm10, %v1195_v30, %v630_v2 }
  0xe4   : > { %v992_v54 = vpop.eup %991  ;;  %997 = vrcp.f32 %v603_v55  ;;  %v502_v4 = vmul.f32 %v990_v57, %v478_v20 }
  0xe5   : > { %v515_v41 = vmul.f32 %v499_v50, %v1208_v12  ;;  %v994_v61 = vpop.eup %993  ;;  %v618_v62 = vmul.f32 %v992_v54, %v594_v28 }
  0xe6   : > { %v615_v5 = vmul.f32 %v994_v61, %v591_v38  ;;  %v518_v8 = vmul.f32 %v502_v4, %v1200_v49 }
  0xe7   : > { %v523_v60 = vsel %vm507_vm9, %v1208_v12, %v515_v41  ;;  %v634_v26 = vmul.f32 %v618_v62, %v1203_v56 }
  0xe8   : > { %v871_v0 = vpack.c.bf16 %v523_v60, %v522_v59  ;;  %v631_v7 = vmul.f32 %v615_v5, %v1216_v34  ;;  %v526_v16 = vsel %vm510_vm12, %v1200_v49, %v518_v8 }
  0xe9   : > { %v996_v6 = vpop.eup %995  ;;  %v642_v30 = vsel %vm626_vm14, %v1203_v56, %v634_v26 }
  0xea   : > { %903 = vst [vmem:[%s1237_s24 + $0x8] sm:$0xff] %v871_v0   ;;  %v998_v51 = vpop.eup %997  ;;  %v503_v10 = vmul.f32 %v996_v6, %v479_v44  ;;  %v639_v13 = vsel %vm623_vm11, %v1216_v34, %v631_v7 }
  0xeb   : > { %v619_v12 = vmul.f32 %v998_v51, %v595_v43  ;;  %v891_v14 = vpack.c.bf16 %v639_v13, %v638_v11 }
  0xec   : > { %v519_v52 = vmul.f32 %v503_v10, %v1256_v3 }
  0xed   : > { %v635_v15 = vmul.f32 %v619_v12, %v1261_v9  ;;  %906 = vst [vmem:[%s1248_s27 + $0x8] sm:$0xff] %v891_v14  }
  0xee   : > { %v527_v53 = vsel %vm511_vm13, %v1256_v3, %v519_v52 }
  0xef   : > { %v881_v34 = vpack.c.bf16 %v527_v53, %v526_v16  ;;  %v643_v17 = vsel %vm627_vm15, %v1261_v9, %v635_v15 }
  0xf0   : > { %v901_v18 = vpack.c.bf16 %v643_v17, %v642_v30 }
  0xf1   : > { %905 = vst [vmem:[%s1237_s24 + $0x18] sm:$0xff] %v881_v34  }
  0xf2   : > { %908 = vst [vmem:[%s1248_s27 + $0x18] sm:$0xff] %v901_v18  }
  0xf3 PF: > { %s16_s18 = sadd.s32 1, %s1005_s18  }
  0xf4   : > { %p13_p4 = scmp.ge.s32.totalorder %s16_s18, 10  }
  0xf6   :  { %15 = sbr.rel (!%p13_p4) target bundleno = 1 (0x1), region = 78 }

// kernel: _lambda_.5
= control target key start
LH: loop header
LB: loop body
LE: loop exit
PB: predicated region body
PF: predicated region fallthrough
CT: control target
= control target key end

     0   :  { %s1253_s24 = smov 0   ;;  %s1442_s0 = inlined_call_operand.vmem [shape: bf16[512,128], index: 0, kind: input, shape index: {}]   ;;  %s1443_s1 = inlined_call_operand.vmem [shape: bf16[512,128], index: 1, kind: input, shape index: {}]   ;;  %s1444_s2 = inlined_call_operand.vmem [shape: bf16[128,128], index: 2, kind: input, shape index: {}]   ;;  %s1445_s3 = inlined_call_operand.vmem [shape: f32[1,128], index: 3, kind: input, shape index: {}]   ;;  %s1446_s4 = inlined_call_operand.vmem [shape: bf16[128,128], index: 4, kind: input, shape index: {}]   ;;  %s1447_s5 = inlined_call_operand.vmem [shape: bf16[128,128], index: 5, kind: input, shape index: {}]   ;;  %s1448_s6 = inlined_call_operand.vmem [shape: f32[1,128], index: 6, kind: input, shape index: {}]   ;;  %s1449_s7 = inlined_call_operand.vmem [shape: bf16[512,128], index: 7, kind: output, shape index: {}]  }
   0x1 LB: > { %s927_s25 = sadd.s32 4294967295, %s1211_s24   ;;  %p931_p0 = scmp.ge.s32.totalorder %s1211_s24, 1  ;;  %s1211_s24 = sphi %s1253_s24, %s17_s24  }
   0x2   : > { %p249_p1 = scmp.lt.s32.totalorder %s1211_s24, 9 }
   0x4   : > { %p250_p2 = pnand %p931_p0, %p249_p1 }
   0x5   : > { %s932_s11 = sshll.u32 (!%p250_p2), %s927_s25, 3 }
   0x6   : > { %253 = sbr.rel (%p250_p2) target bundleno = 434 (0x1b2), region = 48  ;;  %p287_p3 = scmp.lt.s32.totalorder (!%p250_p2), %s932_s11, 63 }
   0xb   : > { %v1079_v0 = vld [vmem:[%s1444_s2 + $0x38] sm:$0xff]  ;;  %v1078_v1 = vld [vmem:[%s1444_s2 + $0x30] sm:$0xff]  ;;  %v1077_v2 = vld [vmem:[%s1444_s2 + $0x28] sm:$0xff]  ;;  %s1451_s11 = smov (!%p287_p3, %s932_s11), 63 }
   0xc   : > { %404 = vmatpush.bf16.msra.mxu0 %v1079_v0  ;;  %1123 = vmatpush.bf16.msra.mxu3 %v1079_v0  ;;  %v1076_v3 = vld [vmem:[%s1444_s2 + $0x20] sm:$0xff]  ;;  %v1075_v4 = vld [vmem:[%s1444_s2 + $0x18] sm:$0xff]  ;;  %v1074_v5 = vld [vmem:[%s1444_s2 + $0x10] sm:$0xff]  ;;  %s1282_s18 = sshll.u32 %s1451_s11, 2 }
   0xd   : > { %v1073_v6 = vld [vmem:[%s1444_s2 + $0x8] sm:$0xff]  ;;  %v1072_v7 = vld [vmem:[%s1444_s2] sm:$0xff]  ;;  %s290_s23 = scalar_lea.vmem %s1442_s0, %s1282_s18  ;;  %v1099_v12 = vld [vmem:[%s1447_s5 + $0x38] sm:$0xff]  ;;  %s1349_s15 = scalar_lea.vmem %s1443_s1, %s1282_s18 }
   0xe   : > { %v1068_v8 = vld [vmem:[%s290_s23] sm:$0xff]  ;;  %v1069_v9 = vld [vmem:[%s290_s23 + $0x8] sm:$0xff]  ;;  %v1070_v10 = vld [vmem:[%s290_s23 + $0x10] sm:$0xff]  ;;  %637 = vmatpush.bf16.msra.mxu1 %v1099_v12 }
   0xf   : > { %v1071_v11 = vld [vmem:[%s290_s23 + $0x18] sm:$0xff]  ;;  %v1098_v14 = vld [vmem:[%s1447_s5 + $0x30] sm:$0xff]  ;;  %v1097_v16 = vld [vmem:[%s1447_s5 + $0x28] sm:$0xff]  ;;  %s1421_s23 = scalar_lea.vmem %s1449_s7, %s1282_s18 }
  0x10   : > { %405 = vmatpush.bf16.msra.mxu0 %v1078_v1  ;;  %1124 = vmatpush.bf16.msra.mxu3 %v1078_v1  ;;  %v1087_v13 = vld [vmem:[%s1446_s4 + $0x38] sm:$0xff]  ;;  %v1086_v15 = vld [vmem:[%s1446_s4 + $0x30] sm:$0xff]  ;;  %v1085_v17 = vld [vmem:[%s1446_s4 + $0x28] sm:$0xff] }
  0x11   : > { %714 = vmatpush.bf16.msra.mxu2 %v1087_v13  ;;  %v1096_v18 = vld [vmem:[%s1447_s5 + $0x20] sm:$0xff]  ;;  %v1095_v20 = vld [vmem:[%s1447_s5 + $0x18] sm:$0xff]  ;;  %v1094_v22 = vld [vmem:[%s1447_s5 + $0x10] sm:$0xff] }
  0x12   : > { %638 = vmatpush.bf16.msra.mxu1 %v1098_v14  ;;  %v1084_v19 = vld [vmem:[%s1446_s4 + $0x20] sm:$0xff]  ;;  %v1083_v21 = vld [vmem:[%s1446_s4 + $0x18] sm:$0xff]  ;;  %v1082_v24 = vld [vmem:[%s1446_s4 + $0x10] sm:$0xff] }
  0x13   : > { %v1327_v23 = vld [vmem:[%s1445_s3] ss:$0 sm:$0xff]  ;;  %v1093_v25 = vld [vmem:[%s1447_s5 + $0x8] sm:$0xff]  ;;  %v1090_v12 = vld [vmem:[%s1349_s15 + $0x10] sm:$0xff] }
  0x14   : > { %406 = vmatpush.bf16.msra.mxu0 %v1077_v2  ;;  %1125 = vmatpush.bf16.msra.mxu3 %v1077_v2  ;;  %v1081_v28 = vld [vmem:[%s1446_s4 + $0x8] sm:$0xff]  ;;  %v1092_v30 = vld [vmem:[%s1447_s5] sm:$0xff] }
  0x15   : > { %715 = vmatpush.bf16.msra.mxu2 %v1086_v15  ;;  %v1080_v32 = vld [vmem:[%s1446_s4] sm:$0xff]  ;;  %v1089_v51 = vld [vmem:[%s1349_s15 + $0x8] sm:$0xff] }
  0x16   : > { %639 = vmatpush.bf16.msra.mxu1 %v1097_v16  ;;  %v1088_v34 = vld [vmem:[%s1349_s15] sm:$0xff] }
  0x18   : > { %407 = vmatpush.bf16.msra.mxu0 %v1076_v3  ;;  %1126 = vmatpush.bf16.msra.mxu3 %v1076_v3 }
  0x19   : > { %716 = vmatpush.bf16.msra.mxu2 %v1085_v17 }
  0x1a   : > { %640 = vmatpush.bf16.msra.mxu1 %v1096_v18 }
  0x1c   : > { %408 = vmatpush.bf16.msra.mxu0 %v1075_v4  ;;  %1127 = vmatpush.bf16.msra.mxu3 %v1075_v4 }
  0x1d   : > { %717 = vmatpush.bf16.msra.mxu2 %v1084_v19 }
  0x1e   : > { %641 = vmatpush.bf16.msra.mxu1 %v1095_v20 }
  0x20   : > { %409 = vmatpush.bf16.msra.mxu0 %v1074_v5  ;;  %1128 = vmatpush.bf16.msra.mxu3 %v1074_v5 }
  0x21   : > { %718 = vmatpush.bf16.msra.mxu2 %v1083_v21 }
  0x22   : > { %642 = vmatpush.bf16.msra.mxu1 %v1094_v22 }
  0x24   : > { %410 = vmatpush.bf16.msra.mxu0 %v1073_v6  ;;  %1129 = vmatpush.bf16.msra.mxu3 %v1073_v6 }
  0x25   : > { %719 = vmatpush.bf16.msra.mxu2 %v1082_v24 }
  0x26   : > { %643 = vmatpush.bf16.msra.mxu1 %v1093_v25 }
  0x28   : > { %411 = vmatpush.bf16.msra.mxu0 %v1072_v7  ;;  %1130 = vmatpush.bf16.msra.mxu3 %v1072_v7 }
  0x29   : > { %720 = vmatpush.bf16.msra.mxu2 %v1081_v28 }
  0x2a   : > { %644 = vmatpush.bf16.msra.mxu1 %v1092_v30 }
  0x2b   : > { %412 = vmatmul.bf16.vlgmr.msra.gmra.mxu0 %v1068_v8  ;;  %417 = vmatmul.bf16.vlgmr.msra.gmra.mxu3 %v1069_v9 }
  0x2d   : > { %721 = vmatpush.bf16.msra.mxu2 %v1080_v32  ;;  %645 = vmatmul.bf16.vlgmr.msra.gmra.mxu1 %v1088_v34 }
  0x3b   : > { %422 = vmatmul.bf16.gmra.mxu3 %v1070_v10 }
  0x3d   : > { %650 = vmatmul.bf16.gmra.mxu1 %v1089_v51 }
  0x4b   : > { %427 = vmatmul.bf16.gmra.mxu3 %v1071_v11 }
  0x4d   : > { %655 = vmatmul.bf16.gmra.mxu1 %v1090_v12 }
  0xa8   : > { %v413_v26 = vpop.f32.mrf.mxu0 }
  0xa9   : > { %v1336_v27 = vadd.f32 %v1327_v23, %v413_v26 }
  0xab   : > { %v433_v29 = vmin.f32 %v1336_v27, 20.0  ;;  %vm497_vm0 = vcmp.gt.f32.partialorder %v1336_v27, 20.0 }
  0xad   : > { %v441_v31 = vmul.f32 1.442695, %v433_v29 }
  0xae   : > { %v418_v33 = vpop.f32.mrf.mxu3 }
  0xaf   : > { %1141 = vpow2.f32 %v441_v31  ;;  %v1356_v35 = vadd.f32 %v1327_v23, %v418_v33 }
  0xb0   : > { %v415_v36 = vpop.f32.mrf.mxu0 }
  0xb1   : > { %v435_v37 = vmin.f32 %v1356_v35, 20.0  ;;  %v416_v38 = vadd.f32 %v1327_v23, %v415_v36  ;;  %vm499_vm3 = vcmp.gt.f32.partialorder %v1356_v35, 20.0 }
  0xb3   : > { %v434_v39 = vmin.f32 %v416_v38, 20.0  ;;  %v445_v41 = vmul.f32 1.442695, %v435_v37  ;;  %vm498_vm1 = vcmp.gt.f32.partialorder %v416_v38, 20.0 }
  0xb5   : > { %v1142_v40 = vpop.eup %1141  ;;  %v443_v42 = vmul.f32 1.442695, %v434_v39 }
  0xb6   : > { %v420_v43 = vpop.f32.mrf.mxu3  ;;  %v457_v44 = vadd.f32 2.0, %v1142_v40 }
  0xb7   : > { %1143 = vpow2.f32 %v443_v42  ;;  %v1361_v45 = vadd.f32 %v1327_v23, %v420_v43 }
  0xb8   : > { %v465_v46 = vmul.f32 %v1142_v40, %v457_v44  ;;  %1145 = vpow2.f32 %v445_v41  ;;  %v1091_v41 = vld [vmem:[%s1349_s15 + $0x18] sm:$0xff] }
  0xb9   : > { %v436_v47 = vmin.f32 %v1361_v45, 20.0  ;;  %vm500_vm2 = vcmp.gt.f32.partialorder %v1361_v45, 20.0  ;;  %660 = vmatmul.bf16.gmra.mxu1 %v1091_v41 }
  0xba   : > { %v473_v48 = vadd.f32 2.0, %v465_v46 }
  0xbb   : > { %v447_v49 = vmul.f32 1.442695, %v436_v47 }
  0xbd   : > { %v1144_v50 = vpop.eup %1143  ;;  %1147 = vpow2.f32 %v447_v49 }
  0xbe   : > { %v423_v52 = vpop.f32.mrf.mxu3  ;;  %v458_v53 = vadd.f32 2.0, %v1144_v50  ;;  %1149 = vrcp.f32 %v473_v48  ;;  %v1146_v54 = vpop.eup %1145 }
  0xbf   : > { %v1366_v55 = vadd.f32 %v1327_v23, %v423_v52  ;;  %v459_v59 = vadd.f32 2.0, %v1146_v54 }
  0xc0   : > { %v466_v56 = vmul.f32 %v1144_v50, %v458_v53 }
  0xc1   : > { %v437_v57 = vmin.f32 %v1366_v55, 20.0  ;;  %v467_v1 = vmul.f32 %v1146_v54, %v459_v59  ;;  %vm501_vm5 = vcmp.gt.f32.partialorder %v1366_v55, 20.0 }
  0xc2   : > { %v474_v58 = vadd.f32 2.0, %v466_v56 }
  0xc3   : > { %v1148_v60 = vpop.eup %1147  ;;  %v449_v63 = vmul.f32 1.442695, %v437_v57  ;;  %v475_v8 = vadd.f32 2.0, %v467_v1 }
  0xc4   : > { %v1150_v61 = vpop.eup %1149  ;;  %1151 = vrcp.f32 %v474_v58  ;;  %v460_v62 = vadd.f32 2.0, %v1148_v60 }
  0xc5   : > { %v489_v4 = vmul.f32 %v1150_v61, %v465_v46  ;;  %1153 = vpow2.f32 %v449_v63 }
  0xc6   : > { %v425_v0 = vpop.f32.mrf.mxu3  ;;  %v468_v2 = vmul.f32 %v1148_v60, %v460_v62 }
  0xc7   : > { %v1370_v3 = vadd.f32 %v1327_v23, %v425_v0  ;;  %v505_v11 = vmul.f32 %v489_v4, %v1336_v27 }
  0xc8   : > { %v476_v5 = vadd.f32 2.0, %v468_v2 }
  0xc9   : > { %v438_v6 = vmin.f32 %v1370_v3, 20.0  ;;  %v513_v17 = vsel %vm497_vm0, %v1336_v27, %v505_v11  ;;  %vm502_vm4 = vcmp.gt.f32.partialorder %v1370_v3, 20.0 }
  0xca   : > { %v1152_v7 = vpop.eup %1151  ;;  %1155 = vrcp.f32 %v476_v5 }
  0xcb   : > { %v451_v9 = vmul.f32 1.442695, %v438_v6  ;;  %v490_v10 = vmul.f32 %v1152_v7, %v466_v56  ;;  %v1154_v15 = vpop.eup %1153  ;;  %v646_v6 = vpop.f32.mrf.mxu1 }
  0xcc   : > { %v461_v22 = vadd.f32 2.0, %v1154_v15 }
  0xcd   : > { %1157 = vpow2.f32 %v451_v9  ;;  %v506_v13 = vmul.f32 %v490_v10, %v416_v38 }
  0xce   : > { %v428_v14 = vpop.f32.mrf.mxu3  ;;  %1159 = vrcp.f32 %v475_v8  ;;  %v469_v31 = vmul.f32 %v1154_v15, %v461_v22 }
  0xcf   : > { %v1377_v16 = vadd.f32 %v1327_v23, %v428_v14  ;;  %v514_v18 = vsel %vm498_vm1, %v416_v38, %v506_v13 }
  0xd0   : > { %v521_v19 = vpack.c.bf16 %v514_v18, %v513_v17  ;;  %v1156_v21 = vpop.eup %1155  ;;  %v477_v38 = vadd.f32 2.0, %v469_v31 }
  0xd1   : > { %v439_v20 = vmin.f32 %v1377_v16, 20.0  ;;  %v492_v29 = vmul.f32 %v1156_v21, %v468_v2  ;;  %vm503_vm7 = vcmp.gt.f32.partialorder %v1377_v16, 20.0 }
  0xd2   : > { %722 = vmatmul.bf16.vlgmr.msra.gmra.mxu2 %v521_v19 }
  0xd3   : > { %v1158_v24 = vpop.eup %1157  ;;  %v453_v28 = vmul.f32 1.442695, %v439_v20  ;;  %v508_v37 = vmul.f32 %v492_v29, %v1361_v45  ;;  %v648_v7 = vpop.f32.mrf.mxu1 }
  0xd4   : > { %v1160_v25 = vpop.eup %1159  ;;  %v462_v26 = vadd.f32 2.0, %v1158_v24 }
  0xd5   : > { %v491_v27 = vmul.f32 %v1160_v25, %v467_v1  ;;  %1161 = vpow2.f32 %v453_v28  ;;  %v516_v42 = vsel %vm500_vm2, %v1361_v45, %v508_v37 }
  0xd6   : > { %v430_v30 = vpop.f32.mrf.mxu3  ;;  %v470_v32 = vmul.f32 %v1158_v24, %v462_v26 }
  0xd7   : > { %v431_v33 = vadd.f32 %v1327_v23, %v430_v30  ;;  %v507_v40 = vmul.f32 %v491_v27, %v1356_v35 }
  0xd8   : > { %v478_v34 = vadd.f32 2.0, %v470_v32 }
  0xd9   : > { %v440_v36 = vmin.f32 %v431_v33, 20.0  ;;  %v515_v43 = vsel %vm499_vm3, %v1356_v35, %v507_v40  ;;  %vm504_vm6 = vcmp.gt.f32.partialorder %v431_v33, 20.0 }
  0xda   : > { %1163 = vrcp.f32 %v478_v34  ;;  %v522_v44 = vpack.c.bf16 %v516_v42, %v515_v43 }
  0xdb   : > { %v455_v39 = vmul.f32 1.442695, %v440_v36  ;;  %v1162_v23 = vpop.eup %1161  ;;  %v651_v12 = vpop.f32.mrf.mxu1 }
  0xdc   : > { %v463_v47 = vadd.f32 2.0, %v1162_v23 }
  0xdd   : > { %1165 = vpow2.f32 %v455_v39 }
  0xde   : > { %1167 = vrcp.f32 %v477_v38  ;;  %v471_v52 = vmul.f32 %v1162_v23, %v463_v47 }
  0xe0   : > { %v1164_v46 = vpop.eup %1163  ;;  %v479_v57 = vadd.f32 2.0, %v471_v52 }
  0xe1   : > { %v494_v51 = vmul.f32 %v1164_v46, %v470_v32 }
  0xe2   : > { %727 = vmatmul.bf16.gmra.mxu2 %v522_v44 }
  0xe3   : > { %v1166_v48 = vpop.eup %1165  ;;  %v510_v45 = vmul.f32 %v494_v51, %v1370_v3  ;;  %v653_v21 = vpop.f32.mrf.mxu1 }
  0xe4   : > { %v1168_v49 = vpop.eup %1167  ;;  %v464_v50 = vadd.f32 2.0, %v1166_v48 }
  0xe5   : > { %v493_v54 = vmul.f32 %v1168_v49, %v469_v31  ;;  %v518_v35 = vsel %vm502_vm4, %v1370_v3, %v510_v45 }
  0xe6   : > { %v472_v53 = vmul.f32 %v1166_v48, %v464_v50 }
  0xe7   : > { %v509_v58 = vmul.f32 %v493_v54, %v1366_v55 }
  0xe8   : > { %v480_v56 = vadd.f32 2.0, %v472_v53 }
  0xe9   : > { %v517_v59 = vsel %vm501_vm5, %v1366_v55, %v509_v58  ;;  %v1401_v55 = vld [vmem:[%s1448_s6] ss:$0 sm:$0xff] }
  0xea   : > { %1169 = vrcp.f32 %v480_v56  ;;  %v523_v60 = vpack.c.bf16 %v518_v35, %v517_v59 }
  0xeb   : > { %1171 = vrcp.f32 %v479_v57  ;;  %v656_v36 = vpop.f32.mrf.mxu1 }
  0xf0   : > { %v1170_v61 = vpop.eup %1169 }
  0xf1   : > { %v1172_v62 = vpop.eup %1171  ;;  %v496_v63 = vmul.f32 %v1170_v61, %v472_v53 }
  0xf2   : > { %732 = vmatmul.bf16.gmra.mxu2 %v523_v60  ;;  %v495_v0 = vmul.f32 %v1172_v62, %v471_v52 }
  0xf3   : > { %v512_v1 = vmul.f32 %v496_v63, %v431_v33  ;;  %v658_v51 = vpop.f32.mrf.mxu1 }
  0xf4   : > { %v511_v2 = vmul.f32 %v495_v0, %v1377_v16 }
  0xf5   : > { %v520_v4 = vsel %vm504_vm6, %v431_v33, %v512_v1 }
  0xf6   : > { %v519_v3 = vsel %vm503_vm7, %v1377_v16, %v511_v2 }
  0xf7   : > { %v524_v5 = vpack.c.bf16 %v520_v4, %v519_v3 }
 0x102   : > { %737 = vmatmul.bf16.gmra.mxu2 %v524_v5 }
 0x136   : > { %v661_v3 = vpop.f32.mrf.mxu1 }
 0x155   : > { %v723_v8 = vpop.f32.mrf.mxu2 }
 0x156   : > { %v724_v9 = vadd.f32 %v723_v8, %v646_v6 }
 0x158   : > { %v747_v10 = vadd.f32 %v1401_v55, %v724_v9 }
 0x15a   : > { %v755_v11 = vmin.f32 %v747_v10, 20.0  ;;  %vm819_vm8 = vcmp.gt.f32.partialorder %v747_v10, 20.0 }
 0x15c   : > { %v763_v13 = vmul.f32 1.442695, %v755_v11 }
 0x15d   : > { %v725_v14 = vpop.f32.mrf.mxu2 }
 0x15e   : > { %1173 = vpow2.f32 %v763_v13  ;;  %v726_v15 = vadd.f32 %v725_v14, %v648_v7 }
 0x160   : > { %v748_v16 = vadd.f32 %v1401_v55, %v726_v15 }
 0x162   : > { %v756_v17 = vmin.f32 %v748_v16, 20.0  ;;  %vm820_vm9 = vcmp.gt.f32.partialorder %v748_v16, 20.0 }
 0x164   : > { %v1174_v18 = vpop.eup %1173  ;;  %v765_v19 = vmul.f32 1.442695, %v756_v17 }
 0x165   : > { %v779_v20 = vadd.f32 2.0, %v1174_v18  ;;  %v728_v22 = vpop.f32.mrf.mxu2 }
 0x166   : > { %1175 = vpow2.f32 %v765_v19  ;;  %v729_v24 = vadd.f32 %v728_v22, %v651_v12  ;;  %v663_v22 = vpop.f32.mrf.mxu1 }
 0x167   : > { %v787_v25 = vmul.f32 %v1174_v18, %v779_v20 }
 0x168   : > { %v1406_v26 = vadd.f32 %v1401_v55, %v729_v24 }
 0x169   : > { %v795_v28 = vadd.f32 2.0, %v787_v25 }
 0x16a   : > { %v757_v29 = vmin.f32 %v1406_v26, 20.0  ;;  %vm821_vm10 = vcmp.gt.f32.partialorder %v1406_v26, 20.0 }
 0x16b   : > { %1177 = vrcp.f32 %v795_v28 }
 0x16c   : > { %v1176_v30 = vpop.eup %1175  ;;  %v767_v31 = vmul.f32 1.442695, %v757_v29 }
 0x16d   : > { %v780_v32 = vadd.f32 2.0, %v1176_v30  ;;  %v730_v33 = vpop.f32.mrf.mxu2 }
 0x16e   : > { %1179 = vpow2.f32 %v767_v31  ;;  %v731_v27 = vadd.f32 %v730_v33, %v653_v21 }
 0x16f   : > { %v788_v34 = vmul.f32 %v1176_v30, %v780_v32 }
 0x170   : > { %v1410_v37 = vadd.f32 %v1401_v55, %v731_v27 }
 0x171   : > { %v796_v38 = vadd.f32 2.0, %v788_v34  ;;  %v1178_v40 = vpop.eup %1177 }
 0x172   : > { %v758_v39 = vmin.f32 %v1410_v37, 20.0  ;;  %v811_v44 = vmul.f32 %v1178_v40, %v787_v25  ;;  %vm822_vm11 = vcmp.gt.f32.partialorder %v1410_v37, 20.0 }
 0x173   : > { %1181 = vrcp.f32 %v796_v38 }
 0x174   : > { %v1180_v41 = vpop.eup %1179  ;;  %v769_v42 = vmul.f32 1.442695, %v758_v39  ;;  %v827_v52 = vmul.f32 %v811_v44, %v747_v10 }
 0x175   : > { %v781_v23 = vadd.f32 2.0, %v1180_v41  ;;  %v733_v43 = vpop.f32.mrf.mxu2 }
 0x176   : > { %1183 = vpow2.f32 %v769_v42  ;;  %v734_v46 = vadd.f32 %v733_v43, %v656_v36  ;;  %v835_v59 = vsel %vm819_vm8, %v747_v10, %v827_v52 }
 0x177   : > { %v789_v47 = vmul.f32 %v1180_v41, %v781_v23 }
 0x178   : > { %v1414_v48 = vadd.f32 %v1401_v55, %v734_v46 }
 0x179   : > { %v1182_v49 = vpop.eup %1181  ;;  %v797_v50 = vadd.f32 2.0, %v789_v47 }
 0x17a   : > { %v812_v53 = vmul.f32 %v1182_v49, %v788_v34  ;;  %v759_v54 = vmin.f32 %v1414_v48, 20.0  ;;  %vm823_vm12 = vcmp.gt.f32.partialorder %v1414_v48, 20.0 }
 0x17b   : > { %1185 = vrcp.f32 %v797_v50 }
 0x17c   : > { %v1184_v56 = vpop.eup %1183  ;;  %v828_v45 = vmul.f32 %v812_v53, %v748_v16  ;;  %v771_v57 = vmul.f32 1.442695, %v759_v54 }
 0x17d   : > { %v782_v58 = vadd.f32 2.0, %v1184_v56  ;;  %v735_v35 = vpop.f32.mrf.mxu2 }
 0x17e   : > { %v836_v60 = vsel %vm820_vm9, %v748_v16, %v828_v45  ;;  %1187 = vpow2.f32 %v771_v57  ;;  %v736_v61 = vadd.f32 %v735_v35, %v658_v51 }
 0x17f   : > { %v1103_v62 = vpack.c.bf16 %v836_v60, %v835_v59  ;;  %v790_v63 = vmul.f32 %v1184_v56, %v782_v58 }
 0x180   : > { %v752_v0 = vadd.f32 %v1401_v55, %v736_v61 }
 0x181   : > { %1104 = vst [vmem:[%s1421_s23] sm:$0xff] %v1103_v62   ;;  %v798_v1 = vadd.f32 2.0, %v790_v63  ;;  %v1186_v4 = vpop.eup %1185 }
 0x182   : > { %v760_v2 = vmin.f32 %v752_v0, 20.0  ;;  %v813_v9 = vmul.f32 %v1186_v4, %v789_v47  ;;  %vm824_vm13 = vcmp.gt.f32.partialorder %v752_v0, 20.0 }
 0x183   : > { %1189 = vrcp.f32 %v798_v1 }
 0x184   : > { %v1188_v5 = vpop.eup %1187  ;;  %v773_v6 = vmul.f32 1.442695, %v760_v2  ;;  %v829_v15 = vmul.f32 %v813_v9, %v1406_v26 }
 0x185   : > { %v783_v7 = vadd.f32 2.0, %v1188_v5  ;;  %v738_v8 = vpop.f32.mrf.mxu2 }
 0x186   : > { %1191 = vpow2.f32 %v773_v6  ;;  %v739_v10 = vadd.f32 %v738_v8, %v661_v3  ;;  %v837_v25 = vsel %vm821_vm10, %v1406_v26, %v829_v15 }
 0x187   : > { %v791_v11 = vmul.f32 %v1188_v5, %v783_v7 }
 0x188   : > { %v753_v12 = vadd.f32 %v1401_v55, %v739_v10 }
 0x189   : > { %v1190_v13 = vpop.eup %1189  ;;  %v799_v14 = vadd.f32 2.0, %v791_v11 }
 0x18a   : > { %v814_v16 = vmul.f32 %v1190_v13, %v790_v63  ;;  %v761_v17 = vmin.f32 %v753_v12, 20.0  ;;  %vm825_vm14 = vcmp.gt.f32.partialorder %v753_v12, 20.0 }
 0x18b   : > { %1193 = vrcp.f32 %v799_v14 }
 0x18c   : > { %v1192_v18 = vpop.eup %1191  ;;  %v830_v19 = vmul.f32 %v814_v16, %v1410_v37  ;;  %v775_v20 = vmul.f32 1.442695, %v761_v17 }
 0x18d   : > { %v784_v21 = vadd.f32 2.0, %v1192_v18  ;;  %v740_v24 = vpop.f32.mrf.mxu2 }
 0x18e   : > { %v838_v28 = vsel %vm822_vm11, %v1410_v37, %v830_v19  ;;  %1195 = vpow2.f32 %v775_v20  ;;  %v741_v29 = vadd.f32 %v740_v24, %v663_v22 }
 0x18f   : > { %v1108_v30 = vpack.c.bf16 %v838_v28, %v837_v25  ;;  %v792_v31 = vmul.f32 %v1192_v18, %v784_v21 }
 0x190   : > { %v754_v32 = vadd.f32 %v1401_v55, %v741_v29 }
 0x191   : > { %1120 = vst [vmem:[%s1421_s23 + $0x8] sm:$0xff] %v1108_v30   ;;  %v800_v33 = vadd.f32 2.0, %v792_v31  ;;  %v1194_v34 = vpop.eup %1193 }
 0x192   : > { %v762_v27 = vmin.f32 %v754_v32, 20.0  ;;  %v815_v40 = vmul.f32 %v1194_v34, %v791_v11  ;;  %vm826_vm15 = vcmp.gt.f32.partialorder %v754_v32, 20.0 }
 0x193   : > { %1197 = vrcp.f32 %v800_v33 }
 0x194   : > { %v1196_v36 = vpop.eup %1195  ;;  %v777_v38 = vmul.f32 1.442695, %v762_v27  ;;  %v831_v42 = vmul.f32 %v815_v40, %v1414_v48 }
 0x195   : > { %v785_v39 = vadd.f32 2.0, %v1196_v36 }
 0x196   : > { %1199 = vpow2.f32 %v777_v38  ;;  %v839_v46 = vsel %vm823_vm12, %v1414_v48, %v831_v42 }
 0x197   : > { %v793_v26 = vmul.f32 %v1196_v36, %v785_v39 }
 0x199   : > { %v1198_v41 = vpop.eup %1197  ;;  %v801_v37 = vadd.f32 2.0, %v793_v26 }
 0x19a   : > { %v816_v23 = vmul.f32 %v1198_v41, %v792_v31 }
 0x19b   : > { %1201 = vrcp.f32 %v801_v37 }
 0x19c   : > { %v1200_v43 = vpop.eup %1199  ;;  %v832_v44 = vmul.f32 %v816_v23, %v752_v0 }
 0x19d   : > { %v786_v55 = vadd.f32 2.0, %v1200_v43 }
 0x19e   : > { %v840_v47 = vsel %vm824_vm13, %v752_v0, %v832_v44 }
 0x19f   : > { %v1113_v49 = vpack.c.bf16 %v840_v47, %v839_v46  ;;  %v794_v50 = vmul.f32 %v1200_v43, %v786_v55 }
 0x1a1   : > { %1121 = vst [vmem:[%s1421_s23 + $0x10] sm:$0xff] %v1113_v49   ;;  %v802_v51 = vadd.f32 2.0, %v794_v50  ;;  %v1202_v52 = vpop.eup %1201 }
 0x1a2   : > { %v817_v53 = vmul.f32 %v1202_v52, %v793_v26 }
 0x1a3   : > { %1203 = vrcp.f32 %v802_v51 }
 0x1a4   : > { %v833_v56 = vmul.f32 %v817_v53, %v753_v12 }
 0x1a6   : > { %v841_v58 = vsel %vm825_vm14, %v753_v12, %v833_v56 }
 0x1a9   : > { %v1204_v54 = vpop.eup %1203 }
 0x1aa   : > { %v818_v45 = vmul.f32 %v1204_v54, %v794_v50 }
 0x1ac   : > { %v834_v57 = vmul.f32 %v818_v45, %v754_v32 }
 0x1ae   : > { %v842_v35 = vsel %vm826_vm15, %v754_v32, %v834_v57 }
 0x1af   : > { %v1118_v59 = vpack.c.bf16 %v842_v35, %v841_v58 }
 0x1b1   : > { %1122 = vst [vmem:[%s1421_s23 + $0x18] sm:$0xff] %v1118_v59  }
 0x1b2 PF: > { %s17_s24 = sadd.s32 1, %s1211_s24  }
 0x1b3   : > { %p14_p4 = scmp.ge.s32.totalorder %s17_s24, 10  }
 0x1b5   :  { %16 = sbr.rel (!%p14_p4) target bundleno = 1 (0x1), region = 81 }

// kernel: _lambda_.4
= control target key start
LH: loop header
LB: loop body
LE: loop exit
PB: predicated region body
PF: predicated region fallthrough
CT: control target
= control target key end

     0   :  { %s4390_s24 = smov 0   ;;  %s4392_s25 = smov 0   ;;  %s5605_s0 = inlined_call_operand.vmem [shape: bf16[2,16,16,128], index: 0, kind: input, shape index: {}, may-alias: {0,1,2}]   ;;  %s5606_s1 = inlined_call_operand.vmem [shape: bf16[2,16,16,128], index: 1, kind: input, shape index: {}, may-alias: {0,1,2}]   ;;  %s5607_s2 = inlined_call_operand.vmem [shape: bf16[2,16,16,128], index: 2, kind: input, shape index: {}, may-alias: {0,1,2}]   ;;  %s5608_s3 = inlined_call_operand.vmem [shape: bf16[128,128], index: 3, kind: input, shape index: {}]   ;;  %s5609_s4 = inlined_call_operand.vmem [shape: f32[1,128], index: 4, kind: input, shape index: {}]   ;;  %s5610_s5 = inlined_call_operand.vmem [shape: bf16[9,128,128], index: 5, kind: input, shape index: {}]   ;;  %s5611_s6 = inlined_call_operand.vmem [shape: f32[1,128], index: 6, kind: input, shape index: {}]   ;;  %s5612_s7 = inlined_call_operand.vmem [shape: bf16[2,16,16,128], index: 7, kind: output, shape index: {}]  }
   0x1   :  { %s4394_s26 = smov 0   ;;  %s4396_s27 = smov 0  }
   0x2   :  { %s4398_s28 = smov 0  }
   0x3 LB: > { %s26_s29 = sadd.s32 1, %s4340_s26  ;;  %s29_s30 = sadd.s32 1, %s4344_s27  ;;  %s4348_s28 = sphi %s4398_s28, %s17_s28   ;;  %s4344_s27 = sphi %s4396_s27, %s5651_s27   ;;  %s4340_s26 = sphi %s4394_s26, %s5650_s26   ;;  %s4336_s25 = sphi %s4392_s25, %s5649_s25   ;;  %s4332_s24 = sphi %s4390_s24, %s5648_s24  }
   0x4   : > { %p27_p0 = scmp.ge.s32.totalorder %s26_s29, 2  ;;  %p3194_p1 = scmp.ge.s32.totalorder %s4348_s28, 1 }
   0x5   : > { %p323_p2 = scmp.lt.s32.totalorder %s4348_s28, 5 }
   0x6   : > { %s5653_s29 = smov (%p27_p0, %s26_s29), 0  ;;  %s5655_s30 = smov (!%p27_p0, %s29_s30), %s4344_s27 }
   0x7   : > { %p324_p3 = pnand %p3194_p1, %p323_p2  ;;  %p31_p4 = scmp.ge.s32.totalorder %s5655_s30, 2 }
   0x9   : > { %s5657_s30 = smov (%p31_p4, %s5655_s30), 0  ;;  %327 = sbr.rel (%p324_p3) target bundleno = 773 (0x305), region = 48 }
   0xe   : > { %v3887_v0 = vld [vmem:[%s5608_s3 + $0x38] sm:$0xff]  ;;  %v3886_v1 = vld [vmem:[%s5608_s3 + $0x30] sm:$0xff]  ;;  %v3885_v2 = vld [vmem:[%s5608_s3 + $0x28] sm:$0xff]  ;;  %s4432_s14 = sshll.u32 %s4332_s24, 3  ;;  %p392_p5 = scmp.lt.s32.totalorder %s4336_s25, 1 }
   0xf   : > { %585 = vmatpush.bf16.msra.mxu0 %v3887_v0  ;;  %4106 = vmatpush.bf16.msra.mxu1 %v3887_v0  ;;  %p394_p6 = scmp.lt.s32.totalorder %s4432_s14, 15  ;;  %v3884_v3 = vld [vmem:[%s5608_s3 + $0x20] sm:$0xff]  ;;  %v3883_v4 = vld [vmem:[%s5608_s3 + $0x18] sm:$0xff]  ;;  %v3882_v5 = vld [vmem:[%s5608_s3 + $0x10] sm:$0xff]  ;;  %p447_p10 = scmp.gt.s32.totalorder %s4332_s24, 0 }
  0x10   : > { %s5659_s25 = smov (!%p392_p5, %s4336_s25), 1  ;;  %v3881_v6 = vld [vmem:[%s5608_s3 + $0x8] sm:$0xff]  ;;  %v3880_v7 = vld [vmem:[%s5608_s3] sm:$0xff]  ;;  %v3896_v8 = vld [vmem:[%s5608_s3 + $0x38] sm:$0xff]  ;;  %p450_p11 = scmp.lt.s32.totalorder %s4332_s24, 1 }
  0x11   : > { %s395_s17 = scalar_select %p394_p6, %s4432_s14, 15  ;;  %v3895_v11 = vld [vmem:[%s5608_s3 + $0x30] sm:$0xff]  ;;  %v3894_v12 = vld [vmem:[%s5608_s3 + $0x28] sm:$0xff]  ;;  %v3893_v13 = vld [vmem:[%s5608_s3 + $0x20] sm:$0xff] }
  0x12   : > { %s4442_s21 = sshll.u32 %s5659_s25, 5  ;;  %v3892_v14 = vld [vmem:[%s5608_s3 + $0x18] sm:$0xff]  ;;  %v3891_v17 = vld [vmem:[%s5608_s3 + $0x10] sm:$0xff]  ;;  %v3890_v18 = vld [vmem:[%s5608_s3 + $0x8] sm:$0xff] }
  0x13   : > { %586 = vmatpush.bf16.msra.mxu0 %v3886_v1  ;;  %4107 = vmatpush.bf16.msra.mxu1 %v3886_v1  ;;  %s3196_s20 = sshll.u32 %s395_s17, 1  ;;  %s3200_s17 = sadd.s32 4294967295, %s4432_s14  ;;  %v3889_v19 = vld [vmem:[%s5608_s3] sm:$0xff]  ;;  %v3905_v22 = vld [vmem:[%s5608_s3 + $0x38] sm:$0xff]  ;;  %v3904_v23 = vld [vmem:[%s5608_s3 + $0x30] sm:$0xff] }
  0x14   : > { %s4448_s8 = sadd.s32 %s4442_s21, %s3196_s20  ;;  %p404_p7 = scmp.gt.s32.totalorder %s3200_s17, 0  ;;  %1038 = vmatpush.bf16.msra.mxu2 %v3905_v22  ;;  %v3903_v27 = vld [vmem:[%s5608_s3 + $0x28] sm:$0xff]  ;;  %v3902_v28 = vld [vmem:[%s5608_s3 + $0x20] sm:$0xff]  ;;  %v3901_v29 = vld [vmem:[%s5608_s3 + $0x18] sm:$0xff] }
  0x15   : > { %s3198_s11 = sshll.u32 %s4448_s8, 2  ;;  %s420_s20 = sadd.s32 8, %s4432_s14  ;;  %v3900_v30 = vld [vmem:[%s5608_s3 + $0x10] sm:$0xff]  ;;  %v3899_v31 = vld [vmem:[%s5608_s3 + $0x8] sm:$0xff]  ;;  %v3898_v32 = vld [vmem:[%s5608_s3] sm:$0xff] }
  0x16   : > { %s4462_s16 = scalar_lea.vmem %s5605_s0, %s3198_s11  ;;  %p421_p8 = scmp.lt.s32.totalorder %s420_s20, 15  ;;  %v3953_v33 = vld [vmem:[%s5610_s5 + $0xf8] sm:$0xff]  ;;  %v3952_v35 = vld [vmem:[%s5610_s5 + $0xf0] sm:$0xff]  ;;  %v3951_v37 = vld [vmem:[%s5610_s5 + $0xe8] sm:$0xff] }
  0x17   : > { %587 = vmatpush.bf16.msra.mxu0 %v3885_v2  ;;  %4108 = vmatpush.bf16.msra.mxu1 %v3885_v2  ;;  %v3872_v9 = vld [vmem:[%s4462_s16] sm:$0xff]  ;;  %v3877_v10 = vld [vmem:[%s4462_s16 + $0x28] sm:$0xff]  ;;  %v3878_v16 = vld [vmem:[%s4462_s16 + $0x30] sm:$0xff]  ;;  %p3201_p9 = scmp.lt.s32.totalorder %s3200_s17, 15  ;;  %s5663_s17 = smov (!%p404_p7, %s3200_s17), 0 }
  0x18   : > { %v3873_v15 = vld [vmem:[%s4462_s16 + $0x8] sm:$0xff]  ;;  %s5661_s20 = smov (!%p421_p8, %s420_s20), 15  ;;  %v3874_v20 = vld [vmem:[%s4462_s16 + $0x10] sm:$0xff]  ;;  %v3879_v21 = vld [vmem:[%s4462_s16 + $0x38] sm:$0xff]  ;;  %1039 = vmatpush.bf16.msra.mxu2 %v3904_v23  ;;  %4114 = vmatpush.bf16.msra.mxu3 %v3953_v33  ;;  %s5427_s24 = scalar_lea.vmem %s5612_s7, %s3198_s11 }
  0x19   : > { %s5665_s20 = smov (!%p421_p8, %s5661_s20), 15  ;;  %s5667_s17 = smov (!%p3201_p9, %s5663_s17), 15  ;;  %v3875_v24 = vld [vmem:[%s4462_s16 + $0x18] sm:$0xff]  ;;  %v3876_v26 = vld [vmem:[%s4462_s16 + $0x20] sm:$0xff]  ;;  %v3960_v36 = vld [vmem:[%s5610_s5 + $0x130] sm:$0xff] }
  0x1a   : > { %s4494_s9 = sshll.u32 %s5665_s20, 1  ;;  %s3206_s14 = sshll.u32 %s5667_s17, 1  ;;  %v3961_v34 = vld [vmem:[%s5610_s5 + $0x138] sm:$0xff]  ;;  %v3959_v38 = vld [vmem:[%s5610_s5 + $0x128] sm:$0xff]  ;;  %v4554_v39 = vld [vmem:[%s5609_s4] ss:$0 sm:$0xff] }
  0x1b   : > { %588 = vmatpush.bf16.msra.mxu0 %v3884_v3  ;;  %4109 = vmatpush.bf16.msra.mxu1 %v3884_v3  ;;  %s429_s10 = sadd.s32 %s4494_s9, %s4442_s21  ;;  %s412_s18 = sadd.s32 %s3206_s14, %s4442_s21  ;;  %v3950_v40 = vld [vmem:[%s5610_s5 + $0xe0] sm:$0xff]  ;;  %v3949_v47 = vld [vmem:[%s5610_s5 + $0xd8] sm:$0xff]  ;;  %v3948_v53 = vld [vmem:[%s5610_s5 + $0xd0] sm:$0xff] }
  0x1c   : > { %s3208_s19 = sshll.u32 %s412_s18, 2  ;;  %1040 = vmatpush.bf16.msra.mxu2 %v3903_v27  ;;  %4115 = vmatpush.bf16.msra.mxu3 %v3952_v35  ;;  %s3215_s12 = sshll.u32 %s429_s10, 2  ;;  %v3958_v41 = vld [vmem:[%s5610_s5 + $0x120] sm:$0xff]  ;;  %v3957_v48 = vld [vmem:[%s5610_s5 + $0x118] sm:$0xff]  ;;  %v3956_v54 = vld [vmem:[%s5610_s5 + $0x110] sm:$0xff] }
  0x1d   : > { %s414_s23 = scalar_lea.vmem %s5606_s1, %s3208_s19  ;;  %s431_s21 = scalar_lea.vmem %s5607_s2, %s3215_s12  ;;  %v3947_v59 = vld [vmem:[%s5610_s5 + $0xc8] sm:$0xff] }
  0x1e   : > { %v3888_v25 = vld [vmem:[%s414_s23] sm:$0xff]  ;;  %v3955_v60 = vld [vmem:[%s5610_s5 + $0x108] sm:$0xff]  ;;  %s448_s20 = scalar_select %p447_p10, 1, 0 }
  0x1f   : > { %589 = vmatpush.bf16.msra.mxu0 %v3883_v4  ;;  %4110 = vmatpush.bf16.msra.mxu1 %v3883_v4  ;;  %v3897_v46 = vld [vmem:[%s431_s21] sm:$0xff] }
  0x20   : > { %1041 = vmatpush.bf16.msra.mxu2 %v3902_v28  ;;  %4116 = vmatpush.bf16.msra.mxu3 %v3951_v37  ;;  %v3946_v4 = vld [vmem:[%s5610_s5 + $0xc0] sm:$0xff]  ;;  %s449_s21 = scvt.s32.f32 %s448_s20 }
  0x21   : > { %s451_s20 = scalar_select %p450_p11, 1, 0 }
  0x23   : > { %590 = vmatpush.bf16.msra.mxu0 %v3882_v5  ;;  %4111 = vmatpush.bf16.msra.mxu1 %v3882_v5  ;;  %v3954_v5 = vld [vmem:[%s5610_s5 + $0x100] sm:$0xff]  ;;  %s452_s23 = scvt.s32.f32 %s451_s20 }
  0x24   : > { %1042 = vmatpush.bf16.msra.mxu2 %v3901_v29  ;;  %4117 = vmatpush.bf16.msra.mxu3 %v3950_v40 }
  0x27   : > { %591 = vmatpush.bf16.msra.mxu0 %v3881_v6  ;;  %4112 = vmatpush.bf16.msra.mxu1 %v3881_v6 }
  0x28   : > { %1043 = vmatpush.bf16.msra.mxu2 %v3900_v30  ;;  %4118 = vmatpush.bf16.msra.mxu3 %v3949_v47 }
  0x2b   : > { %592 = vmatpush.bf16.msra.mxu0 %v3880_v7  ;;  %4113 = vmatpush.bf16.msra.mxu1 %v3880_v7 }
  0x2c   : > { %1044 = vmatpush.bf16.msra.mxu2 %v3899_v31  ;;  %4119 = vmatpush.bf16.msra.mxu3 %v3948_v53 }
  0x2e   : > { %593 = vmatmul.bf16.vlgmr.msra.gmra.mxu0 %v3872_v9  ;;  %618 = vmatmul.bf16.vlgmr.msra.gmra.mxu1 %v3877_v10 }
  0x2f   : > { %919 = vmatpush.bf16.msrb.mxu1 %v3896_v8 }
  0x30   : > { %1045 = vmatpush.bf16.msra.mxu2 %v3898_v32  ;;  %4120 = vmatpush.bf16.msra.mxu3 %v3947_v59 }
  0x33   : > { %920 = vmatpush.bf16.msrb.mxu1 %v3895_v11  ;;  %1046 = vmatmul.bf16.vlgmr.msra.gmra.mxu2 %v3897_v46 }
  0x34   : > { %1277 = vmatpush.bf16.msrb.mxu2 %v3953_v33  ;;  %4121 = vmatpush.bf16.msra.mxu3 %v3946_v4 }
  0x37   : > { %921 = vmatpush.bf16.msrb.mxu1 %v3894_v12 }
  0x38   : > { %1278 = vmatpush.bf16.msrb.mxu2 %v3952_v35 }
  0x3b   : > { %922 = vmatpush.bf16.msrb.mxu1 %v3893_v13 }
  0x3c   : > { %1279 = vmatpush.bf16.msrb.mxu2 %v3951_v37 }
  0x3e   : > { %598 = vmatmul.bf16.gmra.mxu0 %v3873_v15  ;;  %623 = vmatmul.bf16.gmra.mxu1 %v3878_v16 }
  0x3f   : > { %923 = vmatpush.bf16.msrb.mxu1 %v3892_v14 }
  0x40   : > { %1280 = vmatpush.bf16.msrb.mxu2 %v3950_v40 }
  0x43   : > { %924 = vmatpush.bf16.msrb.mxu1 %v3891_v17 }
  0x44   : > { %1281 = vmatpush.bf16.msrb.mxu2 %v3949_v47 }
  0x47   : > { %925 = vmatpush.bf16.msrb.mxu1 %v3890_v18 }
  0x48   : > { %1282 = vmatpush.bf16.msrb.mxu2 %v3948_v53 }
  0x4b   : > { %926 = vmatpush.bf16.msrb.mxu1 %v3889_v19 }
  0x4c   : > { %1283 = vmatpush.bf16.msrb.mxu2 %v3947_v59 }
  0x4e   : > { %603 = vmatmul.bf16.gmra.mxu0 %v3874_v20  ;;  %628 = vmatmul.bf16.gmra.mxu1 %v3879_v21 }
  0x4f   : > { %1391 = vmatpush.bf16.msra.mxu1 %v3961_v34 }
  0x50   : > { %1284 = vmatpush.bf16.msrb.mxu2 %v3946_v4 }
  0x53   : > { %1392 = vmatpush.bf16.msra.mxu1 %v3960_v36 }
  0x57   : > { %1393 = vmatpush.bf16.msra.mxu1 %v3959_v38 }
  0x5b   : > { %1394 = vmatpush.bf16.msra.mxu1 %v3958_v41 }
  0x5e   : > { %608 = vmatmul.bf16.gmra.mxu0 %v3875_v24  ;;  %927 = vmatmul.bf16.vlgmr.msrb.gmra.mxu1 %v3888_v25 }
  0x5f   : > { %1395 = vmatpush.bf16.msra.mxu1 %v3957_v48 }
  0x63   : > { %1396 = vmatpush.bf16.msra.mxu1 %v3956_v54 }
  0x67   : > { %1397 = vmatpush.bf16.msra.mxu1 %v3955_v60 }
  0x6b   : > { %1398 = vmatpush.bf16.msra.mxu1 %v3954_v5  ;;  %v3921_v5 = vld [vmem:[%s5610_s5 + $0x38] sm:$0xff] }
  0x6c   : > { %1650 = vmatpush.bf16.msrb.mxu0 %v3921_v5 }
  0x6e   : > { %613 = vmatmul.bf16.gmra.mxu0 %v3876_v26 }
  0xab   : > { %v594_v42 = vpop.f32.mrf.mxu0  ;;  %v619_v43 = vpop.f32.mrf.mxu1 }
  0xac   : > { %v4566_v44 = vadd.f32 %v4554_v39, %v594_v42  ;;  %v4569_v45 = vadd.f32 %v4554_v39, %v619_v43 }
  0xae   : > { %v634_v49 = vmin.f32 %v4566_v44, 20.0  ;;  %v644_v50 = vmin.f32 %v4569_v45, 20.0  ;;  %vm762_vm0 = vcmp.gt.f32.partialorder %v4566_v44, 20.0  ;;  %vm772_vm1 = vcmp.gt.f32.partialorder %v4569_v45, 20.0 }
  0xb0   : > { %v650_v51 = vmul.f32 1.442695, %v634_v49  ;;  %v670_v52 = vmul.f32 1.442695, %v644_v50 }
  0xb2   : > { %4166 = vpow2.f32 %v650_v51 }
  0xb3   : > { %4168 = vpow2.f32 %v670_v52  ;;  %v596_v55 = vpop.f32.mrf.mxu0  ;;  %v621_v56 = vpop.f32.mrf.mxu1 }
  0xb4   : > { %v4586_v57 = vadd.f32 %v4554_v39, %v596_v55  ;;  %v4589_v58 = vadd.f32 %v4554_v39, %v621_v56 }
  0xb6   : > { %v635_v61 = vmin.f32 %v4586_v57, 20.0  ;;  %v645_v62 = vmin.f32 %v4589_v58, 20.0  ;;  %vm763_vm2 = vcmp.gt.f32.partialorder %v4586_v57, 20.0  ;;  %vm773_vm3 = vcmp.gt.f32.partialorder %v4589_v58, 20.0 }
  0xb8   : > { %v4167_v63 = vpop.eup %4166  ;;  %v652_v0 = vmul.f32 1.442695, %v635_v61  ;;  %v672_v3 = vmul.f32 1.442695, %v645_v62  ;;  %v3969_v62 = vld [vmem:[%s5610_s5 + $0x178] sm:$0xff] }
  0xb9   : > { %v4169_v1 = vpop.eup %4168  ;;  %v682_v2 = vadd.f32 2.0, %v4167_v63  ;;  %1505 = vmatpush.bf16.msra.mxu2 %v3969_v62 }
  0xba   : > { %v692_v6 = vadd.f32 2.0, %v4169_v1  ;;  %4170 = vpow2.f32 %v652_v0 }
  0xbb   : > { %v698_v7 = vmul.f32 %v4167_v63, %v682_v2  ;;  %4172 = vpow2.f32 %v672_v3  ;;  %v599_v8 = vpop.f32.mrf.mxu0  ;;  %v624_v9 = vpop.f32.mrf.mxu1 }
  0xbc   : > { %v708_v10 = vmul.f32 %v4169_v1, %v692_v6  ;;  %v4606_v11 = vadd.f32 %v4554_v39, %v599_v8  ;;  %v4609_v12 = vadd.f32 %v4554_v39, %v624_v9 }
  0xbd   : > { %v714_v13 = vadd.f32 2.0, %v698_v7 }
  0xbe   : > { %v724_v14 = vadd.f32 2.0, %v708_v10  ;;  %v636_v15 = vmin.f32 %v4606_v11, 20.0  ;;  %v646_v16 = vmin.f32 %v4609_v12, 20.0  ;;  %vm764_vm4 = vcmp.gt.f32.partialorder %v4606_v11, 20.0 }
  0xbf   : > { %vm774_vm5 = vcmp.gt.f32.partialorder %v4609_v12, 20.0 }
  0xc0   : > { %v4171_v17 = vpop.eup %4170  ;;  %4174 = vrcp.f32 %v724_v14  ;;  %v654_v18 = vmul.f32 1.442695, %v636_v15  ;;  %v674_v19 = vmul.f32 1.442695, %v646_v16  ;;  %v3968_v14 = vld [vmem:[%s5610_s5 + $0x170] sm:$0xff] }
  0xc1   : > { %v4173_v20 = vpop.eup %4172  ;;  %4176 = vrcp.f32 %v714_v13  ;;  %v683_v21 = vadd.f32 2.0, %v4171_v17  ;;  %1506 = vmatpush.bf16.msra.mxu2 %v3968_v14 }
  0xc2   : > { %v693_v22 = vadd.f32 2.0, %v4173_v20  ;;  %4178 = vpow2.f32 %v654_v18 }
  0xc3   : > { %v699_v23 = vmul.f32 %v4171_v17, %v683_v21  ;;  %4180 = vpow2.f32 %v674_v19  ;;  %v601_v24 = vpop.f32.mrf.mxu0  ;;  %v626_v25 = vpop.f32.mrf.mxu1  ;;  %v3920_v21 = vld [vmem:[%s5610_s5 + $0x30] sm:$0xff] }
  0xc4   : > { %v709_v26 = vmul.f32 %v4173_v20, %v693_v22  ;;  %v4614_v27 = vadd.f32 %v4554_v39, %v601_v24  ;;  %v4617_v29 = vadd.f32 %v4554_v39, %v626_v25  ;;  %1651 = vmatpush.bf16.msrb.mxu0 %v3920_v21 }
  0xc5   : > { %v715_v28 = vadd.f32 2.0, %v699_v23 }
  0xc6   : > { %v4175_v30 = vpop.eup %4174  ;;  %v725_v31 = vadd.f32 2.0, %v709_v26  ;;  %v637_v32 = vmin.f32 %v4614_v27, 20.0  ;;  %v647_v34 = vmin.f32 %v4617_v29, 20.0  ;;  %vm765_vm6 = vcmp.gt.f32.partialorder %v4614_v27, 20.0 }
  0xc7   : > { %v4177_v33 = vpop.eup %4176  ;;  %4182 = vrcp.f32 %v715_v28  ;;  %v756_v36 = vmul.f32 %v4175_v30, %v708_v10  ;;  %vm775_vm7 = vcmp.gt.f32.partialorder %v4617_v29, 20.0 }
  0xc8   : > { %v4179_v35 = vpop.eup %4178  ;;  %4184 = vrcp.f32 %v725_v31  ;;  %v656_v37 = vmul.f32 1.442695, %v637_v32  ;;  %v676_v41 = vmul.f32 1.442695, %v647_v34  ;;  %v746_v42 = vmul.f32 %v4177_v33, %v698_v7  ;;  %v4676_v34 = vld [vmem:[%s5609_s4] ss:$0 sm:$0xff] }
  0xc9   : > { %v4181_v38 = vpop.eup %4180  ;;  %v684_v40 = vadd.f32 2.0, %v4179_v35  ;;  %v788_v49 = vmul.f32 %v756_v36, %v4569_v45 }
  0xca   : > { %v694_v43 = vadd.f32 2.0, %v4181_v38  ;;  %4186 = vpow2.f32 %v656_v37  ;;  %v778_v56 = vmul.f32 %v746_v42, %v4566_v44  ;;  %v3966_v42 = vld [vmem:[%s5610_s5 + $0x160] sm:$0xff] }
  0xcb   : > { %v4621_v46 = vmul.f32 %v4179_v35, %v684_v40  ;;  %4188 = vpow2.f32 %v676_v41  ;;  %v604_v47 = vpop.f32.mrf.mxu0  ;;  %v629_v48 = vpop.f32.mrf.mxu1  ;;  %v804_v2 = vsel %vm772_vm1, %v4569_v45, %v788_v49  ;;  %v3919_v35 = vld [vmem:[%s5610_s5 + $0x28] sm:$0xff] }
  0xcc   : > { %v710_v50 = vmul.f32 %v4181_v38, %v694_v43  ;;  %v4625_v51 = vadd.f32 %v4554_v39, %v604_v47  ;;  %v4628_v52 = vadd.f32 %v4554_v39, %v629_v48  ;;  %v794_v10 = vsel %vm762_vm0, %v4566_v44, %v778_v56  ;;  %1652 = vmatpush.bf16.msrb.mxu0 %v3919_v35 }
  0xcd   : > { %v4183_v53 = vpop.eup %4182  ;;  %v716_v54 = vadd.f32 2.0, %v4621_v46 }
  0xce   : > { %v4185_v55 = vpop.eup %4184  ;;  %v747_v59 = vmul.f32 %v4183_v53, %v699_v23  ;;  %v726_v60 = vadd.f32 2.0, %v710_v50  ;;  %v638_v61 = vmin.f32 %v4625_v51, 20.0  ;;  %v648_v0 = vmin.f32 %v4628_v52, 20.0 }
  0xcf   : > { %v757_v63 = vmul.f32 %v4185_v55, %v709_v26  ;;  %v3967_v26 = vld [vmem:[%s5610_s5 + $0x168] sm:$0xff]  ;;  %v3918_v55 = vld [vmem:[%s5610_s5 + $0x20] sm:$0xff]  ;;  %vm776_vm8 = vcmp.gt.f32.partialorder %v4628_v52, 20.0  ;;  %vm766_vm9 = vcmp.gt.f32.partialorder %v4625_v51, 20.0 }
  0xd0   : > { %v4187_v1 = vpop.eup %4186  ;;  %v779_v3 = vmul.f32 %v747_v59, %v4586_v57  ;;  %4190 = vrcp.f32 %v726_v60  ;;  %v658_v4 = vmul.f32 1.442695, %v638_v61  ;;  %v678_v9 = vmul.f32 1.442695, %v648_v0  ;;  %1507 = vmatpush.bf16.msra.mxu2 %v3967_v26  ;;  %1653 = vmatpush.bf16.msrb.mxu0 %v3918_v55 }
  0xd1   : > { %v4189_v6 = vpop.eup %4188  ;;  %v789_v7 = vmul.f32 %v757_v63, %v4589_v58  ;;  %4192 = vrcp.f32 %v716_v54  ;;  %v685_v8 = vadd.f32 2.0, %v4187_v1 }
  0xd2   : > { %v795_v45 = vsel %vm763_vm2, %v4586_v57, %v779_v3  ;;  %v695_v13 = vadd.f32 2.0, %v4189_v6  ;;  %4194 = vpow2.f32 %v658_v4 }
  0xd3   : > { %v4005_v15 = vpack.c.bf16 %v795_v45, %v794_v10  ;;  %v805_v16 = vsel %vm773_vm3, %v4589_v58, %v789_v7  ;;  %v701_v17 = vmul.f32 %v4187_v1, %v685_v8  ;;  %4196 = vpow2.f32 %v678_v9  ;;  %v606_v18 = vpop.f32.mrf.mxu0  ;;  %v631_v44 = vpop.f32.mrf.mxu1  ;;  %v3965_v1 = vld [vmem:[%s5610_s5 + $0x158] sm:$0xff] }
  0xd4   : > { %v4030_v19 = vpack.c.bf16 %v805_v16, %v804_v2  ;;  %v711_v20 = vmul.f32 %v4189_v6, %v695_v13  ;;  %v4660_v57 = vadd.f32 %v4554_v39, %v606_v18  ;;  %v4666_v23 = vadd.f32 %v4554_v39, %v631_v44  ;;  %1508 = vmatpush.bf16.msra.mxu2 %v3966_v42  ;;  %v3917_v8 = vld [vmem:[%s5610_s5 + $0x18] sm:$0xff]  ;;  %v3964_v16 = vld [vmem:[%s5610_s5 + $0x150] sm:$0xff]  ;;  %v3962_v42 = vld [vmem:[%s5610_s5 + $0x140] sm:$0xff] }
  0xd5   : > { %4006 = vst [vmem:[#allocation2 + $0x38] sm:$0xff] %v4005_v15   ;;  %v717_v22 = vadd.f32 2.0, %v701_v17  ;;  %1654 = vmatpush.bf16.msrb.mxu0 %v3917_v8 }
  0xd6   : > { %v4191_v58 = vpop.eup %4190  ;;  %4096 = vst [vmem:[#allocation2 + $0x30] sm:$0xff] %v4030_v19   ;;  %v727_v24 = vadd.f32 2.0, %v711_v20  ;;  %v639_v25 = vmin.f32 %v4660_v57, 20.0  ;;  %v649_v30 = vmin.f32 %v4666_v23, 20.0  ;;  %vm767_vm10 = vcmp.gt.f32.partialorder %v4660_v57, 20.0 }
  0xd7   : > { %v4193_v28 = vpop.eup %4192  ;;  %4198 = vrcp.f32 %v717_v22  ;;  %v758_v32 = vmul.f32 %v4191_v58, %v710_v50  ;;  %v3916_v58 = vld [vmem:[%s5610_s5 + $0x10] sm:$0xff]  ;;  %vm777_vm11 = vcmp.gt.f32.partialorder %v4666_v23, 20.0 }
  0xd8   : > { %v4195_v31 = vpop.eup %4194  ;;  %4200 = vrcp.f32 %v727_v24  ;;  %v660_v33 = vmul.f32 1.442695, %v639_v25  ;;  %v680_v38 = vmul.f32 1.442695, %v649_v30  ;;  %v748_v40 = vmul.f32 %v4193_v28, %v4621_v46  ;;  %1509 = vmatpush.bf16.msra.mxu2 %v3965_v1  ;;  %v3963_v28 = vld [vmem:[%s5610_s5 + $0x148] sm:$0xff] }
  0xd9   : > { %v4197_v36 = vpop.eup %4196  ;;  %v686_v37 = vadd.f32 2.0, %v4195_v31  ;;  %v790_v49 = vmul.f32 %v758_v32, %v4609_v12  ;;  %1655 = vmatpush.bf16.msrb.mxu0 %v3916_v58 }
  0xda   : > { %v696_v41 = vadd.f32 2.0, %v4197_v36  ;;  %4202 = vpow2.f32 %v660_v33  ;;  %v780_v61 = vmul.f32 %v748_v40, %v4606_v11 }
  0xdb   : > { %v4685_v43 = vmul.f32 %v4195_v31, %v686_v37  ;;  %4204 = vpow2.f32 %v680_v38  ;;  %v609_v47 = vpop.f32.mrf.mxu0  ;;  %v928_v48 = vpop.f32.mrf.mxu1  ;;  %v806_v5 = vsel %vm774_vm5, %v4609_v12, %v790_v49 }
  0xdc   : > { %v4688_v50 = vmul.f32 %v4197_v36, %v696_v41  ;;  %v4691_v53 = vadd.f32 %v4554_v39, %v609_v47  ;;  %v4694_v46 = vadd.f32 %v4676_v34, %v928_v48  ;;  %v4696_v54 = vld [vmem:[#allocation2 + $0x38] sm:$0xff]  ;;  %v796_v14 = vsel %vm764_vm4, %v4606_v11, %v780_v61  ;;  %1510 = vmatpush.bf16.msra.mxu2 %v3964_v16 }
  0xdd   : > { %v4199_v56 = vpop.eup %4198  ;;  %v718_v59 = vadd.f32 2.0, %v4685_v43  ;;  %1285 = vmatmul.bf16.vlgmr.msrb.gmra.mxu2 %v4696_v54  ;;  %1399 = vmatmul.bf16.vlgmr.msra.gmra.mxu1 %v4696_v54 }
  0xde   : > { %v4201_v60 = vpop.eup %4200  ;;  %v749_v62 = vmul.f32 %v4199_v56, %v701_v17  ;;  %v728_v63 = vadd.f32 2.0, %v4688_v50  ;;  %v640_v0 = vmin.f32 %v4691_v53, 20.0  ;;  %v933_v3 = vmin.f32 %v4694_v46, 20.0 }
  0xdf   : > { %v759_v2 = vmul.f32 %v4201_v60, %v711_v20  ;;  %vm949_vm12 = vcmp.gt.f32.partialorder %v4694_v46, 20.0  ;;  %vm768_vm13 = vcmp.gt.f32.partialorder %v4691_v53, 20.0 }
  0xe0   : > { %v4203_v4 = vpop.eup %4202  ;;  %v781_v6 = vmul.f32 %v749_v62, %v4614_v27  ;;  %4206 = vrcp.f32 %v728_v63  ;;  %v662_v7 = vmul.f32 1.442695, %v640_v0  ;;  %v935_v13 = vmul.f32 1.442695, %v933_v3  ;;  %1511 = vmatpush.bf16.msra.mxu2 %v3963_v28 }
  0xe1   : > { %v4205_v9 = vpop.eup %4204  ;;  %v791_v10 = vmul.f32 %v759_v2, %v4617_v29  ;;  %4208 = vrcp.f32 %v718_v59  ;;  %v687_v45 = vadd.f32 2.0, %v4203_v4 }
  0xe2   : > { %v797_v12 = vsel %vm765_vm6, %v4614_v27, %v781_v6  ;;  %v697_v15 = vadd.f32 2.0, %v4205_v9  ;;  %4210 = vpow2.f32 %v662_v7 }
  0xe3   : > { %v4010_v17 = vpack.c.bf16 %v797_v12, %v796_v14  ;;  %v807_v18 = vsel %vm775_vm7, %v4617_v29, %v791_v10  ;;  %v703_v44 = vmul.f32 %v4203_v4, %v687_v45  ;;  %4212 = vpow2.f32 %v935_v13  ;;  %v611_v19 = vpop.f32.mrf.mxu0  ;;  %v930_v20 = vpop.f32.mrf.mxu1 }
  0xe4   : > { %v4035_v11 = vpack.c.bf16 %v807_v18, %v806_v5  ;;  %v713_v21 = vmul.f32 %v4205_v9, %v697_v15  ;;  %v4736_v27 = vadd.f32 %v4554_v39, %v611_v19  ;;  %v4739_v22 = vadd.f32 %v4676_v34, %v930_v20  ;;  %v3915_v34 = vld [vmem:[%s5610_s5 + $0x8] sm:$0xff]  ;;  %1512 = vmatpush.bf16.msra.mxu2 %v3962_v42 }
  0xe5   : > { %4092 = vst [vmem:[#allocation2 + $0x8] sm:$0xff] %v4010_v17   ;;  %v719_v29 = vadd.f32 2.0, %v703_v44  ;;  %1656 = vmatpush.bf16.msrb.mxu0 %v3915_v34 }
  0xe6   : > { %v4207_v24 = vpop.eup %4206  ;;  %4097 = vst [vmem:[#allocation2 + $0x10] sm:$0xff] %v4035_v11   ;;  %v729_v25 = vadd.f32 2.0, %v713_v21  ;;  %v641_v26 = vmin.f32 %v4736_v27, 20.0  ;;  %v934_v31 = vmin.f32 %v4739_v22, 20.0  ;;  %vm950_vm14 = vcmp.gt.f32.partialorder %v4739_v22, 20.0 }
  0xe7   : > { %v4209_v30 = vpop.eup %4208  ;;  %4214 = vrcp.f32 %v719_v29  ;;  %v760_v36 = vmul.f32 %v4207_v24, %v4688_v50  ;;  %vm769_vm15 = vcmp.gt.f32.partialorder %v4736_v27, 20.0 }
  0xe8   : > { %v4211_v32 = vpop.eup %4210  ;;  %4216 = vrcp.f32 %v729_v25  ;;  %v664_v33 = vmul.f32 1.442695, %v641_v26  ;;  %v937_v38 = vmul.f32 1.442695, %v934_v31  ;;  %v750_v40 = vmul.f32 %v4209_v30, %v4685_v43  ;;  %v3914_v43 = vld [vmem:[%s5610_s5] sm:$0xff] }
  0xe9   : > { %v4213_v35 = vpop.eup %4212  ;;  %v688_v37 = vadd.f32 2.0, %v4211_v32  ;;  %v792_v59 = vmul.f32 %v760_v36, %v4628_v52  ;;  %1657 = vmatpush.bf16.msrb.mxu0 %v3914_v43  ;;  %v955_v36 = vstv %s449_s21 }
  0xea   : > { %v939_v41 = vadd.f32 2.0, %v4213_v35  ;;  %4218 = vpow2.f32 %v664_v33  ;;  %v782_v62 = vmul.f32 %v750_v40, %v4625_v51 }
  0xeb   : > { %v4757_v47 = vmul.f32 %v4211_v32, %v688_v37  ;;  %4220 = vpow2.f32 %v937_v38  ;;  %v614_v48 = vpop.f32.mrf.mxu0  ;;  %v808_v7 = vsel %vm776_vm8, %v4628_v52, %v792_v59 }
  0xec   : > { %v941_v49 = vmul.f32 %v4213_v35, %v939_v41  ;;  %v4760_v55 = vadd.f32 %v4554_v39, %v614_v48  ;;  %v4762_v50 = vld [vmem:[#allocation2 + $0x8] sm:$0xff]  ;;  %v798_v10 = vsel %vm766_vm9, %v4625_v51, %v782_v62  ;;  %v3929_v51 = vld [vmem:[%s5610_s5 + $0x78] sm:$0xff] }
  0xed   : > { %v4215_v56 = vpop.eup %4214  ;;  %v720_v60 = vadd.f32 2.0, %v4757_v47  ;;  %1290 = vmatmul.bf16.gmra.mxu2 %v4762_v50  ;;  %1404 = vmatmul.bf16.gmra.mxu1 %v4762_v50 }
  0xee   : > { %v4217_v61 = vpop.eup %4216  ;;  %v751_v63 = vmul.f32 %v4215_v56, %v703_v44  ;;  %v943_v0 = vadd.f32 2.0, %v941_v49  ;;  %v642_v1 = vmin.f32 %v4760_v55, 20.0  ;;  %1747 = vmatpush.bf16.msrb.mxu3 %v3929_v51  ;;  %vm770_vm0 = vcmp.gt.f32.partialorder %v4760_v55, 20.0 }
  0xef   : > { %v761_v2 = vmul.f32 %v4217_v61, %v713_v21 }
  0xf0   : > { %v4219_v3 = vpop.eup %4218  ;;  %v783_v4 = vmul.f32 %v751_v63, %v4660_v57  ;;  %4222 = vrcp.f32 %v943_v0  ;;  %v666_v5 = vmul.f32 1.442695, %v642_v1 }
  0xf1   : > { %v4221_v6 = vpop.eup %4220  ;;  %v793_v8 = vmul.f32 %v761_v2, %v4666_v23  ;;  %4224 = vrcp.f32 %v720_v60  ;;  %v689_v9 = vadd.f32 2.0, %v4219_v3  ;;  %v3926_v60 = vld [vmem:[%s5610_s5 + $0x60] sm:$0xff] }
  0xf2   : > { %v799_v45 = vsel %vm767_vm10, %v4660_v57, %v783_v4  ;;  %v940_v13 = vadd.f32 2.0, %v4221_v6  ;;  %4226 = vpow2.f32 %v666_v5  ;;  %v3925_v5 = vld [vmem:[%s5610_s5 + $0x58] sm:$0xff] }
  0xf3   : > { %v4015_v14 = vpack.c.bf16 %v799_v45, %v798_v10  ;;  %v809_v12 = vsel %vm777_vm11, %v4666_v23, %v793_v8  ;;  %v705_v15 = vmul.f32 %v4219_v3, %v689_v9  ;;  %v616_v16 = vpop.f32.mrf.mxu0  ;;  %v3937_v9 = vld [vmem:[%s5610_s5 + $0xb8] sm:$0xff]  ;;  %v3936_v45 = vld [vmem:[%s5610_s5 + $0xb0] sm:$0xff] }
  0xf4   : > { %v4040_v17 = vpack.c.bf16 %v809_v12, %v808_v7  ;;  %v942_v18 = vmul.f32 %v4221_v6, %v940_v13  ;;  %v4787_v52 = vadd.f32 %v4554_v39, %v616_v16  ;;  %v3928_v39 = vld [vmem:[%s5610_s5 + $0x70] sm:$0xff]  ;;  %v4846_v10 = vld [vmem:[#allocation2 + $0x38] sm:$0xff]  ;;  %1844 = vmatpush.bf16.msrb.mxu1 %v3937_v9  ;;  %v3923_v13 = vld [vmem:[%s5610_s5 + $0x48] sm:$0xff] }
  0xf5   : > { %4093 = vst [vmem:[#allocation2 + $0x20] sm:$0xff] %v4015_v14   ;;  %v721_v44 = vadd.f32 2.0, %v705_v15  ;;  %1748 = vmatpush.bf16.msrb.mxu3 %v3928_v39  ;;  %v3934_v14 = vld [vmem:[%s5610_s5 + $0xa0] sm:$0xff]  ;;  %v4864_v12 = vld [vmem:[#allocation2 + $0x30] sm:$0xff]  ;;  %v4872_v16 = vld [vmem:[#allocation2 + $0x8] sm:$0xff] }
  0xf6   : > { %v4223_v57 = vpop.eup %4222  ;;  %4098 = vst [vmem:[#allocation2 + $0x28] sm:$0xff] %v4040_v17   ;;  %v944_v19 = vadd.f32 2.0, %v942_v18  ;;  %v643_v20 = vmin.f32 %v4787_v52, 20.0  ;;  %vm771_vm1 = vcmp.gt.f32.partialorder %v4787_v52, 20.0  ;;  %v4164_v17 = vld [vmem:[%s5609_s4] ss:$0 sm:$0xff] }
  0xf7   : > { %v4225_v23 = vpop.eup %4224  ;;  %v947_v11 = vmul.f32 %v4223_v57, %v941_v49  ;;  %4228 = vrcp.f32 %v721_v44  ;;  %v3922_v44 = vld [vmem:[%s5610_s5 + $0x40] sm:$0xff]  ;;  %v3931_v57 = vld [vmem:[%s5610_s5 + $0x88] sm:$0xff] }
  0xf8   : > { %v4227_v21 = vpop.eup %4226  ;;  %4230 = vrcp.f32 %v944_v19  ;;  %v668_v58 = vmul.f32 1.442695, %v643_v20  ;;  %v752_v24 = vmul.f32 %v4225_v23, %v4757_v47  ;;  %v3927_v47 = vld [vmem:[%s5610_s5 + $0x68] sm:$0xff]  ;;  %1845 = vmatpush.bf16.msrb.mxu1 %v3936_v45  ;;  %v3930_v39 = vld [vmem:[%s5610_s5 + $0x80] sm:$0xff] }
  0xf9   : > { %v690_v29 = vadd.f32 2.0, %v4227_v21  ;;  %v951_v25 = vmul.f32 %v947_v11, %v4694_v46  ;;  %1749 = vmatpush.bf16.msrb.mxu3 %v3927_v47  ;;  %v3979_v9 = vld [vmem:[%s5610_s5 + $0x188] sm:$0xff] }
  0xfa   : > { %4232 = vpow2.f32 %v668_v58  ;;  %v784_v33 = vmul.f32 %v752_v24, %v4691_v53 }
  0xfb   : > { %v706_v26 = vmul.f32 %v4227_v21, %v690_v29  ;;  %v953_v35 = vsel %vm949_vm12, %v4694_v46, %v951_v25  ;;  %v4890_v21 = vld [vmem:[#allocation2 + $0x10] sm:$0xff]  ;;  %v3985_v29 = vld [vmem:[%s5610_s5 + $0x1b8] sm:$0xff] }
  0xfc   : > { %v4801_v28 = vld [vmem:[#allocation2 + $0x20] sm:$0xff]  ;;  %v800_v46 = vsel %vm768_vm13, %v4691_v53, %v784_v33  ;;  %v956_v48 = vmul.f32 %v955_v36, %v953_v35  ;;  %2023 = vmatpush.bf16.msrb.mxu2 %v3985_v29 }
  0xfd   : > { %v4229_v30 = vpop.eup %4228  ;;  %v722_v31 = vadd.f32 2.0, %v706_v26  ;;  %1295 = vmatmul.bf16.gmra.mxu2 %v4801_v28  ;;  %1409 = vmatmul.bf16.gmra.mxu1 %v4801_v28 }
  0xfe   : > { %v4231_v32 = vpop.eup %4230  ;;  %v753_v34 = vmul.f32 %v4229_v30, %v705_v15  ;;  %1750 = vmatpush.bf16.msrb.mxu3 %v3926_v60  ;;  %v3933_v15 = vld [vmem:[%s5610_s5 + $0x98] sm:$0xff]  ;;  %v1074_v60 = vstv %s452_s23 }
  0xff   : > { %v948_v37 = vmul.f32 %v4231_v32, %v942_v18  ;;  %4234 = vrcp.f32 %v722_v31  ;;  %v1047_v18 = vpop.f32.mrf.mxu2  ;;  %v3993_v32 = vld [vmem:[%s5610_s5 + $0x1f8] sm:$0xff] }
 0x100   : > { %v4233_v38 = vpop.eup %4232  ;;  %v785_v40 = vmul.f32 %v753_v34, %v4736_v27  ;;  %v1048_v51 = vadd.f32 %v4164_v17, %v1047_v18  ;;  %2137 = vmatpush.bf16.msra.mxu0 %v3993_v32  ;;  %v3997_v18 = vld [vmem:[%s5610_s5 + $0x218] sm:$0xff] }
 0x101   : > { %v952_v41 = vmul.f32 %v948_v37, %v4739_v22  ;;  %v691_v42 = vadd.f32 2.0, %v4233_v38 }
 0x102   : > { %v801_v49 = vsel %vm769_vm15, %v4736_v27, %v785_v40  ;;  %1751 = vmatpush.bf16.msrb.mxu3 %v3925_v5  ;;  %v1052_v19 = vmin.f32 %v1048_v51, 20.0  ;;  %vm1068_vm2 = vcmp.gt.f32.partialorder %v1048_v51, 20.0 }
 0x103   : > { %v4020_v43 = vpack.c.bf16 %v801_v49, %v800_v46  ;;  %v954_v56 = vsel %vm950_vm14, %v4739_v22, %v952_v41  ;;  %v707_v59 = vmul.f32 %v4233_v38, %v691_v42  ;;  %v3984_v38 = vld [vmem:[%s5610_s5 + $0x1b0] sm:$0xff]  ;;  %v4911_v41 = vld [vmem:[#allocation2 + $0x28] sm:$0xff] }
 0x104   : > { %v957_v61 = vmul.f32 %v955_v36, %v954_v56  ;;  %v1054_v20 = vmul.f32 1.442695, %v1052_v19  ;;  %2024 = vmatpush.bf16.msrb.mxu2 %v3984_v38  ;;  %v4000_v46 = vld [vmem:[%s5610_s5 + $0x230] sm:$0xff]  ;;  %v3983_v56 = vld [vmem:[%s5610_s5 + $0x1a8] sm:$0xff] }
 0x105   : > { %4094 = vst [vmem:[#allocation2 + $0x18] sm:$0xff] %v4020_v43   ;;  %v723_v62 = vadd.f32 2.0, %v707_v59  ;;  %v4235_v0 = vpop.eup %4234  ;;  %v3992_v43 = vld [vmem:[%s5610_s5 + $0x1f0] sm:$0xff] }
 0x106   : > { %v4045_v63 = vpack.c.bf16 %v957_v61, %v956_v48  ;;  %v754_v53 = vmul.f32 %v4235_v0, %v706_v26  ;;  %v4898_v26 = vld [vmem:[#allocation2 + $0x20] sm:$0xff]  ;;  %2138 = vmatpush.bf16.msra.mxu0 %v3992_v43 }
 0x107   : > { %4236 = vrcp.f32 %v723_v62  ;;  %v1049_v23 = vpop.f32.mrf.mxu2 }
 0x108   : > { %4046 = vst [vmem:[#allocation2] sm:$0xff] %v4045_v63   ;;  %v786_v22 = vmul.f32 %v754_v53, %v4760_v55  ;;  %4238 = vpow2.f32 %v1054_v20  ;;  %v1050_v11 = vadd.f32 %v4164_v17, %v1049_v23  ;;  %2025 = vmatpush.bf16.msrb.mxu2 %v3983_v56  ;;  %v3991_v53 = vld [vmem:[%s5610_s5 + $0x1e8] sm:$0xff]  ;;  %v3996_v20 = vld [vmem:[%s5610_s5 + $0x210] sm:$0xff] }
 0x10a   : > { %v802_v6 = vsel %vm770_vm0, %v4760_v55, %v786_v22  ;;  %v3924_v55 = vld [vmem:[%s5610_s5 + $0x50] sm:$0xff]  ;;  %v1053_v58 = vmin.f32 %v1050_v11, 20.0  ;;  %vm1069_vm3 = vcmp.gt.f32.partialorder %v1050_v11, 20.0  ;;  %2139 = vmatpush.bf16.msra.mxu0 %v3991_v53 }
 0x10b   : > { %1752 = vmatpush.bf16.msrb.mxu3 %v3924_v55  ;;  %v3987_v55 = vld [vmem:[%s5610_s5 + $0x1c8] sm:$0xff] }
 0x10c   : > { %v4821_v1 = vld [vmem:[#allocation2 + $0x18] sm:$0xff]  ;;  %v1056_v24 = vmul.f32 1.442695, %v1053_v58 }
 0x10d   : > { %v4237_v27 = vpop.eup %4236  ;;  %1300 = vmatmul.bf16.vlgmr.msra.gmra.mxu3 %v4821_v1  ;;  %1414 = vmatmul.bf16.gmra.mxu1 %v4821_v1  ;;  %v4916_v47 = vld [vmem:[#allocation2 + $0x18] sm:$0xff] }
 0x10e   : > { %v755_v2 = vmul.f32 %v4237_v27, %v707_v59  ;;  %1513 = vmatmul.bf16.vlgmr.msra.gmra.mxu2 %v4696_v54  ;;  %v4239_v25 = vpop.eup %4238  ;;  %4240 = vpow2.f32 %v1056_v24  ;;  %v3982_v27 = vld [vmem:[%s5610_s5 + $0x1a0] sm:$0xff] }
 0x10f   : > { %v4827_v3 = vld [vmem:[#allocation2] sm:$0xff]  ;;  %1753 = vmatpush.bf16.msrb.mxu3 %v3923_v13  ;;  %v1058_v30 = vadd.f32 2.0, %v4239_v25  ;;  %2026 = vmatpush.bf16.msrb.mxu2 %v3982_v27 }
 0x110   : > { %v787_v4 = vmul.f32 %v755_v2, %v4787_v52  ;;  %1658 = vmatmul.bf16.vlgmr.msrb.gmra.mxu0 %v4827_v3  ;;  %v3990_v2 = vld [vmem:[%s5610_s5 + $0x1e0] sm:$0xff] }
 0x111   : > { %v1060_v31 = vmul.f32 %v4239_v25, %v1058_v30  ;;  %2140 = vmatpush.bf16.msra.mxu0 %v3990_v2  ;;  %v3978_v13 = vld [vmem:[%s5610_s5 + $0x180] sm:$0xff] }
 0x112   : > { %v803_v7 = vsel %vm771_vm1, %v4787_v52, %v787_v4  ;;  %v3932_v52 = vld [vmem:[%s5610_s5 + $0x90] sm:$0xff]  ;;  %v3981_v4 = vld [vmem:[%s5610_s5 + $0x198] sm:$0xff] }
 0x113   : > { %v4025_v8 = vpack.c.bf16 %v803_v7, %v802_v6  ;;  %1754 = vmatpush.bf16.msrb.mxu3 %v3922_v44  ;;  %v1062_v33 = vadd.f32 2.0, %v1060_v31  ;;  %v3999_v6 = vld [vmem:[%s5610_s5 + $0x228] sm:$0xff]  ;;  %2027 = vmatpush.bf16.msrb.mxu2 %v3981_v4  ;;  %v3989_v7 = vld [vmem:[%s5610_s5 + $0x1d8] sm:$0xff] }
 0x114   : > { %v4241_v34 = vpop.eup %4240 }
 0x115   : > { %4095 = vst [vmem:[#allocation2 + $0x48] sm:$0xff] %v4025_v8   ;;  %4242 = vrcp.f32 %v1062_v33  ;;  %v1059_v35 = vadd.f32 2.0, %v4241_v34  ;;  %v3980_v8 = vld [vmem:[%s5610_s5 + $0x190] sm:$0xff]  ;;  %2141 = vmatpush.bf16.msra.mxu0 %v3989_v7 }
 0x117   : > { %v1061_v36 = vmul.f32 %v4241_v34, %v1059_v35  ;;  %2028 = vmatpush.bf16.msrb.mxu2 %v3980_v8 }
 0x119   : > { %v1063_v37 = vadd.f32 2.0, %v1061_v36 }
 0x11b   : > { %v4243_v40 = vpop.eup %4242  ;;  %4244 = vrcp.f32 %v1063_v37  ;;  %2029 = vmatpush.bf16.msrb.mxu2 %v3979_v9 }
 0x11c   : > { %v4838_v54 = vld [vmem:[#allocation2 + $0x48] sm:$0xff]  ;;  %v1066_v42 = vmul.f32 %v4243_v40, %v1060_v31  ;;  %v5030_v40 = vld [vmem:[#allocation2 + $0x18] sm:$0xff] }
 0x11d   : > { %1305 = vmatmul.bf16.gmra.mxu3 %v4838_v54  ;;  %1419 = vmatmul.bf16.gmra.mxu1 %v4838_v54  ;;  %v4943_v5 = vld [vmem:[#allocation2 + $0x48] sm:$0xff] }
 0x11e   : > { %1518 = vmatmul.bf16.gmra.mxu2 %v4762_v50  ;;  %v3935_v50 = vld [vmem:[%s5610_s5 + $0xa8] sm:$0xff]  ;;  %v1070_v48 = vmul.f32 %v1066_v42, %v1048_v51 }
 0x11f   : > { %1846 = vmatpush.bf16.msrb.mxu1 %v3935_v50  ;;  %2030 = vmatpush.bf16.msrb.mxu2 %v3978_v13  ;;  %v3986_v50 = vld [vmem:[%s5610_s5 + $0x1c0] sm:$0xff]  ;;  %v3995_v31 = vld [vmem:[%s5610_s5 + $0x208] sm:$0xff] }
 0x120   : > { %1663 = vmatmul.bf16.gmra.mxu0 %v4846_v10  ;;  %v1072_v59 = vsel %vm1068_vm2, %v1048_v51, %v1070_v48 }
 0x121   : > { %v4245_v49 = vpop.eup %4244  ;;  %v1075_v63 = vmul.f32 %v1074_v60, %v1072_v59 }
 0x122   : > { %v1067_v61 = vmul.f32 %v4245_v49, %v1061_v36 }
 0x123   : > { %1847 = vmatpush.bf16.msrb.mxu1 %v3934_v14  ;;  %v4973_v14 = vld [vmem:[#allocation2 + $0x30] sm:$0xff] }
 0x124   : > { %v1071_v62 = vmul.f32 %v1067_v61, %v1050_v11 }
 0x126   : > { %v1073_v0 = vsel %vm1069_vm3, %v1050_v11, %v1071_v62  ;;  %v5051_v62 = vld [vmem:[#allocation2 + $0x48] sm:$0xff] }
 0x127   : > { %1848 = vmatpush.bf16.msrb.mxu1 %v3933_v15 }
 0x12b   : > { %1849 = vmatpush.bf16.msrb.mxu1 %v3932_v52 }
 0x12d   : > { %1310 = vmatmul.bf16.gmra.mxu3 %v4864_v12  ;;  %1424 = vmatmul.bf16.gmra.mxu1 %v4864_v12 }
 0x12e   : > { %1523 = vmatmul.bf16.gmra.mxu2 %v4801_v28  ;;  %v4001_v28 = vld [vmem:[%s5610_s5 + $0x238] sm:$0xff] }
 0x12f   : > { %1850 = vmatpush.bf16.msrb.mxu1 %v3931_v57  ;;  %2251 = vmatpush.bf16.msra.mxu3 %v4001_v28  ;;  %v4990_v57 = vld [vmem:[#allocation2 + $0x8] sm:$0xff] }
 0x130   : > { %1668 = vmatmul.bf16.gmra.mxu0 %v4872_v16 }
 0x133   : > { %1851 = vmatpush.bf16.msrb.mxu1 %v3930_v39  ;;  %2252 = vmatpush.bf16.msra.mxu3 %v4000_v46 }
 0x137   : > { %2253 = vmatpush.bf16.msra.mxu3 %v3999_v6  ;;  %v5067_v6 = vld [vmem:[#allocation2 + $0x30] sm:$0xff] }
 0x13d   : > { %1315 = vmatmul.bf16.gmra.mxu3 %v4890_v21  ;;  %1429 = vmatmul.bf16.gmra.mxu1 %v4890_v21 }
 0x13e   : > { %1528 = vmatmul.bf16.gmra.mxu2 %v4821_v1  ;;  %v1076_v1 = vmul.f32 %v1074_v60, %v1073_v0 }
 0x140   : > { %1673 = vmatmul.bf16.gmra.mxu0 %v4898_v26  ;;  %v4050_v22 = vpack.c.bf16 %v1076_v1, %v1075_v63 }
 0x142   : > { %4051 = vst [vmem:[#allocation2 + $0x40] sm:$0xff] %v4050_v22  }
 0x14d   : > { %1320 = vmatmul.bf16.gmra.mxu3 %v4911_v41  ;;  %1434 = vmatmul.bf16.gmra.mxu1 %v4911_v41 }
 0x14e   : > { %1533 = vmatmul.bf16.gmra.mxu2 %v4838_v54  ;;  %v3988_v54 = vld [vmem:[%s5610_s5 + $0x1d0] sm:$0xff] }
 0x14f   : > { %2142 = vmatpush.bf16.msra.mxu0 %v3988_v54 }
 0x150   : > { %1678 = vmatmul.bf16.gmra.mxu0 %v4916_v47 }
 0x153   : > { %2143 = vmatpush.bf16.msra.mxu0 %v3987_v55 }
 0x157   : > { %2144 = vmatpush.bf16.msra.mxu0 %v3986_v50 }
 0x15a   : > { %v4988_v44 = vpop.f32.mrf.mxu1 }
 0x15d   : > { %1755 = vmatmul.bf16.vlgmr.msrb.gmra.mxu3 %v4827_v3  ;;  %1852 = vmatmul.bf16.vlgmr.msrb.gmra.mxu1 %v4827_v3 }
 0x15e   : > { %1538 = vmatmul.bf16.gmra.mxu2 %v4864_v12  ;;  %v3998_v12 = vld [vmem:[%s5610_s5 + $0x220] sm:$0xff] }
 0x15f   : > { %2254 = vmatpush.bf16.msra.mxu3 %v3998_v12 }
 0x160   : > { %1683 = vmatmul.bf16.gmra.mxu0 %v4943_v5  ;;  %v1286_v3 = vpop.f32.mrf.mxu2 }
 0x162   : > { %v5001_v11 = vpop.f32.mrf.mxu1 }
 0x163   : > { %2255 = vmatpush.bf16.msra.mxu3 %v3997_v18 }
 0x167   : > { %2256 = vmatpush.bf16.msra.mxu3 %v3996_v20  ;;  %v5100_v20 = vld [vmem:[#allocation2 + $0x28] sm:$0xff] }
 0x168   : > { %v1288_v45 = vpop.f32.mrf.mxu2 }
 0x16a   : > { %v5009_v25 = vpop.f32.mrf.mxu1 }
 0x16b   : > { %2257 = vmatpush.bf16.msra.mxu3 %v3995_v31 }
 0x16d   : > { %1760 = vmatmul.bf16.gmra.mxu3 %v4846_v10  ;;  %1857 = vmatmul.bf16.gmra.mxu1 %v4846_v10  ;;  %v4982_v10 = vld [vmem:[#allocation2 + $0x10] sm:$0xff] }
 0x16e   : > { %1543 = vmatmul.bf16.gmra.mxu2 %v4890_v21 }
 0x170   : > { %1688 = vmatmul.bf16.gmra.mxu0 %v4973_v14  ;;  %v1291_v15 = vpop.f32.mrf.mxu2 }
 0x172   : > { %v5024_v34 = vpop.f32.mrf.mxu1 }
 0x178   : > { %v1293_v17 = vpop.f32.mrf.mxu2 }
 0x17a   : > { %v5040_v46 = vpop.f32.mrf.mxu1 }
 0x17d   : > { %1765 = vmatmul.bf16.gmra.mxu3 %v4872_v16  ;;  %1862 = vmatmul.bf16.gmra.mxu1 %v4872_v16 }
 0x17e   : > { %1548 = vmatmul.bf16.gmra.mxu2 %v4911_v41 }
 0x180   : > { %1693 = vmatmul.bf16.gmra.mxu0 %v4982_v10  ;;  %v1296_v52 = vpop.f32.mrf.mxu2 }
 0x182   : > { %v5047_v60 = vpop.f32.mrf.mxu1 }
 0x188   : > { %v1298_v51 = vpop.f32.mrf.mxu2 }
 0x18a   : > { %v5061_v27 = vpop.f32.mrf.mxu1 }
 0x18d   : > { %v1659_v19 = vpop.f32.mrf.mxu0  ;;  %1770 = vmatmul.bf16.gmra.mxu3 %v4898_v26  ;;  %1867 = vmatmul.bf16.gmra.mxu1 %v4898_v26  ;;  %v5011_v26 = vld [vmem:[#allocation2 + $0x20] sm:$0xff] }
 0x18e   : > { %v4994_v16 = vadd.f32 %v1659_v19, %v1286_v3  ;;  %2031 = vmatmul.bf16.vlgmr.msrb.gmra.mxu2 %v4990_v57 }
 0x190   : > { %2145 = vmatmul.bf16.vlgmr.msra.gmra.mxu0 %v4990_v57  ;;  %v1301_v23 = vpop.f32.mrf.mxu3 }
 0x191   : > { %v5003_v39 = vpop.f32.mrf.mxu2 }
 0x192   : > { %v5069_v7 = vpop.f32.mrf.mxu1 }
 0x195   : > { %v1661_v21 = vpop.f32.mrf.mxu0 }
 0x196   : > { %v5005_v58 = vadd.f32 %v1661_v21, %v1288_v45 }
 0x198   : > { %v1303_v29 = vpop.f32.mrf.mxu3 }
 0x199   : > { %v5007_v24 = vpop.f32.mrf.mxu2 }
 0x19d   : > { %v1664_v28 = vpop.f32.mrf.mxu0  ;;  %1775 = vmatmul.bf16.gmra.mxu3 %v4916_v47  ;;  %1872 = vmatmul.bf16.gmra.mxu1 %v4916_v47  ;;  %v3994_v47 = vld [vmem:[%s5610_s5 + $0x200] sm:$0xff] }
 0x19e   : > { %v5015_v30 = vadd.f32 %v1664_v28, %v1291_v15  ;;  %2036 = vmatmul.bf16.gmra.mxu2 %v5011_v26  ;;  %2258 = vmatpush.bf16.msra.mxu3 %v3994_v47 }
 0x1a0   : > { %2150 = vmatmul.bf16.gmra.mxu0 %v5011_v26  ;;  %v1306_v32 = vpop.f32.mrf.mxu3 }
 0x1a1   : > { %v5022_v33 = vpop.f32.mrf.mxu2 }
 0x1a5   : > { %v1666_v35 = vpop.f32.mrf.mxu0 }
 0x1a6   : > { %v5026_v36 = vadd.f32 %v1666_v35, %v1293_v17 }
 0x1a8   : > { %v1308_v37 = vpop.f32.mrf.mxu3 }
 0x1a9   : > { %v5028_v38 = vpop.f32.mrf.mxu2 }
 0x1ad   : > { %v1669_v41 = vpop.f32.mrf.mxu0  ;;  %1780 = vmatmul.bf16.gmra.mxu3 %v4943_v5  ;;  %1877 = vmatmul.bf16.gmra.mxu1 %v4943_v5 }
 0x1ae   : > { %v5034_v42 = vadd.f32 %v1669_v41, %v1296_v52  ;;  %2041 = vmatmul.bf16.gmra.mxu2 %v5030_v40 }
 0x1b0   : > { %2155 = vmatmul.bf16.gmra.mxu0 %v5030_v40  ;;  %v1311_v48 = vpop.f32.mrf.mxu3 }
 0x1b1   : > { %v5043_v49 = vpop.f32.mrf.mxu2 }
 0x1b5   : > { %v1671_v43 = vpop.f32.mrf.mxu0 }
 0x1b6   : > { %v5045_v56 = vadd.f32 %v1671_v43, %v1298_v51 }
 0x1b8   : > { %v1313_v59 = vpop.f32.mrf.mxu3 }
 0x1b9   : > { %v5049_v61 = vpop.f32.mrf.mxu2 }
 0x1bd   : > { %v1674_v63 = vpop.f32.mrf.mxu0  ;;  %1785 = vmatmul.bf16.gmra.mxu3 %v4973_v14  ;;  %1882 = vmatmul.bf16.gmra.mxu1 %v4973_v14  ;;  %v5085_v14 = vld [vmem:[#allocation2 + $0x10] sm:$0xff] }
 0x1be   : > { %v5055_v0 = vadd.f32 %v1674_v63, %v1301_v23  ;;  %2046 = vmatmul.bf16.gmra.mxu2 %v5051_v62 }
 0x1c0   : > { %2160 = vmatmul.bf16.gmra.mxu0 %v5051_v62  ;;  %v1316_v53 = vpop.f32.mrf.mxu3 }
 0x1c1   : > { %v5059_v1 = vpop.f32.mrf.mxu2 }
 0x1c5   : > { %v1676_v22 = vpop.f32.mrf.mxu0 }
 0x1c6   : > { %v5063_v2 = vadd.f32 %v1676_v22, %v1303_v29 }
 0x1c8   : > { %v1318_v4 = vpop.f32.mrf.mxu3 }
 0x1c9   : > { %v5065_v5 = vpop.f32.mrf.mxu2 }
 0x1ca   : > { %5615 = vst [vmem:[#allocation3_spill] sm:$0xff] %v5065_v5 }
 0x1cd   : > { %v1679_v3 = vpop.f32.mrf.mxu0  ;;  %1790 = vmatmul.bf16.gmra.mxu3 %v4982_v10  ;;  %1887 = vmatmul.bf16.gmra.mxu1 %v4982_v10 }
 0x1ce   : > { %v5073_v8 = vadd.f32 %v1679_v3, %v1306_v32  ;;  %2051 = vmatmul.bf16.gmra.mxu2 %v5067_v6 }
 0x1d0   : > { %2165 = vmatmul.bf16.gmra.mxu0 %v5067_v6  ;;  %v1321_v54 = vpop.f32.mrf.mxu3 }
 0x1d1   : > { %v5077_v9 = vpop.f32.mrf.mxu2 }
 0x1d2   : > { %5616 = vst [vmem:[#allocation4_spill] sm:$0xff] %v5077_v9 }
 0x1d5   : > { %v1681_v55 = vpop.f32.mrf.mxu0 }
 0x1d6   : > { %v5079_v45 = vadd.f32 %v1681_v55, %v1308_v37 }
 0x1d8   : > { %v5081_v13 = vpop.f32.mrf.mxu3 }
 0x1d9   : > { %v5083_v50 = vpop.f32.mrf.mxu2 }
 0x1da   : > { %5617 = vst [vmem:[#allocation5_spill] sm:$0xff] %v5083_v50 }
 0x1dd   : > { %v1684_v12 = vpop.f32.mrf.mxu0  ;;  %2259 = vmatmul.bf16.vlgmr.msra.gmra.mxu3 %v4990_v57  ;;  %v5103_v57 = vpop.f32.mrf.mxu1 }
 0x1de   : > { %v5088_v15 = vadd.f32 %v1684_v12, %v1311_v48  ;;  %2056 = vmatmul.bf16.gmra.mxu2 %v5085_v14 }
 0x1e0   : > { %2170 = vmatmul.bf16.gmra.mxu0 %v5085_v14  ;;  %v5092_v17 = vpop.f32.mrf.mxu3 }
 0x1e1   : > { %v5094_v10 = vpop.f32.mrf.mxu2 }
 0x1e2   : > { %5618 = vst [vmem:[#allocation6_spill] sm:$0xff] %v5094_v10 }
 0x1e5   : > { %v1686_v18 = vpop.f32.mrf.mxu0  ;;  %v5113_v35 = vpop.f32.mrf.mxu1 }
 0x1e6   : > { %v5096_v52 = vadd.f32 %v1686_v18, %v1313_v59  ;;  %v2348_v18 = vlaneseq }
 0x1e8   : > { %v1758_v51 = vpop.f32.mrf.mxu3 }
 0x1e9   : > { %v5098_v19 = vpop.f32.mrf.mxu2 }
 0x1ea   : > { %5619 = vst [vmem:[#allocation7_spill] sm:$0xff] %v5098_v19 }
 0x1ed   : > { %v1689_v23 = vpop.f32.mrf.mxu0  ;;  %2264 = vmatmul.bf16.gmra.mxu3 %v5011_v26  ;;  %v5117_v26 = vld [vmem:[#allocation2 + $0x40] sm:$0xff]  ;;  %v5126_v63 = vpop.f32.mrf.mxu1 }
 0x1ee   : > { %v5105_v21 = vadd.f32 %v1689_v23, %v1316_v53  ;;  %2061 = vmatmul.bf16.gmra.mxu2 %v5100_v20 }
 0x1f0   : > { %2175 = vmatmul.bf16.gmra.mxu0 %v5100_v20  ;;  %v1761_v29 = vpop.f32.mrf.mxu3 }
 0x1f1   : > { %v5109_v28 = vpop.f32.mrf.mxu2 }
 0x1f2   : > { %5620 = vst [vmem:[#allocation8_spill] sm:$0xff] %v5109_v28  ;;  %v1759_v28 = vadd.f32 %v1758_v51, %v5001_v11 }
 0x1f5   : > { %v1691_v31 = vpop.f32.mrf.mxu0  ;;  %v5134_v3 = vpop.f32.mrf.mxu1 }
 0x1f6   : > { %v5111_v32 = vadd.f32 %v1691_v31, %v1318_v4 }
 0x1f8   : > { %v1763_v37 = vpop.f32.mrf.mxu3 }
 0x1f9   : > { %v5115_v41 = vpop.f32.mrf.mxu2 }
 0x1fa   : > { %5621 = vst [vmem:[#allocation9_spill] sm:$0xff] %v5115_v41 }
 0x1fd   : > { %v1694_v47 = vpop.f32.mrf.mxu0  ;;  %2269 = vmatmul.bf16.gmra.mxu3 %v5030_v40  ;;  %v5144_v31 = vpop.f32.mrf.mxu1 }
 0x1fe   : > { %v5120_v48 = vadd.f32 %v1694_v47, %v1321_v54  ;;  %2066 = vmatmul.bf16.gmra.mxu2 %v5117_v26  ;;  %v5146_v47 = vshrl.u32 %v2348_v18, 7 }
 0x200   : > { %2180 = vmatmul.bf16.gmra.mxu0 %v5117_v26  ;;  %v1766_v43 = vpop.f32.mrf.mxu3  ;;  %vm2605_vm4 = vcmp.lt.s32.totalorder %v5146_v47, 1  ;;  %vm2702_vm11 = vcmp.lt.s32.totalorder %v5146_v47, 7 }
 0x201   : > { %v5124_v59 = vpop.f32.mrf.mxu2 }
 0x202   : > { %5622 = vst [vmem:[#allocation10_spill] sm:$0xff] %v5124_v59 }
 0x205   : > { %v5128_v53 = vpop.f32.mrf.mxu0 }
 0x208   : > { %v5130_v22 = vpop.f32.mrf.mxu3 }
 0x209   : > { %v5132_v4 = vpop.f32.mrf.mxu2 }
 0x20a   : > { %5623 = vst [vmem:[#allocation11_spill] sm:$0xff] %v5132_v4 }
 0x20d   : > { %v5136_v40 = vpop.f32.mrf.mxu0  ;;  %2274 = vmatmul.bf16.gmra.mxu3 %v5051_v62 }
 0x20e   : > { %5624 = vst [vmem:[#allocation12_spill] sm:$0xff] %v5136_v40 }
 0x210   : > { %v5139_v54 = vpop.f32.mrf.mxu3 }
 0x211   : > { %v2032_v55 = vpop.f32.mrf.mxu2 }
 0x212   : > { %v5142_v12 = vadd.f32 %v2032_v55, %v4994_v16  ;;  %v2351_v16 = vadd.s32 16, %v5146_v47 }
 0x214   : > { %5625 = vst [vmem:[#allocation13_spill] sm:$0xff] %v5142_v12  ;;  %v5613_v62 = vrot.slane %v5142_v12, 7  ;;  %v2383_v51 = vand.u32 15, %v2351_v16 }
 0x215   : > { %v2148_v23 = vpop.f32.mrf.mxu0 }
 0x216   : > { %v2317_v55 = vadd.f32 %v2148_v23, %v1759_v28  ;;  %v1762_v28 = vadd.f32 %v1761_v29, %v5009_v25  ;;  %vm2559_vm5 = vcmp.ne.s32.totalorder %v2383_v51, 0  ;;  %v2353_v29 = vadd.s32 32, %v5146_v47 }
 0x218   : > { %v5148_v59 = vpop.f32.mrf.mxu3 }
 0x219   : > { %v2034_v4 = vpop.f32.mrf.mxu2 }
 0x21a   : > { %v2301_v41 = vadd.f32 %v2034_v4, %v5005_v58  ;;  %v5162_v58 = vpop.f32.mrf.mxu1 }
 0x21c   : > { %v2590_v19 = vrot.slane %v2301_v41, 7 }
 0x21d   : > { %v2151_v10 = vpop.f32.mrf.mxu0  ;;  %2279 = vmatmul.bf16.gmra.mxu3 %v5067_v6 }
 0x21e   : > { %v2620_v18 = vsel %vm2605_vm4, %v5613_v62, %v2590_v19  ;;  %v2318_v9 = vadd.f32 %v2151_v10, %v1762_v28 }
 0x21f   : > { %v5160_v50 = vadd.f32 %v2620_v18, %v2317_v55 }
 0x220   : > { %v5164_v11 = vpop.f32.mrf.mxu3 }
 0x221   : > { %v2037_v4 = vpop.f32.mrf.mxu2 }
 0x222   : > { %v2302_v41 = vadd.f32 %v2037_v4, %v5015_v30  ;;  %v5174_v40 = vpop.f32.mrf.mxu1  ;;  %v1764_v30 = vadd.f32 %v1763_v37, %v5024_v34  ;;  %v1767_v34 = vadd.f32 %v1766_v43, %v5040_v46  ;;  %v2355_v46 = vadd.s32 48, %v5146_v47 }
 0x224   : > { %v2591_v23 = vrot.slane %v2302_v41, 7 }
 0x225   : > { %v2153_v6 = vpop.f32.mrf.mxu0 }
 0x226   : > { %v2619_v5 = vsel %vm2605_vm4, %v2590_v19, %v2591_v23  ;;  %v2319_v51 = vadd.f32 %v2153_v6, %v1764_v30 }
 0x227   : > { %v2656_v62 = vsel %vm2559_vm5, %v2619_v5, 0.0 }
 0x228   : > { %v5170_v55 = vadd.f32 %v2656_v62, %v2318_v9  ;;  %v5172_v18 = vpop.f32.mrf.mxu3  ;;  %v2397_v62 = vand.u32 15, %v2353_v29 }
 0x229   : > { %v2039_v12 = vpop.f32.mrf.mxu2 }
 0x22a   : > { %v2303_v16 = vadd.f32 %v2039_v12, %v5026_v36  ;;  %v5187_v12 = vpop.f32.mrf.mxu1  ;;  %vm2561_vm6 = vcmp.ne.s32.totalorder %v2397_v62, 0 }
 0x22c   : > { %v2592_v25 = vrot.slane %v2303_v16, 7 }
 0x22d   : > { %v2156_v10 = vpop.f32.mrf.mxu0  ;;  %2284 = vmatmul.bf16.gmra.mxu3 %v5085_v14 }
 0x22e   : > { %v2618_v5 = vsel %vm2605_vm4, %v2591_v23, %v2592_v25  ;;  %v2320_v28 = vadd.f32 %v2156_v10, %v1767_v34 }
 0x22f   : > { %v5182_v9 = vadd.f32 %v2618_v5, %v2319_v51 }
 0x230   : > { %v5184_v19 = vpop.f32.mrf.mxu3 }
 0x231   : > { %v2042_v4 = vpop.f32.mrf.mxu2 }
 0x232   : > { %v2304_v36 = vadd.f32 %v2042_v4, %v5034_v42  ;;  %v1769_v42 = vadd.f32 %v5130_v22, %v5047_v60  ;;  %v5201_v10 = vpop.f32.mrf.mxu1  ;;  %v1772_v22 = vadd.f32 %v5139_v54, %v5061_v27  ;;  %v2357_v54 = vadd.s32 64, %v5146_v47 }
 0x234   : > { %v2593_v37 = vrot.slane %v2304_v36, 7 }
 0x235   : > { %v2158_v41 = vpop.f32.mrf.mxu0 }
 0x236   : > { %v2617_v14 = vsel %vm2605_vm4, %v2592_v25, %v2593_v37  ;;  %v2321_v43 = vadd.f32 %v2158_v41, %v1769_v42 }
 0x237   : > { %v2658_v23 = vsel %vm2561_vm6, %v2617_v14, 0.0 }
 0x238   : > { %v5192_v6 = vadd.f32 %v2658_v23, %v2320_v28  ;;  %v5194_v16 = vpop.f32.mrf.mxu3 }
 0x239   : > { %v2044_v30 = vpop.f32.mrf.mxu2 }
 0x23a   : > { %v2305_v29 = vadd.f32 %v2044_v30, %v5045_v56  ;;  %v2411_v56 = vand.u32 15, %v2355_v46 }
 0x23c   : > { %v2594_v51 = vrot.slane %v2305_v29, 7  ;;  %vm2563_vm7 = vcmp.ne.s32.totalorder %v2411_v56, 0  ;;  %v2425_v56 = vand.u32 15, %v2357_v54 }
 0x23d   : > { %v2161_v5 = vpop.f32.mrf.mxu0  ;;  %2289 = vmatmul.bf16.gmra.mxu3 %v5100_v20 }
 0x23e   : > { %v2616_v25 = vsel %vm2605_vm4, %v2593_v37, %v2594_v51  ;;  %v2322_v20 = vadd.f32 %v2161_v5, %v1772_v22  ;;  %v1855_v37 = vpop.f32.mrf.mxu1  ;;  %vm2565_vm8 = vcmp.ne.s32.totalorder %v2425_v56, 0 }
 0x23f   : > { %v5205_v62 = vadd.f32 %v2616_v25, %v2321_v43 }
 0x240   : > { %v5207_v4 = vpop.f32.mrf.mxu3 }
 0x241   : > { %v2047_v36 = vpop.f32.mrf.mxu2 }
 0x242   : > { %v2306_v60 = vadd.f32 %v2047_v36, %v5055_v0  ;;  %v1774_v0 = vadd.f32 %v5148_v59, %v5069_v7  ;;  %v1777_v7 = vadd.f32 %v5164_v11, %v5103_v57  ;;  %v2359_v11 = vadd.s32 80, %v5146_v47 }
 0x244   : > { %v2595_v34 = vrot.slane %v2306_v60, 7 }
 0x245   : > { %v2163_v41 = vpop.f32.mrf.mxu0 }
 0x246   : > { %v2615_v28 = vsel %vm2605_vm4, %v2594_v51, %v2595_v34  ;;  %v2323_v46 = vadd.f32 %v2163_v41, %v1774_v0 }
 0x247   : > { %v2660_v14 = vsel %vm2563_vm7, %v2615_v28, 0.0 }
 0x248   : > { %v5214_v23 = vadd.f32 %v2660_v14, %v2322_v20  ;;  %v5216_v30 = vpop.f32.mrf.mxu3 }
 0x249   : > { %v2049_v29 = vpop.f32.mrf.mxu2 }
 0x24a   : > { %v2307_v42 = vadd.f32 %v2049_v29, %v5063_v2  ;;  %v1858_v2 = vpop.f32.mrf.mxu1 }
 0x24c   : > { %v2596_v27 = vrot.slane %v2307_v42, 7 }
 0x24d   : > { %v2166_v43 = vpop.f32.mrf.mxu0  ;;  %2294 = vmatmul.bf16.gmra.mxu3 %v5117_v26 }
 0x24e   : > { %v2614_v51 = vsel %vm2605_vm4, %v2595_v34, %v2596_v27  ;;  %v2324_v41 = vadd.f32 %v2166_v43, %v1777_v7  ;;  %v2439_v43 = vand.u32 15, %v2359_v11 }
 0x24f   : > { %v5225_v5 = vadd.f32 %v2614_v51, %v2323_v46 }
 0x250   : > { %v5227_v25 = vpop.f32.mrf.mxu3  ;;  %vm2567_vm9 = vcmp.ne.s32.totalorder %v2439_v43, 0 }
 0x251   : > { %v2052_v36 = vpop.f32.mrf.mxu2 }
 0x252   : > { %v2308_v60 = vadd.f32 %v2052_v36, %v5073_v8  ;;  %v1779_v8 = vadd.f32 %v5172_v18, %v5113_v35  ;;  %v1860_v42 = vpop.f32.mrf.mxu1  ;;  %v1782_v35 = vadd.f32 %v5184_v19, %v5126_v63  ;;  %v2350_v63 = vadd.s32 8, %v5146_v47 }
 0x254   : > { %v2597_v59 = vrot.slane %v2308_v60, 7  ;;  %v2376_v43 = vand.u32 15, %v2350_v63 }
 0x255   : > { %v2168_v22 = vpop.f32.mrf.mxu0 }
 0x256   : > { %v2613_v26 = vsel %vm2605_vm4, %v2596_v27, %v2597_v59  ;;  %v2325_v0 = vadd.f32 %v2168_v22, %v1779_v8  ;;  %v1856_v8 = vadd.f32 %v1855_v37, %v5007_v24  ;;  %vm2574_vm10 = vcmp.ne.s32.totalorder %v2376_v43, 15 }
 0x257   : > { %v2662_v34 = vsel %vm2565_vm8, %v2613_v26, 0.0 }
 0x258   : > { %v5234_v20 = vadd.f32 %v2662_v34, %v2324_v41  ;;  %v5236_v28 = vpop.f32.mrf.mxu3 }
 0x259   : > { %v2054_v14 = vpop.f32.mrf.mxu2 }
 0x25a   : > { %v2309_v29 = vadd.f32 %v2054_v14, %v5079_v45  ;;  %v1863_v60 = vpop.f32.mrf.mxu1 }
 0x25c   : > { %v2598_v57 = vrot.slane %v2309_v29, 7  ;;  %v2361_v29 = vadd.s32 96, %v5146_v47 }
 0x25d   : > { %v2171_v54 = vpop.f32.mrf.mxu0 }
 0x25e   : > { %v2612_v27 = vsel %vm2605_vm4, %v2597_v59, %v2598_v57  ;;  %v2326_v7 = vadd.f32 %v2171_v54, %v1782_v35  ;;  %v1859_v54 = vadd.f32 %v1858_v2, %v5022_v33  ;;  %v1787_v33 = vadd.f32 %v5207_v4, %v5144_v31 }
 0x25f   : > { %v5244_v46 = vadd.f32 %v2612_v27, %v2325_v0 }
 0x260   : > { %v5246_v51 = vpop.f32.mrf.mxu3 }
 0x261   : > { %v2057_v56 = vpop.f32.mrf.mxu2 }
 0x262   : > { %v2310_v45 = vadd.f32 %v2057_v56, %v5088_v15  ;;  %v1784_v15 = vadd.f32 %v5194_v16, %v5134_v3  ;;  %v5268_v3 = vpop.f32.mrf.mxu1  ;;  %v2453_v16 = vand.u32 15, %v2361_v29 }
 0x264   : > { %v2599_v18 = vrot.slane %v2310_v45, 7  ;;  %vm2569_vm12 = vcmp.ne.s32.totalorder %v2453_v16, 0 }
 0x265   : > { %v2173_v36 = vpop.f32.mrf.mxu0 }
 0x266   : > { %v2611_v22 = vsel %vm2605_vm4, %v2598_v57, %v2599_v18  ;;  %v2327_v11 = vadd.f32 %v2173_v36, %v1784_v15  ;;  %v5288_v15 = vld [vmem:[%s5611_s6] ss:$0 sm:$0xff] }
 0x267   : > { %v2664_v59 = vsel %vm2567_vm9, %v2611_v22, 0.0 }
 0x268   : > { %v5253_v41 = vadd.f32 %v2664_v59, %v2326_v7  ;;  %v2262_v26 = vpop.f32.mrf.mxu3 }
 0x269   : > { %v2059_v34 = vpop.f32.mrf.mxu2 }
 0x26a   : > { %v2311_v14 = vadd.f32 %v2059_v34, %v5096_v52  ;;  %v5266_v52 = vadd.f32 %v2262_v26, %v1856_v8  ;;  %v1861_v26 = vadd.f32 %v1860_v42, %v5028_v38  ;;  %v1868_v8 = vpop.f32.mrf.mxu1  ;;  %v2352_v42 = vadd.s32 24, %v5146_v47 }
 0x26c   : > { %v2600_v19 = vrot.slane %v2311_v14, 7  ;;  %v2687_v37 = vrot.slane %v5266_v52, 1 }
 0x26d   : > { %v2176_v0 = vpop.f32.mrf.mxu0 }
 0x26e   : > { %v2610_v57 = vsel %vm2605_vm4, %v2599_v18, %v2600_v19  ;;  %v2328_v7 = vadd.f32 %v2176_v0, %v1787_v33 }
 0x26f   : > { %v5264_v27 = vadd.f32 %v2610_v57, %v2327_v11  ;;  %v1789_v11 = vadd.f32 %v5216_v30, %v5162_v58  ;;  %v2363_v57 = vadd.s32 112, %v5146_v47  ;;  %v1864_v58 = vadd.f32 %v1863_v60, %v5043_v49 }
 0x270   : > { %v2265_v56 = vpop.f32.mrf.mxu3  ;;  %v1792_v60 = vadd.f32 %v5227_v25, %v5174_v40  ;;  %v1854_v40 = vadd.f32 %v5201_v10, %v5003_v39  ;;  %v1697_v25 = vadd.f32 %v5128_v53, %v5081_v13  ;;  %v1869_v13 = vadd.f32 %v1868_v8, %v5059_v1 }
 0x271   : > { %v2062_v45 = vpop.f32.mrf.mxu2  ;;  %v2334_v35 = vadd.f32 %v2265_v56, %v1859_v54  ;;  %v2390_v56 = vand.u32 15, %v2352_v42  ;;  %v1794_v53 = vadd.f32 %v5236_v28, %v5187_v12 }
 0x272   : > { %v2312_v24 = vadd.f32 %v2062_v45, %v5105_v21  ;;  %v5312_v49 = vpop.f32.mrf.mxu1 }
 0x273   : > { %v2688_v36 = vrot.slane %v2334_v35, 1  ;;  %vm2576_vm13 = vcmp.ne.s32.totalorder %v2390_v56, 15 }
 0x274   : > { %v2601_v2 = vrot.slane %v2312_v24, 7  ;;  %v2467_v24 = vand.u32 15, %v2363_v57 }
 0x275   : > { %v2716_v18 = vsel %vm2702_vm11, %v2687_v37, %v2688_v36  ;;  %v2178_v59 = vpop.f32.mrf.mxu0 }
 0x276   : > { %v2609_v21 = vsel %vm2605_vm4, %v2600_v19, %v2601_v2  ;;  %v2752_v22 = vsel %vm2574_vm10, %v2716_v18, 0.0  ;;  %v2329_v54 = vadd.f32 %v2178_v59, %v1789_v11  ;;  %vm2571_vm14 = vcmp.ne.s32.totalorder %v2467_v24, 0 }
 0x277   : > { %v2666_v34 = vsel %vm2569_vm12, %v2609_v21, 0.0  ;;  %v2768_v4 = vadd.f32 %v2752_v22, %v5160_v50 }
 0x278   : > { %v5282_v14 = vadd.f32 %v2666_v34, %v2328_v7  ;;  %v2267_v31 = vpop.f32.mrf.mxu3 }
 0x279   : > { %v2064_v63 = vpop.f32.mrf.mxu2  ;;  %v2335_v29 = vadd.f32 %v2267_v31, %v1861_v26  ;;  %v5296_v50 = vadd.f32 %v5288_v15, %v2768_v4 }
 0x27a   : > { %v2313_v19 = vadd.f32 %v2064_v63, %v5111_v32  ;;  %v1866_v63 = vadd.f32 %v5268_v3, %v5049_v61  ;;  %v1757_v61 = vadd.f32 %v5092_v17, %v4988_v44  ;;  %v2354_v17 = vadd.s32 40, %v5146_v47  ;;  %v1873_v12 = vpop.f32.mrf.mxu1 }
 0x27b   : > { %v2689_v38 = vrot.slane %v2335_v29, 1  ;;  %v2820_v18 = vmin.f32 %v5296_v50, 20.0 }
 0x27c   : > { %v2602_v0 = vrot.slane %v2313_v19, 7 }
 0x27d   : > { %v2715_v43 = vsel %vm2702_vm11, %v2688_v36, %v2689_v38  ;;  %v2181_v35 = vpop.f32.mrf.mxu0  ;;  %v2837_v26 = vmul.f32 1.442695, %v2820_v18 }
 0x27e   : > { %v2608_v16 = vsel %vm2605_vm4, %v2601_v2, %v2602_v0  ;;  %v2769_v32 = vadd.f32 %v2715_v43, %v5170_v55  ;;  %v2330_v31 = vadd.f32 %v2181_v35, %v1792_v60 }
 0x27f   : > { %v5304_v30 = vadd.f32 %v2608_v16, %v2329_v54 }
 0x280   : > { %v5307_v45 = vadd.f32 %v5288_v15, %v2769_v32  ;;  %v2270_v33 = vpop.f32.mrf.mxu3  ;;  %v5626_v32 = vld [vmem:[#allocation12_spill] sm:$0xff] }
 0x281   : > { %v2067_v7 = vpop.f32.mrf.mxu2  ;;  %v2336_v36 = vadd.f32 %v2270_v33, %v1864_v58  ;;  %v2316_v58 = vadd.f32 %v5626_v32, %v1757_v61  ;;  %v5629_v33 = vld [vmem:[#allocation13_spill] sm:$0xff] }
 0x282   : > { %v2821_v21 = vmin.f32 %v5307_v45, 20.0  ;;  %v2314_v2 = vadd.f32 %v2067_v7, %v5120_v48  ;;  %v5630_v18 = vrot.slane %v5629_v33, 7  ;;  %vm2949_vm2 = vcmp.gt.f32.partialorder %v5307_v45, 20.0 }
 0x283   : > { %v2690_v55 = vrot.slane %v2336_v36, 1 }
 0x284   : > { %v2839_v22 = vmul.f32 1.442695, %v2821_v21  ;;  %v2603_v59 = vrot.slane %v2314_v2, 7 }
 0x285   : > { %v2714_v34 = vsel %vm2702_vm11, %v2689_v38, %v2690_v55  ;;  %v2369_v38 = vand.u32 15, %v5146_v47  ;;  %v2183_v39 = vpop.f32.mrf.mxu0 }
 0x286   : > { %4246 = vpow2.f32 %v2839_v22  ;;  %v2607_v4 = vsel %vm2605_vm4, %v2602_v0, %v2603_v59  ;;  %v2754_v48 = vsel %vm2576_vm13, %v2714_v34, 0.0  ;;  %v2331_v24 = vadd.f32 %v2183_v39, %v1794_v53 }
 0x287   : > { %v2668_v29 = vsel %vm2571_vm14, %v2607_v4, 0.0  ;;  %v2770_v19 = vadd.f32 %v2754_v48, %v5182_v9  ;;  %v5336_v9 = vadd.f32 %v5246_v51, %v1854_v40  ;;  %4248 = vpow2.f32 %v2837_v26 }
 0x288   : > { %v5327_v11 = vadd.f32 %v2668_v29, %v2330_v31  ;;  %v2272_v42 = vpop.f32.mrf.mxu3  ;;  %vm5343_vm15 = vcmp.ne.s32.totalorder %v2369_v38, 0  ;;  %v2404_v34 = vand.u32 15, %v2354_v17 }
 0x289   : > { %v5331_v0 = vadd.f32 %v5288_v15, %v2770_v19  ;;  %v2069_v57 = vpop.f32.mrf.mxu2  ;;  %v2337_v54 = vadd.f32 %v2272_v42, %v1866_v63  ;;  %v2686_v28 = vrot.slane %v5336_v9, 1 }
 0x28a   : > { %v2315_v10 = vadd.f32 %v2069_v57, %v1697_v25  ;;  %vm2578_vm0 = vcmp.ne.s32.totalorder %v2404_v34, 15  ;;  %v5631_v57 = vld [vmem:[#allocation3_spill] sm:$0xff] }
 0x28b   : > { %v2822_v3 = vmin.f32 %v5331_v0, 20.0  ;;  %v2691_v43 = vrot.slane %v2337_v54, 1  ;;  %v1871_v54 = vadd.f32 %v5312_v49, %v5631_v57  ;;  %v5398_v34 = vld [vmem:[%s4462_s16 + $0xc] sm:$0xff]   ;;  %vm2950_vm3 = vcmp.gt.f32.partialorder %v5331_v0, 20.0 }
 0x28c   : > { %v4247_v16 = vpop.eup %4246  ;;  %v2604_v44 = vrot.slane %v2315_v10, 7  ;;  %v1875_v10 = vpop.f32.mrf.mxu1 }
 0x28d   : > { %v2869_v51 = vadd.f32 2.0, %v4247_v16  ;;  %v2841_v35 = vmul.f32 1.442695, %v2822_v3  ;;  %v2713_v1 = vsel %vm2702_vm11, %v2690_v55, %v2691_v43  ;;  %v4249_v55 = vpop.eup %4248 }
 0x28e   : > { %v2606_v8 = vsel %vm2605_vm4, %v2603_v59, %v2604_v44  ;;  %v2621_v7 = vsel %vm2605_vm4, %v2604_v44, %v5630_v18  ;;  %v2771_v36 = vadd.f32 %v2713_v1, %v5192_v6  ;;  %v2717_v6 = vsel %vm2702_vm11, %v2686_v28, %v2687_v37 }
 0x28f   : > { %v2885_v21 = vmul.f32 %v4247_v16, %v2869_v51  ;;  %4250 = vpow2.f32 %v2841_v35  ;;  %v2654_v2 = vsel %vm5343_vm15, %v2621_v7, 0.0  ;;  %v5360_v60 = vadd.f32 %v2606_v8, %v2331_v24  ;;  %v5632_v7 = vld [vmem:[#allocation4_spill] sm:$0xff] }
 0x290   : > { %v2670_v22 = vadd.f32 %v2654_v2, %v2316_v58  ;;  %v5363_v26 = vadd.f32 %v5288_v15, %v2771_v36  ;;  %v2275_v59 = vpop.f32.mrf.mxu3  ;;  %v2868_v29 = vadd.f32 2.0, %v4249_v55  ;;  %v2356_v44 = vadd.s32 56, %v5146_v47 }
 0x291   : > { %v2901_v31 = vadd.f32 2.0, %v2885_v21  ;;  %v2338_v4 = vadd.f32 %v2275_v59, %v1869_v13  ;;  %v1874_v36 = vadd.f32 %v1873_v12, %v5632_v7  ;;  %v5636_v7 = vld [vmem:[#allocation6_spill] sm:$0xff]  ;;  %vm2948_vm4 = vcmp.gt.f32.partialorder %v5296_v50, 20.0 }
 0x292   : > { %v2767_v48 = vadd.f32 %v2717_v6, %v2670_v22  ;;  %v2823_v63 = vmin.f32 %v5363_v26, 20.0  ;;  %v5380_v61 = vmul.f32 %v4249_v55, %v2868_v29  ;;  %v2418_v18 = vand.u32 15, %v2356_v44  ;;  %v5406_v29 = vld [vmem:[%s4462_s16 + $0x4] sm:$0xff]  }
 0x293   : > { %v2692_v19 = vrot.slane %v2338_v4, 1  ;;  %4252 = vrcp.f32 %v2901_v31  ;;  %vm2951_vm7 = vcmp.gt.f32.partialorder %v5363_v26, 20.0 }
 0x294   : > { %v5373_v40 = vadd.f32 %v5288_v15, %v2767_v48  ;;  %v2843_v25 = vmul.f32 1.442695, %v2823_v63  ;;  %v2900_v49 = vadd.f32 2.0, %v5380_v61  ;;  %v1878_v48 = vpop.f32.mrf.mxu1  ;;  %vm5401_vm1 = vcmp.ne.s32.totalorder %v2418_v18, 15 }
 0x295   : > { %v4251_v38 = vpop.eup %4250  ;;  %v2712_v52 = vsel %vm2702_vm11, %v2691_v43, %v2692_v19  ;;  %v2804_v63 = vunpack.c.l.bf16 %v5406_v29 }
 0x296   : > { %v2870_v42 = vadd.f32 2.0, %v4251_v38  ;;  %v2819_v37 = vmin.f32 %v5373_v40, 20.0  ;;  %4254 = vpow2.f32 %v2843_v25  ;;  %v2756_v39 = vsel %vm2578_vm0, %v2712_v52, 0.0 }
 0x297   : > { %v2772_v3 = vadd.f32 %v2756_v39, %v5205_v62  ;;  %v2805_v52 = vunpack.c.h.bf16 %v5406_v29  ;;  %vm2947_vm5 = vcmp.gt.f32.partialorder %v5373_v40, 20.0 }
 0x298   : > { %v2886_v13 = vmul.f32 %v4251_v38, %v2870_v42  ;;  %v2835_v53 = vmul.f32 1.442695, %v2819_v37  ;;  %v2277_v16 = vpop.f32.mrf.mxu3  ;;  %v2806_v42 = vunpack.c.l.bf16 %v5398_v34 }
 0x299   : > { %v2339_v32 = vadd.f32 %v2277_v16, %v1871_v54  ;;  %v4253_v58 = vpop.eup %4252  ;;  %v5384_v43 = vadd.f32 %v5288_v15, %v2772_v3  ;;  %v5635_v16 = vld [vmem:[#allocation5_spill] sm:$0xff] }
 0x29a   : > { %v2902_v56 = vadd.f32 2.0, %v2886_v13  ;;  %4256 = vpow2.f32 %v2835_v53  ;;  %v2933_v24 = vmul.f32 %v4253_v58, %v2885_v21 }
 0x29b   : > { %v2693_v17 = vrot.slane %v2339_v32, 1  ;;  %v2824_v35 = vmin.f32 %v5384_v43, 20.0  ;;  %v1876_v32 = vadd.f32 %v1875_v10, %v5635_v16  ;;  %vm2952_vm8 = vcmp.gt.f32.partialorder %v5384_v43, 20.0 }
 0x29c   : > { %v4255_v51 = vpop.eup %4254  ;;  %4258 = vrcp.f32 %v2902_v56  ;;  %v2965_v21 = vmul.f32 %v2933_v24, %v5307_v45 }
 0x29d   : > { %v2871_v62 = vadd.f32 2.0, %v4255_v51  ;;  %v2711_v1 = vsel %vm2702_vm11, %v2692_v19, %v2693_v17  ;;  %v2845_v8 = vmul.f32 1.442695, %v2824_v35  ;;  %4260 = vrcp.f32 %v2900_v49 }
 0x29e   : > { %v2773_v33 = vadd.f32 %v2711_v1, %v5214_v23  ;;  %v2981_v54 = vsel %vm2949_vm2, %v5307_v45, %v2965_v21  ;;  %v453_v21 = vld [vmem:[%s4462_s16] sm:$0xf] }
 0x29f   : > { %v2887_v2 = vmul.f32 %v4255_v51, %v2871_v62  ;;  %4262 = vpow2.f32 %v2845_v8  ;;  %v2997_v51 = vadd.f32 %v2981_v54, %v2805_v52  ;;  %v2803_v52 = vunpack.c.l.bf16 %v453_v21 }
 0x2a0   : > { %v4257_v55 = vpop.eup %4256  ;;  %v5394_v22 = vadd.f32 %v5288_v15, %v2773_v33  ;;  %v2280_v59 = vpop.f32.mrf.mxu3  ;;  %v2358_v33 = vadd.s32 72, %v5146_v47 }
 0x2a1   : > { %v2867_v6 = vadd.f32 2.0, %v4257_v55  ;;  %v2903_v31 = vadd.f32 2.0, %v2887_v2  ;;  %v2340_v4 = vadd.f32 %v2280_v59, %v1874_v36  ;;  %v1879_v36 = vadd.f32 %v1878_v48, %v5636_v7 }
 0x2a2   : > { %v4259_v23 = vpop.eup %4258  ;;  %v2825_v12 = vmin.f32 %v5394_v22, 20.0  ;;  %vm2953_vm10 = vcmp.gt.f32.partialorder %v5394_v22, 20.0 }
 0x2a3   : > { %v2934_v19 = vmul.f32 %v4259_v23, %v2886_v13  ;;  %v2883_v25 = vmul.f32 %v4257_v55, %v2867_v6  ;;  %4264 = vrcp.f32 %v2903_v31  ;;  %v2694_v38 = vrot.slane %v2340_v4, 1  ;;  %v4261_v57 = vpop.eup %4260  ;;  %v1880_v55 = vpop.f32.mrf.mxu1 }
 0x2a4   : > { %v2847_v37 = vmul.f32 1.442695, %v2825_v12  ;;  %v2932_v49 = vmul.f32 %v4261_v57, %v5380_v61 }
 0x2a5   : > { %v2966_v39 = vmul.f32 %v2934_v19, %v5331_v0  ;;  %v2899_v53 = vadd.f32 2.0, %v2883_v25  ;;  %v2710_v13 = vsel %vm2702_vm11, %v2693_v17, %v2694_v38  ;;  %v4263_v3 = vpop.eup %4262 }
 0x2a6   : > { %4266 = vpow2.f32 %v2847_v37  ;;  %v2758_v58 = vsel %vm5401_vm1, %v2710_v13, 0.0  ;;  %v2872_v45 = vadd.f32 2.0, %v4263_v3  ;;  %v2964_v59 = vmul.f32 %v2932_v49, %v5296_v50  ;;  %v5453_v13 = vld [vmem:[%s4462_s16 + $0x14] sm:$0xff]  }
 0x2a7   : > { %v2982_v56 = vsel %vm2950_vm3, %v5331_v0, %v2966_v39  ;;  %4268 = vrcp.f32 %v2899_v53  ;;  %v2774_v44 = vadd.f32 %v2758_v58, %v5225_v5  ;;  %v2432_v37 = vand.u32 15, %v2358_v33 }
 0x2a8   : > { %v2998_v35 = vadd.f32 %v2982_v56, %v2806_v42  ;;  %v2282_v17 = vpop.f32.mrf.mxu3  ;;  %v2888_v10 = vmul.f32 %v4263_v3, %v2872_v45  ;;  %v2807_v53 = vunpack.c.h.bf16 %v5398_v34 }
 0x2a9   : > { %v4265_v24 = vpop.eup %4264  ;;  %v5430_v0 = vadd.f32 %v5288_v15, %v2774_v44  ;;  %v2341_v62 = vadd.f32 %v2282_v17, %v1876_v32  ;;  %vm5456_vm6 = vcmp.ne.s32.totalorder %v2432_v37, 15 }
 0x2aa   : > { %v4060_v5 = vpack.c.bf16 %v2998_v35, %v2997_v51  ;;  %v2904_v1 = vadd.f32 2.0, %v2888_v10  ;;  %v2935_v6 = vmul.f32 %v4265_v24, %v2887_v2  ;;  %v2980_v2 = vsel %vm2948_vm4, %v5296_v50, %v2964_v59 }
 0x2ab   : > { %v2826_v61 = vmin.f32 %v5430_v0, 20.0  ;;  %v2695_v8 = vrot.slane %v2341_v62, 1  ;;  %v2996_v16 = vadd.f32 %v2980_v2, %v2804_v63  ;;  %v2808_v51 = vunpack.c.l.bf16 %v5453_v13  ;;  %v1883_v17 = vpop.f32.mrf.mxu1 }
 0x2ac   : > { %v4267_v18 = vpop.eup %4266  ;;  %4099 = vst [vmem:[%s5427_s24 + $0x8] sm:$0xff] %v4060_v5   ;;  %4270 = vrcp.f32 %v2904_v1  ;;  %v2967_v29 = vmul.f32 %v2935_v6, %v5363_v26  ;;  %vm2954_vm12 = vcmp.gt.f32.partialorder %v5430_v0, 20.0 }
 0x2ad   : > { %v4269_v31 = vpop.eup %4268  ;;  %v2873_v4 = vadd.f32 2.0, %v4267_v18  ;;  %v2849_v23 = vmul.f32 1.442695, %v2826_v61  ;;  %v2709_v12 = vsel %vm2702_vm11, %v2694_v38, %v2695_v8 }
 0x2ae   : > { %v2931_v19 = vmul.f32 %v4269_v31, %v2883_v25  ;;  %v2775_v48 = vadd.f32 %v2709_v12, %v5234_v20  ;;  %v2983_v49 = vsel %vm2951_vm7, %v5363_v26, %v2967_v29 }
 0x2af   : > { %v2889_v42 = vmul.f32 %v4267_v18, %v2873_v4  ;;  %4272 = vpow2.f32 %v2849_v23  ;;  %v2999_v18 = vadd.f32 %v2983_v49, %v2807_v53  ;;  %v2360_v23 = vadd.s32 88, %v5146_v47 }
 0x2b0   : > { %v2963_v57 = vmul.f32 %v2931_v19, %v5373_v40  ;;  %v5446_v54 = vadd.f32 %v5288_v15, %v2775_v48  ;;  %v2285_v38 = vpop.f32.mrf.mxu3 }
 0x2b1   : > { %v2905_v25 = vadd.f32 2.0, %v2889_v42  ;;  %v2342_v39 = vadd.f32 %v2285_v38, %v1879_v36 }
 0x2b2   : > { %v2979_v20 = vsel %vm2947_vm5, %v5373_v40, %v2963_v57  ;;  %v2827_v50 = vmin.f32 %v5446_v54, 20.0  ;;  %v4271_v3 = vpop.eup %4270  ;;  %v2446_v57 = vand.u32 15, %v2360_v23  ;;  %vm2955_vm14 = vcmp.gt.f32.partialorder %v5446_v54, 20.0 }
 0x2b3   : > { %v2995_v32 = vadd.f32 %v2979_v20, %v2803_v52  ;;  %v2696_v56 = vrot.slane %v2342_v39, 1  ;;  %v2936_v45 = vmul.f32 %v4271_v3, %v2888_v10  ;;  %4274 = vrcp.f32 %v2905_v25  ;;  %v5639_v10 = vld [vmem:[#allocation7_spill] sm:$0xff]  ;;  %v5640_v52 = vld [vmem:[#allocation8_spill] sm:$0xff]  ;;  %v1885_v38 = vpop.f32.mrf.mxu1 }
 0x2b4   : > { %v2851_v40 = vmul.f32 1.442695, %v2827_v50  ;;  %v1881_v1 = vadd.f32 %v1880_v55, %v5639_v10  ;;  %v1884_v37 = vadd.f32 %v1883_v17, %v5640_v52  ;;  %vm5492_vm9 = vcmp.ne.s32.totalorder %v2446_v57, 15 }
 0x2b5   : > { %v4273_v44 = vpop.eup %4272  ;;  %v4055_v34 = vpack.c.bf16 %v2996_v16, %v2995_v32  ;;  %v2708_v35 = vsel %vm2702_vm11, %v2695_v8, %v2696_v56  ;;  %v2968_v24 = vmul.f32 %v2936_v45, %v5384_v43 }
 0x2b6   : > { %v2874_v62 = vadd.f32 2.0, %v4273_v44  ;;  %4276 = vpow2.f32 %v2851_v40  ;;  %v2760_v5 = vsel %vm5456_vm6, %v2708_v35, 0.0  ;;  %v5643_v35 = vld [vmem:[#allocation9_spill] sm:$0xff] }
 0x2b7   : > { %4056 = vst [vmem:[%s5427_s24] sm:$0xff] %v4055_v34   ;;  %v2776_v26 = vadd.f32 %v2760_v5, %v5244_v46  ;;  %v2984_v61 = vsel %vm2952_vm8, %v5384_v43, %v2968_v24  ;;  %v1886_v17 = vadd.f32 %v1885_v38, %v5643_v35 }
 0x2b8   : > { %v2890_v33 = vmul.f32 %v4273_v44, %v2874_v62  ;;  %v2287_v8 = vpop.f32.mrf.mxu3  ;;  %v3000_v7 = vadd.f32 %v2984_v61, %v2808_v51 }
 0x2b9   : > { %v5474_v36 = vadd.f32 %v5288_v15, %v2776_v26  ;;  %v2343_v59 = vadd.f32 %v2287_v8, %v1881_v1  ;;  %v4275_v21 = vpop.eup %4274 }
 0x2ba   : > { %v2906_v6 = vadd.f32 2.0, %v2890_v33  ;;  %v4065_v31 = vpack.c.bf16 %v3000_v7, %v2999_v18  ;;  %v2937_v43 = vmul.f32 %v4275_v21, %v2889_v42  ;;  %v5488_v42 = vld [vmem:[%s4462_s16 + $0x1c] sm:$0xff]  }
 0x2bb   : > { %v2828_v55 = vmin.f32 %v5474_v36, 20.0  ;;  %v2697_v4 = vrot.slane %v2343_v59, 1  ;;  %v1888_v8 = vpop.f32.mrf.mxu1  ;;  %v2362_v59 = vadd.s32 104, %v5146_v47  ;;  %vm2956_vm15 = vcmp.gt.f32.partialorder %v5474_v36, 20.0 }
 0x2bc   : > { %v4277_v46 = vpop.eup %4276  ;;  %4278 = vrcp.f32 %v2906_v6  ;;  %4100 = vst [vmem:[%s5427_s24 + $0x10] sm:$0xff] %v4065_v31   ;;  %v2969_v39 = vmul.f32 %v2937_v43, %v5394_v22  ;;  %v5644_v43 = vld [vmem:[#allocation10_spill] sm:$0xff] }
 0x2bd   : > { %v2875_v12 = vadd.f32 2.0, %v4277_v46  ;;  %v2853_v63 = vmul.f32 1.442695, %v2828_v55  ;;  %v2707_v19 = vsel %vm2702_vm11, %v2696_v56, %v2697_v4  ;;  %v2810_v56 = vunpack.c.l.bf16 %v5488_v42 }
 0x2be   : > { %v2777_v48 = vadd.f32 %v2707_v19, %v5253_v41  ;;  %v2809_v41 = vunpack.c.h.bf16 %v5453_v13  ;;  %v2985_v44 = vsel %vm2953_vm10, %v5394_v22, %v2969_v39 }
 0x2bf   : > { %v2891_v2 = vmul.f32 %v4277_v46, %v2875_v12  ;;  %4280 = vpow2.f32 %v2853_v63  ;;  %v2460_v46 = vand.u32 15, %v2362_v59  ;;  %v1889_v12 = vadd.f32 %v1888_v8, %v5644_v43 }
 0x2c0   : > { %v5484_v29 = vadd.f32 %v5288_v15, %v2777_v48  ;;  %v2290_v25 = vpop.f32.mrf.mxu3  ;;  %v3001_v22 = vadd.f32 %v2985_v44, %v2809_v41  ;;  %v5647_v44 = vld [vmem:[#allocation11_spill] sm:$0xff] }
 0x2c1   : > { %v2907_v20 = vadd.f32 2.0, %v2891_v2  ;;  %v2344_v53 = vadd.f32 %v2290_v25, %v1884_v37  ;;  %v5523_v37 = vld [vmem:[%s4462_s16 + $0x24] sm:$0xff]   ;;  %vm5526_vm13 = vcmp.ne.s32.totalorder %v2460_v46, 15 }
 0x2c2   : > { %v4279_v50 = vpop.eup %4278  ;;  %v2829_v3 = vmin.f32 %v5484_v29, 20.0  ;;  %v2812_v41 = vunpack.c.l.bf16 %v5523_v37 }
 0x2c3   : > { %v2938_v16 = vmul.f32 %v4279_v50, %v2890_v33  ;;  %v2698_v58 = vrot.slane %v2344_v53, 1  ;;  %4282 = vrcp.f32 %v2907_v20  ;;  %v2364_v53 = vadd.s32 120, %v5146_v47  ;;  %v1890_v50 = vpop.f32.mrf.mxu1 }
 0x2c4   : > { %v2855_v45 = vmul.f32 1.442695, %v2829_v3  ;;  %v2811_v3 = vunpack.c.h.bf16 %v5488_v42 }
 0x2c5   : > { %v4281_v40 = vpop.eup %4280  ;;  %v2970_v34 = vmul.f32 %v2938_v16, %v5430_v0  ;;  %v2706_v13 = vsel %vm2702_vm11, %v2697_v4, %v2698_v58 }
 0x2c6   : > { %v2876_v49 = vadd.f32 2.0, %v4281_v40  ;;  %4284 = vpow2.f32 %v2855_v45  ;;  %v2762_v51 = vsel %vm5492_vm9, %v2706_v13, 0.0 }
 0x2c7   : > { %v2986_v24 = vsel %vm2954_vm12, %v5430_v0, %v2970_v34  ;;  %v2778_v62 = vadd.f32 %v2762_v51, %v5264_v27  ;;  %v1891_v34 = vadd.f32 %v1890_v50, %v5647_v44 }
 0x2c8   : > { %v3002_v5 = vadd.f32 %v2986_v24, %v2810_v56  ;;  %v2892_v10 = vmul.f32 %v4281_v40, %v2876_v49  ;;  %v2292_v1 = vpop.f32.mrf.mxu3 }
 0x2c9   : > { %v5509_v26 = vadd.f32 %v5288_v15, %v2778_v62  ;;  %v2345_v61 = vadd.f32 %v2292_v1, %v1886_v17  ;;  %v4283_v33 = vpop.eup %4282 }
 0x2ca   : > { %v4070_v18 = vpack.c.bf16 %v3002_v5, %v3001_v22  ;;  %v2908_v7 = vadd.f32 2.0, %v2892_v10  ;;  %v2939_v27 = vmul.f32 %v4283_v33, %v2891_v2 }
 0x2cb   : > { %v2830_v21 = vmin.f32 %v5509_v26, 20.0  ;;  %v2699_v0 = vrot.slane %v2345_v61, 1  ;;  %vm2958_vm1 = vcmp.gt.f32.partialorder %v5509_v26, 20.0 }
 0x2cc   : > { %v4285_v6 = vpop.eup %4284  ;;  %4101 = vst [vmem:[%s5427_s24 + $0x18] sm:$0xff] %v4070_v18   ;;  %4286 = vrcp.f32 %v2908_v7  ;;  %v2971_v52 = vmul.f32 %v2939_v27, %v5446_v54 }
 0x2cd   : > { %v2877_v31 = vadd.f32 2.0, %v4285_v6  ;;  %v2857_v55 = vmul.f32 1.442695, %v2830_v21  ;;  %v2705_v4 = vsel %vm2702_vm11, %v2698_v58, %v2699_v0 }
 0x2ce   : > { %v2779_v23 = vadd.f32 %v2705_v4, %v5282_v14  ;;  %v2987_v58 = vsel %vm2955_vm14, %v5446_v54, %v2971_v52  ;;  %v2474_v54 = vand.u32 15, %v2364_v53  ;;  %v464_v4 = vld [vmem:[%s4462_s16 + $0x2c] sm:$0xff]  }
 0x2cf   : > { %v2893_v63 = vmul.f32 %v4285_v6, %v2877_v31  ;;  %4288 = vpow2.f32 %v2857_v55  ;;  %v3003_v51 = vadd.f32 %v2987_v58, %v2811_v3  ;;  %v2815_v44 = vunpack.c.h.bf16 %v464_v4 }
 0x2d0   : > { %v5519_v19 = vadd.f32 %v5288_v15, %v2779_v23  ;;  %v2295_v48 = vpop.f32.mrf.mxu3  ;;  %vm2588_vm0 = vcmp.ne.s32.totalorder %v2474_v54, 15 }
 0x2d1   : > { %v2909_v2 = vadd.f32 2.0, %v2893_v63  ;;  %v2346_v57 = vadd.f32 %v2295_v48, %v1889_v12 }
 0x2d2   : > { %v4287_v38 = vpop.eup %4286  ;;  %v2831_v25 = vmin.f32 %v5519_v19, 20.0  ;;  %vm2959_vm2 = vcmp.gt.f32.partialorder %v5519_v19, 20.0 }
 0x2d3   : > { %v2940_v39 = vmul.f32 %v4287_v38, %v2892_v10  ;;  %4290 = vrcp.f32 %v2909_v2  ;;  %v2700_v20 = vrot.slane %v2346_v57, 1 }
 0x2d4   : > { %v2859_v16 = vmul.f32 1.442695, %v2831_v25 }
 0x2d5   : > { %v4289_v32 = vpop.eup %4288  ;;  %v2972_v56 = vmul.f32 %v2940_v39, %v5474_v36  ;;  %v2704_v45 = vsel %vm2702_vm11, %v2699_v0, %v2700_v20 }
 0x2d6   : > { %v2878_v40 = vadd.f32 2.0, %v4289_v32  ;;  %4292 = vpow2.f32 %v2859_v16  ;;  %v2764_v42 = vsel %vm5526_vm13, %v2704_v45, 0.0 }
 0x2d7   : > { %v2988_v13 = vsel %vm2956_vm15, %v5474_v36, %v2972_v56  ;;  %v2780_v49 = vadd.f32 %v2764_v42, %v5304_v30 }
 0x2d8   : > { %v3004_v35 = vadd.f32 %v2988_v13, %v2812_v41  ;;  %v2894_v17 = vmul.f32 %v4289_v32, %v2878_v40  ;;  %v2297_v24 = vpop.f32.mrf.mxu3 }
 0x2d9   : > { %v4291_v62 = vpop.eup %4290  ;;  %v5545_v22 = vadd.f32 %v5288_v15, %v2780_v49  ;;  %v2347_v5 = vadd.f32 %v2297_v24, %v1891_v34  ;;  %v468_v24 = vld [vmem:[%s4462_s16 + $0x3c] sm:$0xf] }
 0x2da   : > { %v4075_v10 = vpack.c.bf16 %v3004_v35, %v3003_v51  ;;  %v2910_v1 = vadd.f32 2.0, %v2894_v17  ;;  %v2941_v30 = vmul.f32 %v4291_v62, %v2893_v63 }
 0x2db   : > { %v2832_v61 = vmin.f32 %v5545_v22, 20.0  ;;  %v2701_v33 = vrot.slane %v2347_v5, 1  ;;  %vm2960_vm3 = vcmp.gt.f32.partialorder %v5545_v22, 20.0 }
 0x2dc   : > { %v4293_v36 = vpop.eup %4292  ;;  %4102 = vst [vmem:[%s5427_s24 + $0x20] sm:$0xff] %v4075_v10   ;;  %4294 = vrcp.f32 %v2910_v1  ;;  %v2973_v55 = vmul.f32 %v2941_v30, %v5484_v29 }
 0x2dd   : > { %v2879_v8 = vadd.f32 2.0, %v4293_v36  ;;  %v2861_v18 = vmul.f32 1.442695, %v2832_v61  ;;  %v2703_v7 = vsel %vm2702_vm11, %v2700_v20, %v2701_v33  ;;  %v2718_v59 = vsel %vm2702_vm11, %v2701_v33, %v2686_v28 }
 0x2de   : > { %v2766_v21 = vsel %vm2588_vm0, %v2718_v59, 0.0  ;;  %v2781_v0 = vadd.f32 %v2703_v7, %v5327_v11  ;;  %v2813_v28 = vunpack.c.h.bf16 %v5523_v37  ;;  %vm2957_vm11 = vcmp.gt.f32.partialorder %v5484_v29, 20.0 }
 0x2df   : > { %v2895_v6 = vmul.f32 %v4293_v36, %v2879_v8  ;;  %4296 = vpow2.f32 %v2861_v18  ;;  %v2782_v27 = vadd.f32 %v2766_v21, %v5360_v60  ;;  %v2814_v60 = vunpack.c.l.bf16 %v464_v4 }
 0x2e0   : > { %v5558_v31 = vadd.f32 %v5288_v15, %v2781_v0  ;;  %v2989_v48 = vsel %vm2957_vm11, %v5484_v29, %v2973_v55  ;;  %v2818_v33 = vunpack.c.l.bf16 %v468_v24 }
 0x2e1   : > { %v2911_v23 = vadd.f32 2.0, %v2895_v6  ;;  %v5563_v46 = vadd.f32 %v5288_v15, %v2782_v27  ;;  %v3005_v57 = vadd.f32 %v2989_v48, %v2813_v28 }
 0x2e2   : > { %v4295_v9 = vpop.eup %4294  ;;  %v2833_v47 = vmin.f32 %v5558_v31, 20.0  ;;  %vm2961_vm4 = vcmp.gt.f32.partialorder %v5558_v31, 20.0 }
 0x2e3   : > { %v2942_v11 = vmul.f32 %v4295_v9, %v2894_v17  ;;  %v2834_v43 = vmin.f32 %v5563_v46, 20.0  ;;  %4298 = vrcp.f32 %v2911_v23  ;;  %vm2962_vm5 = vcmp.gt.f32.partialorder %v5563_v46, 20.0 }
 0x2e4   : > { %v2863_v12 = vmul.f32 1.442695, %v2833_v47 }
 0x2e5   : > { %v4297_v63 = vpop.eup %4296  ;;  %v2974_v15 = vmul.f32 %v2942_v11, %v5509_v26  ;;  %v2865_v52 = vmul.f32 1.442695, %v2834_v43 }
 0x2e6   : > { %v2880_v2 = vadd.f32 2.0, %v4297_v63  ;;  %4300 = vpow2.f32 %v2863_v12 }
 0x2e7   : > { %v2990_v37 = vsel %vm2958_vm1, %v5509_v26, %v2974_v15  ;;  %4302 = vpow2.f32 %v2865_v52  ;;  %v466_v26 = vld [vmem:[%s4462_s16 + $0x34] sm:$0xff]  }
 0x2e8   : > { %v3006_v38 = vadd.f32 %v2990_v37, %v2814_v60  ;;  %v2896_v25 = vmul.f32 %v4297_v63, %v2880_v2  ;;  %v2816_v34 = vunpack.c.l.bf16 %v466_v26  ;;  %v2817_v1 = vunpack.c.h.bf16 %v466_v26 }
 0x2e9   : > { %v4299_v14 = vpop.eup %4298 }
 0x2ea   : > { %v4080_v39 = vpack.c.bf16 %v3006_v38, %v3005_v57  ;;  %v2912_v20 = vadd.f32 2.0, %v2896_v25  ;;  %v2943_v50 = vmul.f32 %v4299_v14, %v2895_v6 }
 0x2ec   : > { %v4301_v53 = vpop.eup %4300  ;;  %4103 = vst [vmem:[%s5427_s24 + $0x28] sm:$0xff] %v4080_v39   ;;  %4304 = vrcp.f32 %v2912_v20  ;;  %v2975_v58 = vmul.f32 %v2943_v50, %v5519_v19 }
 0x2ed   : > { %v4303_v29 = vpop.eup %4302  ;;  %v2881_v3 = vadd.f32 2.0, %v4301_v53 }
 0x2ee   : > { %v2882_v41 = vadd.f32 2.0, %v4303_v29  ;;  %v2991_v13 = vsel %vm2959_vm2, %v5519_v19, %v2975_v58 }
 0x2ef   : > { %v2897_v16 = vmul.f32 %v4301_v53, %v2881_v3  ;;  %v3007_v51 = vadd.f32 %v2991_v13, %v2815_v44 }
 0x2f0   : > { %v2898_v32 = vmul.f32 %v4303_v29, %v2882_v41 }
 0x2f1   : > { %v2913_v56 = vadd.f32 2.0, %v2897_v16 }
 0x2f2   : > { %v4305_v45 = vpop.eup %4304  ;;  %v2914_v40 = vadd.f32 2.0, %v2898_v32 }
 0x2f3   : > { %v2944_v42 = vmul.f32 %v4305_v45, %v2896_v25  ;;  %4306 = vrcp.f32 %v2913_v56 }
 0x2f4   : > { %4308 = vrcp.f32 %v2914_v40 }
 0x2f5   : > { %v2976_v49 = vmul.f32 %v2944_v42, %v5545_v22 }
 0x2f7   : > { %v2992_v54 = vsel %vm2960_vm3, %v5545_v22, %v2976_v49 }
 0x2f8   : > { %v3008_v35 = vadd.f32 %v2992_v54, %v2816_v34 }
 0x2f9   : > { %v4307_v17 = vpop.eup %4306 }
 0x2fa   : > { %v4309_v62 = vpop.eup %4308  ;;  %v4085_v5 = vpack.c.bf16 %v3008_v35, %v3007_v51  ;;  %v2945_v10 = vmul.f32 %v4307_v17, %v2897_v16 }
 0x2fb   : > { %v2946_v61 = vmul.f32 %v4309_v62, %v2898_v32 }
 0x2fc   : > { %4104 = vst [vmem:[%s5427_s24 + $0x30] sm:$0xff] %v4085_v5   ;;  %v2977_v19 = vmul.f32 %v2945_v10, %v5558_v31 }
 0x2fd   : > { %v2978_v36 = vmul.f32 %v2946_v61, %v5563_v46 }
 0x2fe   : > { %v2993_v22 = vsel %vm2961_vm4, %v5558_v31, %v2977_v19 }
 0x2ff   : > { %v2994_v30 = vsel %vm2962_vm5, %v5563_v46, %v2978_v36  ;;  %v3009_v8 = vadd.f32 %v2993_v22, %v2817_v1 }
 0x300   : > { %v3010_v18 = vadd.f32 %v2994_v30, %v2818_v33 }
 0x302   : > { %v4090_v7 = vpack.c.bf16 %v3010_v18, %v3009_v8 }
 0x304   : > { %4105 = vst [vmem:[%s5427_s24 + $0x38] sm:$0xff] %v4090_v7  }
 0x305 PF: > { %s17_s28 = sadd.s32 1, %s4348_s28   ;;  %s5648_s24 = smov %s4340_s26 }
 0x306   : > { %p14_p12 = scmp.ge.s32.totalorder %s17_s28, 6   ;;  %s5649_s25 = smov %s4344_s27 }
 0x307   : > { %s5650_s26 = smov %s5653_s29  ;;  %s5651_s27 = smov %s5657_s30 }
 0x308   :  { %16 = sbr.rel (!%p14_p12) target bundleno = 3 (0x3), region = 95 }

</bundles_post_ra>
